<compile_context>
chip_gen: v7x
topology: tpu7x:2x2x1
jax: 0.10.0
libtpu: 0.0.40
codegen_flags: <defaults>
</compile_context>

<pallas_src>
import numpy as np
import jax
import jax.numpy as jnp
from jax import lax
from jax.experimental import pallas as pl
from jax.experimental.pallas import tpu as pltpu

IN_PLANES = 4       # C
HIDDEN_SIZE = 1     # H = C * HIDDEN_SIZE
KERNEL1 = 5
KERNEL2 = 3
PAD = 3             # ReplicationPad1d((3, 3)) for the k=5 conv
LEVEL = 1           # SCINet_Tree current_level (num_levels=2 -> 3 Interactors)
LEAKY_SLOPE = 0.01

# natural parameter layout: node order [root, even-child, odd-child],
# branch order [phi, psi, U, P]; pass descriptors = (node, branch) per stacked row block
_ROOT_PASSES = ([(0, 0), (0, 1)], [(0, 2), (0, 3)])
_LEAF_PASSES = ([(1, 0), (2, 0), (1, 1), (2, 1)],
                [(1, 2), (2, 2), (1, 3), (2, 3)])


# --------------------------------------------------------------------------
# in-kernel helpers (traced into the single fused kernel)
# --------------------------------------------------------------------------

def _roll_lanes_left(v, k):
    """out[..., i] = v[..., (i + k) % L] via two static lane slices + concat."""
    return jnp.concatenate([v[..., k:], v[..., :k]], axis=-1)


def _compact_even(v):
    """v[..., 0::2] (length L//2) via log-step lane compaction (static slices,
    lane concats, iota and selects only -- no strided loads / gathers)."""
    L = v.shape[-1]
    lane = lax.broadcasted_iota(jnp.int32, v.shape, v.ndim - 1)
    u = v
    for b in range((L // 2 - 1).bit_length()):
        sh = 1 << b
        u = jnp.where((lane & sh) != 0, _roll_lanes_left(u, sh), u)
    return u[..., :L // 2]


# --------------------------------------------------------------------------
# the single fused Pallas kernel (whole SCINet_Tree, current_level = 1)
# --------------------------------------------------------------------------

def tree_kernel(x_ref, rw1_ref, rb1_ref, rw2_ref, rb2_ref,
                lw1_ref, lb1_ref, lw2_ref, lb2_ref, out_ref):
    x = x_ref[...]                       # (B, 2C, T/2): rows = [x_even ch ; x_odd ch]
    B = x.shape[0]

    def matmul(w, g):
        """Batched (over B) MXU matmul: (Rout, CK) x (B, CK, T) -> (B, Rout, T)."""
        wb = jnp.broadcast_to(w[None], (B,) + w.shape)
        return lax.dot_general(wb, g, (((2,), (1,)), ((0,), (0,))),
                               precision=lax.Precision.HIGHEST,
                               preferred_element_type=jnp.float32)

    def conv_branch_stack(xin, w1, b1, w2, b2):
        """ReplicationPad1d(3) -> Conv1d(k=5) -> LeakyReLU -> Dropout(id)
           -> Conv1d(k=3) -> Tanh for a whole stack of branches folded into the
           sublane (row) axis; each conv is one im2col + one MXU matmul."""
        R, L = xin.shape[1], xin.shape[2]
        left = jnp.broadcast_to(xin[:, :, :1], (B, R, PAD))
        right = jnp.broadcast_to(xin[:, :, L - 1:], (B, R, PAD))
        xp = jnp.concatenate([left, xin, right], axis=-1)            # (B, R, L+6)
        t1 = L + 2 * PAD - KERNEL1 + 1                                # = L + 2
        g1 = jnp.concatenate([xp[:, :, k:k + t1] for k in range(KERNEL1)], axis=1)
        y = matmul(w1, g1) + b1[None]                                 # (B, R, L+2)
        y = jnp.where(y >= 0.0, y, LEAKY_SLOPE * y)                   # LeakyReLU
        # TODO(synk): Dropout(p=0.5) treated as identity (inference / eval mode).
        t2 = t1 - KERNEL2 + 1                                         # = L
        g2 = jnp.concatenate([y[:, :, k:k + t2] for k in range(KERNEL2)], axis=1)
        y = matmul(w2, g2) + b2[None]                                 # (B, R, L)
        return jnp.tanh(y)

    def swap_halves(v):
        h = v.shape[1] // 2
        return jnp.concatenate([v[:, h:, :], v[:, :h, :]], axis=1)

    def interactor(xin, w1, b1, w2, b2, u1, c1, u2, c2):
        """Lifting-scheme Interactor for a stack of nodes.
        xin rows = [even-inputs ; odd-inputs]; returns rows [even-upd ; odd-upd]."""
        half = xin.shape[1] // 2
        g = conv_branch_stack(xin, w1, b1, w2, b2)     # [phi(x_even) ; psi(x_odd)]
        p = swap_halves(xin) * jnp.exp(g)              # [d = x_odd*e^phi ; c = x_even*e^psi]
        h = conv_branch_stack(p, u1, c1, u2, c2)       # [U(d) ; P(c)]
        base = swap_halves(p)                          # [c ; d]
        top = lax.broadcasted_iota(jnp.int32, h.shape, 1) < half
        return jnp.where(top, base + h, base - h)      # [c + U(d) ; d - P(c)]

    # ---- root Interactor (node 0); the even/odd split is baked into the input layout
    st = interactor(x, rw1_ref[0], rb1_ref[0], rw2_ref[0], rb2_ref[0],
                    rw1_ref[1], rb1_ref[1], rw2_ref[1], rb2_ref[1])   # [e_up ; o_up]

    # ---- leaf split: only level that still needs an in-kernel de-interleave
    ev = _compact_even(st)                          # rows [ee ; oe]   (B, 2C, T/4)
    od = _compact_even(_roll_lanes_left(st, 1))     # rows [eo ; oo]
    leaf_in = jnp.concatenate([ev, od], axis=1)     # (B, 4C, T/4)

    # ---- BOTH leaf Interactors (nodes 1, 2) as one stacked pass pair
    out = interactor(leaf_in, lw1_ref[0], lb1_ref[0], lw2_ref[0], lb2_ref[0],
                     lw1_ref[1], lb1_ref[1], lw2_ref[1], lb2_ref[1])
    # rows: [n1 even_upd ; n2 even_upd ; n1 odd_upd ; n2 odd_upd]
    out_ref[...] = out


# --------------------------------------------------------------------------
# one-time weight packing: block-diagonal im2col weights + bias columns
# --------------------------------------------------------------------------

def _pack_conv(branches, w, b):
    """w: (nodes, 4, Cout, Cin, K), b: (nodes, 4, Cout) ->
       W: (S*Cout, K*S*Cin) block-diag over the stacked branches, bias (S*Cout, 1)."""
    w = np.asarray(w, np.float32)
    b = np.asarray(b, np.float32)
    S = len(branches)
    Cout, Cin, K = w.shape[2], w.shape[3], w.shape[4]
    W = np.zeros((S * Cout, K * S * Cin), np.float32)
    bias = np.zeros((S * Cout, 1), np.float32)
    for s, (nd, br) in enumerate(branches):
        bias[s * Cout:(s + 1) * Cout, 0] = b[nd, br]
        for k in range(K):
            col = k * S * Cin + s * Cin
            W[s * Cout:(s + 1) * Cout, col:col + Cin] = w[nd, br, :, :, k]
    return W, bias


def pack_params(w1, b1, w2, b2):
    """Pack the natural per-node weights into the kernel's per-level, per-pass
    matmul-ready form (done ONCE at init, not per forward call)."""
    def level(passes):
        p1, p2 = passes
        W1a, B1a = _pack_conv(p1, w1, b1)
        W2a, B2a = _pack_conv(p1, w2, b2)
        W1b, B1b = _pack_conv(p2, w1, b1)
        W2b, B2b = _pack_conv(p2, w2, b2)
        return (np.stack([W1a, W1b]), np.stack([B1a, B1b]),
                np.stack([W2a, W2b]), np.stack([B2a, B2b]))
    rw1, rb1, rw2, rb2 = level(_ROOT_PASSES)
    lw1, lb1, lw2, lb2 = level(_LEAF_PASSES)
    return tuple(jnp.asarray(a) for a in (rw1, rb1, rw2, rb2, lw1, lb1, lw2, lb2))


# --------------------------------------------------------------------------
# wrapper: one flat gather in, one flat gather out, one pallas_call
# --------------------------------------------------------------------------

def _input_perm(B, T, C):
    """(B,T,C) flat -> (B, 2C, T/2) flat: root even/odd split + channel-major."""
    half = T // 2
    perm = np.empty((B, 2, C, half), np.int32)
    for b in range(B):
        for br in range(2):
            for c in range(C):
                for j in range(half):
                    perm[b, br, c, j] = (b * T + 2 * j + br) * C + c
    return perm.reshape(-1)


def _output_perm(B, T, C):
    """kernel (B, 4C, T/4) flat -> (B,T,C) flat (zip_up_the_pants + transpose)."""
    q = T // 4
    perm = np.empty((B, T, C), np.int32)
    for b in range(B):
        for t in range(T):
            for c in range(C):
                perm[b, t, c] = (b * 4 * C + (t % 4) * C + c) * q + t // 4
    return perm.reshape(-1)


def encoder_tree_forward(x, packed):
    """EncoderTree(num_levels=2) forward; x: (B, T, C) float32 -> (B, T, C)."""
    rw1, rb1, rw2, rb2, lw1, lb1, lw2, lb2 = packed
    B, T, C = x.shape
    assert C == IN_PLANES and T % 4 == 0, "all even/odd splits must be even-length"
    # TODO(synk): odd-length splits (zip tail) not exercised at these shapes.
    xin = jnp.take(x.reshape(-1), jnp.asarray(_input_perm(B, T, C))
                   ).reshape(B, 2 * C, T // 2)
    vmem = pl.BlockSpec(memory_space=pltpu.MemorySpace.VMEM)
    grouped = pl.pallas_call(
        tree_kernel,
        out_shape=jax.ShapeDtypeStruct((B, 4 * C, T // 4), jnp.float32),
        in_specs=[vmem] * 9,
        out_specs=vmem,
    )(xin, rw1, rb1, rw2, rb2, lw1, lb1, lw2, lb2)
    return jnp.take(grouped.reshape(-1), jnp.asarray(_output_perm(B, T, C))
                    ).reshape(B, T, C)


# --------------------------------------------------------------------------
# deterministic parameter init (natural layout, used directly by the reference)
# --------------------------------------------------------------------------

def init_params(key):
    C, H = IN_PLANES, IN_PLANES * HIDDEN_SIZE
    n_nodes = 2 ** (LEVEL + 1) - 1
    k1, k2, k3, k4 = jax.random.split(key, 4)
    w1 = jax.random.normal(k1, (n_nodes, 4, H, C, KERNEL1), jnp.float32) * 0.1
    b1 = jax.random.normal(k2, (n_nodes, 4, H), jnp.float32) * 0.1
    w2 = jax.random.normal(k3, (n_nodes, 4, C, H, KERNEL2), jnp.float32) * 0.1
    b2 = jax.random.normal(k4, (n_nodes, 4, C), jnp.float32) * 0.1
    return w1, b1, w2, b2


# --------------------------------------------------------------------------
# plain-XLA reference (independent path, used only for the self-check)
# --------------------------------------------------------------------------

def _ref_branch(x, w1, b1, w2, b2):
    xp = jnp.concatenate([jnp.repeat(x[:, :, :1], PAD, axis=-1), x,
                          jnp.repeat(x[:, :, -1:], PAD, axis=-1)], axis=-1)
    dn = ('NCH', 'OIH', 'NCH')
    y = lax.conv_general_dilated(xp, w1, (1,), 'VALID', dimension_numbers=dn,
                                 precision=lax.Precision.HIGHEST)
    y = y + b1[None, :, None]
    y = jnp.where(y >= 0, y, LEAKY_SLOPE * y)
    y = lax.conv_general_dilated(y, w2, (1,), 'VALID', dimension_numbers=dn,
                                 precision=lax.Precision.HIGHEST)
    y = y + b2[None, :, None]
    return jnp.tanh(y)


def _ref_interactor(x, node):
    w1, b1, w2, b2 = node
    xe = jnp.transpose(x[:, 0::2, :], (0, 2, 1))
    xo = jnp.transpose(x[:, 1::2, :], (0, 2, 1))
    d = xo * jnp.exp(_ref_branch(xe, w1[0], b1[0], w2[0], b2[0]))
    c = xe * jnp.exp(_ref_branch(xo, w1[1], b1[1], w2[1], b2[1]))
    e_up = c + _ref_branch(d, w1[2], b1[2], w2[2], b2[2])
    o_up = d - _ref_branch(c, w1[3], b1[3], w2[3], b2[3])
    return jnp.transpose(e_up, (0, 2, 1)), jnp.transpose(o_up, (0, 2, 1))


def _ref_zip(even, odd):
    B, n_even, C = even.shape
    n_odd = odd.shape[1]
    m = min(n_even, n_odd)
    out = jnp.stack([even[:, :m, :], odd[:, :m, :]], axis=2).reshape(B, 2 * m, C)
    if n_odd < n_even:
        out = jnp.concatenate([out, even[:, -1:, :]], axis=1)
    return out


def _ref_tree(x, level, params, node_idx=0):
    w1, b1, w2, b2 = params
    node = (w1[node_idx], b1[node_idx], w2[node_idx], b2[node_idx])
    e, o = _ref_interactor(x, node)
    if level == 0:
        return _ref_zip(e, o)
    return _ref_zip(_ref_tree(e, level - 1, params, node_idx=2 * node_idx + 1),
                    _ref_tree(o, level - 1, params, node_idx=2 * node_idx + 2))


# --------------------------------------------------------------------------

if __name__ == "__main__":
    key = jax.random.PRNGKey(0)
    kx, kp = jax.random.split(key)

    B, T, C = 2, 16, IN_PLANES
    x = jax.random.normal(kx, (B, T, C), jnp.float32)     # PyTorch (B, T, C)
    w1, b1, w2, b2 = init_params(kp)
    packed = pack_params(w1, b1, w2, b2)                  # one-time packing

    fwd = jax.jit(encoder_tree_forward)
    out = jax.block_until_ready(fwd(x, packed))
    assert out.shape == (B, T, C), out.shape
    assert bool(jnp.all(jnp.isfinite(out)))

    # cross-check the fused Pallas kernel against the plain-XLA reference
    ref = jax.block_until_ready(_ref_tree(x, LEVEL, (w1, b1, w2, b2)))
    assert bool(jnp.allclose(out, ref, atol=1e-4, rtol=1e-4)), (
        float(jnp.max(jnp.abs(out - ref))))

    print("KERNEL_OK")
</pallas_src>

<mosaic_0001>
module attributes {stable_mosaic.version = 11 : i64} {
  func.func @tree_kernel(%arg0: memref<2x8x8xf32, #tpu.memory_space<vmem>>, %arg1: memref<2x8x40xf32, #tpu.memory_space<vmem>>, %arg2: memref<2x8x1xf32, #tpu.memory_space<vmem>>, %arg3: memref<2x8x24xf32, #tpu.memory_space<vmem>>, %arg4: memref<2x8x1xf32, #tpu.memory_space<vmem>>, %arg5: memref<2x16x80xf32, #tpu.memory_space<vmem>>, %arg6: memref<2x16x1xf32, #tpu.memory_space<vmem>>, %arg7: memref<2x16x48xf32, #tpu.memory_space<vmem>>, %arg8: memref<2x16x1xf32, #tpu.memory_space<vmem>>, %arg9: memref<2x16x4xf32, #tpu.memory_space<vmem>>) attributes {dimension_semantics = [], scalar_prefetch = 0 : i64, scratch_operands = 0 : i64, tpu.core_type = #tpu.core_type<tc>} {
    %c0 = arith.constant 0 : index
    %c0_0 = arith.constant 0 : index
    %c0_1 = arith.constant 0 : index
    %0 = vector.load %arg0[%c0, %c0_0, %c0_1] : memref<2x8x8xf32, #tpu.memory_space<vmem>>, vector<2x8x8xf32>
    %c0_2 = arith.constant 0 : index
    %c0_3 = arith.constant 0 : index
    %c0_4 = arith.constant 0 : index
    %1 = vector.load %arg1[%c0_2, %c0_3, %c0_4] : memref<2x8x40xf32, #tpu.memory_space<vmem>>, vector<1x8x40xf32>
    %2 = vector.shape_cast %1 : vector<1x8x40xf32> to vector<8x40xf32>
    %c0_5 = arith.constant 0 : index
    %c0_6 = arith.constant 0 : index
    %c0_7 = arith.constant 0 : index
    %3 = vector.load %arg2[%c0_5, %c0_6, %c0_7] : memref<2x8x1xf32, #tpu.memory_space<vmem>>, vector<1x8x1xf32>
    %4 = vector.shape_cast %3 : vector<1x8x1xf32> to vector<8x1xf32>
    %c0_8 = arith.constant 0 : index
    %c0_9 = arith.constant 0 : index
    %c0_10 = arith.constant 0 : index
    %5 = vector.load %arg3[%c0_8, %c0_9, %c0_10] : memref<2x8x24xf32, #tpu.memory_space<vmem>>, vector<1x8x24xf32>
    %6 = vector.shape_cast %5 : vector<1x8x24xf32> to vector<8x24xf32>
    %c0_11 = arith.constant 0 : index
    %c0_12 = arith.constant 0 : index
    %c0_13 = arith.constant 0 : index
    %7 = vector.load %arg4[%c0_11, %c0_12, %c0_13] : memref<2x8x1xf32, #tpu.memory_space<vmem>>, vector<1x8x1xf32>
    %8 = vector.shape_cast %7 : vector<1x8x1xf32> to vector<8x1xf32>
    %c1 = arith.constant 1 : index
    %c0_14 = arith.constant 0 : index
    %c0_15 = arith.constant 0 : index
    %9 = vector.load %arg1[%c1, %c0_14, %c0_15] : memref<2x8x40xf32, #tpu.memory_space<vmem>>, vector<1x8x40xf32>
    %10 = vector.shape_cast %9 : vector<1x8x40xf32> to vector<8x40xf32>
    %c1_16 = arith.constant 1 : index
    %c0_17 = arith.constant 0 : index
    %c0_18 = arith.constant 0 : index
    %11 = vector.load %arg2[%c1_16, %c0_17, %c0_18] : memref<2x8x1xf32, #tpu.memory_space<vmem>>, vector<1x8x1xf32>
    %12 = vector.shape_cast %11 : vector<1x8x1xf32> to vector<8x1xf32>
    %c1_19 = arith.constant 1 : index
    %c0_20 = arith.constant 0 : index
    %c0_21 = arith.constant 0 : index
    %13 = vector.load %arg3[%c1_19, %c0_20, %c0_21] : memref<2x8x24xf32, #tpu.memory_space<vmem>>, vector<1x8x24xf32>
    %14 = vector.shape_cast %13 : vector<1x8x24xf32> to vector<8x24xf32>
    %c1_22 = arith.constant 1 : index
    %c0_23 = arith.constant 0 : index
    %c0_24 = arith.constant 0 : index
    %15 = vector.load %arg4[%c1_22, %c0_23, %c0_24] : memref<2x8x1xf32, #tpu.memory_space<vmem>>, vector<1x8x1xf32>
    %16 = vector.shape_cast %15 : vector<1x8x1xf32> to vector<8x1xf32>
    %17 = vector.extract_strided_slice %0 {offsets = [0, 0, 0], sizes = [2, 8, 1], strides = [1, 1, 1]} : vector<2x8x8xf32> to vector<2x8x1xf32>
    %18 = vector.shape_cast %17 : vector<2x8x1xf32> to vector<2x8x1xf32>
    %19 = vector.broadcast %18 : vector<2x8x1xf32> to vector<2x8x3xf32>
    %20 = vector.extract_strided_slice %0 {offsets = [0, 0, 7], sizes = [2, 8, 1], strides = [1, 1, 1]} : vector<2x8x8xf32> to vector<2x8x1xf32>
    %21 = vector.shape_cast %20 : vector<2x8x1xf32> to vector<2x8x1xf32>
    %22 = vector.broadcast %21 : vector<2x8x1xf32> to vector<2x8x3xf32>
    %23 = tpu.concatenate %19, %0, %22 in 2 : vector<2x8x3xf32>, vector<2x8x8xf32>, vector<2x8x3xf32> -> vector<2x8x14xf32>
    %24 = vector.extract_strided_slice %23 {offsets = [0, 0, 0], sizes = [2, 8, 10], strides = [1, 1, 1]} : vector<2x8x14xf32> to vector<2x8x10xf32>
    %25 = vector.extract_strided_slice %23 {offsets = [0, 0, 1], sizes = [2, 8, 10], strides = [1, 1, 1]} : vector<2x8x14xf32> to vector<2x8x10xf32>
    %26 = vector.extract_strided_slice %23 {offsets = [0, 0, 2], sizes = [2, 8, 10], strides = [1, 1, 1]} : vector<2x8x14xf32> to vector<2x8x10xf32>
    %27 = vector.extract_strided_slice %23 {offsets = [0, 0, 3], sizes = [2, 8, 10], strides = [1, 1, 1]} : vector<2x8x14xf32> to vector<2x8x10xf32>
    %28 = vector.extract_strided_slice %23 {offsets = [0, 0, 4], sizes = [2, 8, 10], strides = [1, 1, 1]} : vector<2x8x14xf32> to vector<2x8x10xf32>
    %29 = tpu.concatenate %24, %25, %26, %27, %28 in 1 : vector<2x8x10xf32>, vector<2x8x10xf32>, vector<2x8x10xf32>, vector<2x8x10xf32>, vector<2x8x10xf32> -> vector<2x40x10xf32>
    %30 = vector.shape_cast %2 : vector<8x40xf32> to vector<1x8x40xf32>
    %31 = vector.shape_cast %30 : vector<1x8x40xf32> to vector<1x8x40xf32>
    %32 = vector.broadcast %31 : vector<1x8x40xf32> to vector<2x8x40xf32>
    %cst = arith.constant dense<0.000000e+00> : vector<2x8x10xf32>
    %33 = tpu.matmul %32, %29, %cst {dimension_numbers = #tpu.dot_dimension_numbers<[2], [1], [1], [2], [0, 0, 0, 1, 1, 2], [0], [0]>, precision = #tpu.contract_precision<fp32>} : vector<2x8x40xf32>, vector<2x40x10xf32>, vector<2x8x10xf32> -> vector<2x8x10xf32>
    %34 = vector.shape_cast %4 : vector<8x1xf32> to vector<1x8x1xf32>
    %35 = vector.broadcast %34 : vector<1x8x1xf32> to vector<2x8x10xf32>
    %36 = arith.addf %33, %35 : vector<2x8x10xf32>
    %cst_25 = arith.constant 0.000000e+00 : f32
    %37 = vector.broadcast %cst_25 : f32 to vector<2x8x10xf32>
    %38 = arith.cmpf oge, %36, %37 : vector<2x8x10xf32>
    %cst_26 = arith.constant 0.00999999977 : f32
    %39 = vector.broadcast %cst_26 : f32 to vector<2x8x10xf32>
    %40 = arith.mulf %39, %36 : vector<2x8x10xf32>
    %41 = arith.select %38, %36, %40 : vector<2x8x10xi1>, vector<2x8x10xf32>
    %42 = vector.extract_strided_slice %41 {offsets = [0, 0, 0], sizes = [2, 8, 8], strides = [1, 1, 1]} : vector<2x8x10xf32> to vector<2x8x8xf32>
    %43 = vector.extract_strided_slice %41 {offsets = [0, 0, 1], sizes = [2, 8, 8], strides = [1, 1, 1]} : vector<2x8x10xf32> to vector<2x8x8xf32>
    %44 = vector.extract_strided_slice %41 {offsets = [0, 0, 2], sizes = [2, 8, 8], strides = [1, 1, 1]} : vector<2x8x10xf32> to vector<2x8x8xf32>
    %45 = tpu.concatenate %42, %43, %44 in 1 : vector<2x8x8xf32>, vector<2x8x8xf32>, vector<2x8x8xf32> -> vector<2x24x8xf32>
    %46 = vector.shape_cast %6 : vector<8x24xf32> to vector<1x8x24xf32>
    %47 = vector.shape_cast %46 : vector<1x8x24xf32> to vector<1x8x24xf32>
    %48 = vector.broadcast %47 : vector<1x8x24xf32> to vector<2x8x24xf32>
    %cst_27 = arith.constant dense<0.000000e+00> : vector<2x8x8xf32>
    %49 = tpu.matmul %48, %45, %cst_27 {dimension_numbers = #tpu.dot_dimension_numbers<[2], [1], [1], [2], [0, 0, 0, 1, 1, 2], [0], [0]>, precision = #tpu.contract_precision<fp32>} : vector<2x8x24xf32>, vector<2x24x8xf32>, vector<2x8x8xf32> -> vector<2x8x8xf32>
    %50 = vector.shape_cast %8 : vector<8x1xf32> to vector<1x8x1xf32>
    %51 = vector.broadcast %50 : vector<1x8x1xf32> to vector<2x8x8xf32>
    %52 = arith.addf %49, %51 : vector<2x8x8xf32>
    %53 = math.tanh %52 : vector<2x8x8xf32>
    %54 = vector.extract_strided_slice %0 {offsets = [0, 4, 0], sizes = [2, 4, 8], strides = [1, 1, 1]} : vector<2x8x8xf32> to vector<2x4x8xf32>
    %55 = vector.extract_strided_slice %0 {offsets = [0, 0, 0], sizes = [2, 4, 8], strides = [1, 1, 1]} : vector<2x8x8xf32> to vector<2x4x8xf32>
    %56 = tpu.concatenate %54, %55 in 1 : vector<2x4x8xf32>, vector<2x4x8xf32> -> vector<2x8x8xf32>
    %57 = math.exp %53 : vector<2x8x8xf32>
    %58 = arith.mulf %56, %57 : vector<2x8x8xf32>
    %59 = vector.extract_strided_slice %58 {offsets = [0, 0, 0], sizes = [2, 8, 1], strides = [1, 1, 1]} : vector<2x8x8xf32> to vector<2x8x1xf32>
    %60 = vector.shape_cast %59 : vector<2x8x1xf32> to vector<2x8x1xf32>
    %61 = vector.broadcast %60 : vector<2x8x1xf32> to vector<2x8x3xf32>
    %62 = vector.extract_strided_slice %58 {offsets = [0, 0, 7], sizes = [2, 8, 1], strides = [1, 1, 1]} : vector<2x8x8xf32> to vector<2x8x1xf32>
    %63 = vector.shape_cast %62 : vector<2x8x1xf32> to vector<2x8x1xf32>
    %64 = vector.broadcast %63 : vector<2x8x1xf32> to vector<2x8x3xf32>
    %65 = tpu.concatenate %61, %58, %64 in 2 : vector<2x8x3xf32>, vector<2x8x8xf32>, vector<2x8x3xf32> -> vector<2x8x14xf32>
    %66 = vector.extract_strided_slice %65 {offsets = [0, 0, 0], sizes = [2, 8, 10], strides = [1, 1, 1]} : vector<2x8x14xf32> to vector<2x8x10xf32>
    %67 = vector.extract_strided_slice %65 {offsets = [0, 0, 1], sizes = [2, 8, 10], strides = [1, 1, 1]} : vector<2x8x14xf32> to vector<2x8x10xf32>
    %68 = vector.extract_strided_slice %65 {offsets = [0, 0, 2], sizes = [2, 8, 10], strides = [1, 1, 1]} : vector<2x8x14xf32> to vector<2x8x10xf32>
    %69 = vector.extract_strided_slice %65 {offsets = [0, 0, 3], sizes = [2, 8, 10], strides = [1, 1, 1]} : vector<2x8x14xf32> to vector<2x8x10xf32>
    %70 = vector.extract_strided_slice %65 {offsets = [0, 0, 4], sizes = [2, 8, 10], strides = [1, 1, 1]} : vector<2x8x14xf32> to vector<2x8x10xf32>
    %71 = tpu.concatenate %66, %67, %68, %69, %70 in 1 : vector<2x8x10xf32>, vector<2x8x10xf32>, vector<2x8x10xf32>, vector<2x8x10xf32>, vector<2x8x10xf32> -> vector<2x40x10xf32>
    %72 = vector.shape_cast %10 : vector<8x40xf32> to vector<1x8x40xf32>
    %73 = vector.shape_cast %72 : vector<1x8x40xf32> to vector<1x8x40xf32>
    %74 = vector.broadcast %73 : vector<1x8x40xf32> to vector<2x8x40xf32>
    %cst_28 = arith.constant dense<0.000000e+00> : vector<2x8x10xf32>
    %75 = tpu.matmul %74, %71, %cst_28 {dimension_numbers = #tpu.dot_dimension_numbers<[2], [1], [1], [2], [0, 0, 0, 1, 1, 2], [0], [0]>, precision = #tpu.contract_precision<fp32>} : vector<2x8x40xf32>, vector<2x40x10xf32>, vector<2x8x10xf32> -> vector<2x8x10xf32>
    %76 = vector.shape_cast %12 : vector<8x1xf32> to vector<1x8x1xf32>
    %77 = vector.broadcast %76 : vector<1x8x1xf32> to vector<2x8x10xf32>
    %78 = arith.addf %75, %77 : vector<2x8x10xf32>
    %cst_29 = arith.constant 0.000000e+00 : f32
    %79 = vector.broadcast %cst_29 : f32 to vector<2x8x10xf32>
    %80 = arith.cmpf oge, %78, %79 : vector<2x8x10xf32>
    %cst_30 = arith.constant 0.00999999977 : f32
    %81 = vector.broadcast %cst_30 : f32 to vector<2x8x10xf32>
    %82 = arith.mulf %81, %78 : vector<2x8x10xf32>
    %83 = arith.select %80, %78, %82 : vector<2x8x10xi1>, vector<2x8x10xf32>
    %84 = vector.extract_strided_slice %83 {offsets = [0, 0, 0], sizes = [2, 8, 8], strides = [1, 1, 1]} : vector<2x8x10xf32> to vector<2x8x8xf32>
    %85 = vector.extract_strided_slice %83 {offsets = [0, 0, 1], sizes = [2, 8, 8], strides = [1, 1, 1]} : vector<2x8x10xf32> to vector<2x8x8xf32>
    %86 = vector.extract_strided_slice %83 {offsets = [0, 0, 2], sizes = [2, 8, 8], strides = [1, 1, 1]} : vector<2x8x10xf32> to vector<2x8x8xf32>
    %87 = tpu.concatenate %84, %85, %86 in 1 : vector<2x8x8xf32>, vector<2x8x8xf32>, vector<2x8x8xf32> -> vector<2x24x8xf32>
    %88 = vector.shape_cast %14 : vector<8x24xf32> to vector<1x8x24xf32>
    %89 = vector.shape_cast %88 : vector<1x8x24xf32> to vector<1x8x24xf32>
    %90 = vector.broadcast %89 : vector<1x8x24xf32> to vector<2x8x24xf32>
    %cst_31 = arith.constant dense<0.000000e+00> : vector<2x8x8xf32>
    %91 = tpu.matmul %90, %87, %cst_31 {dimension_numbers = #tpu.dot_dimension_numbers<[2], [1], [1], [2], [0, 0, 0, 1, 1, 2], [0], [0]>, precision = #tpu.contract_precision<fp32>} : vector<2x8x24xf32>, vector<2x24x8xf32>, vector<2x8x8xf32> -> vector<2x8x8xf32>
    %92 = vector.shape_cast %16 : vector<8x1xf32> to vector<1x8x1xf32>
    %93 = vector.broadcast %92 : vector<1x8x1xf32> to vector<2x8x8xf32>
    %94 = arith.addf %91, %93 : vector<2x8x8xf32>
    %95 = math.tanh %94 : vector<2x8x8xf32>
    %96 = vector.extract_strided_slice %58 {offsets = [0, 4, 0], sizes = [2, 4, 8], strides = [1, 1, 1]} : vector<2x8x8xf32> to vector<2x4x8xf32>
    %97 = vector.extract_strided_slice %58 {offsets = [0, 0, 0], sizes = [2, 4, 8], strides = [1, 1, 1]} : vector<2x8x8xf32> to vector<2x4x8xf32>
    %98 = tpu.concatenate %96, %97 in 1 : vector<2x4x8xf32>, vector<2x4x8xf32> -> vector<2x8x8xf32>
    %99 = tpu.iota {dimensions = array<i32: 1>} : vector<2x8x8xi32>
    %c4_i32 = arith.constant 4 : i32
    %100 = vector.broadcast %c4_i32 : i32 to vector<2x8x8xi32>
    %101 = arith.cmpi slt, %99, %100 : vector<2x8x8xi32>
    %102 = arith.addf %98, %95 : vector<2x8x8xf32>
    %103 = arith.subf %98, %95 : vector<2x8x8xf32>
    %104 = arith.select %101, %102, %103 : vector<2x8x8xi1>, vector<2x8x8xf32>
    %105 = tpu.iota {dimensions = array<i32: 2>} : vector<2x8x8xi32>
    %c1_i32 = arith.constant 1 : i32
    %106 = vector.broadcast %c1_i32 : i32 to vector<2x8x8xi32>
    %107 = arith.andi %105, %106 : vector<2x8x8xi32>
    %c0_i32 = arith.constant 0 : i32
    %108 = vector.broadcast %c0_i32 : i32 to vector<2x8x8xi32>
    %109 = arith.cmpi ne, %107, %108 : vector<2x8x8xi32>
    %110 = vector.extract_strided_slice %104 {offsets = [0, 0, 1], sizes = [2, 8, 7], strides = [1, 1, 1]} : vector<2x8x8xf32> to vector<2x8x7xf32>
    %111 = vector.extract_strided_slice %104 {offsets = [0, 0, 0], sizes = [2, 8, 1], strides = [1, 1, 1]} : vector<2x8x8xf32> to vector<2x8x1xf32>
    %112 = tpu.concatenate %110, %111 in 2 : vector<2x8x7xf32>, vector<2x8x1xf32> -> vector<2x8x8xf32>
    %113 = arith.select %109, %112, %104 : vector<2x8x8xi1>, vector<2x8x8xf32>
    %c2_i32 = arith.constant 2 : i32
    %114 = vector.broadcast %c2_i32 : i32 to vector<2x8x8xi32>
    %115 = arith.andi %105, %114 : vector<2x8x8xi32>
    %c0_i32_32 = arith.constant 0 : i32
    %116 = vector.broadcast %c0_i32_32 : i32 to vector<2x8x8xi32>
    %117 = arith.cmpi ne, %115, %116 : vector<2x8x8xi32>
    %118 = vector.extract_strided_slice %113 {offsets = [0, 0, 2], sizes = [2, 8, 6], strides = [1, 1, 1]} : vector<2x8x8xf32> to vector<2x8x6xf32>
    %119 = vector.extract_strided_slice %113 {offsets = [0, 0, 0], sizes = [2, 8, 2], strides = [1, 1, 1]} : vector<2x8x8xf32> to vector<2x8x2xf32>
    %120 = tpu.concatenate %118, %119 in 2 : vector<2x8x6xf32>, vector<2x8x2xf32> -> vector<2x8x8xf32>
    %121 = arith.select %117, %120, %113 : vector<2x8x8xi1>, vector<2x8x8xf32>
    %122 = vector.extract_strided_slice %121 {offsets = [0, 0, 0], sizes = [2, 8, 4], strides = [1, 1, 1]} : vector<2x8x8xf32> to vector<2x8x4xf32>
    %123 = vector.extract_strided_slice %104 {offsets = [0, 0, 1], sizes = [2, 8, 7], strides = [1, 1, 1]} : vector<2x8x8xf32> to vector<2x8x7xf32>
    %124 = vector.extract_strided_slice %104 {offsets = [0, 0, 0], sizes = [2, 8, 1], strides = [1, 1, 1]} : vector<2x8x8xf32> to vector<2x8x1xf32>
    %125 = tpu.concatenate %123, %124 in 2 : vector<2x8x7xf32>, vector<2x8x1xf32> -> vector<2x8x8xf32>
    %126 = tpu.iota {dimensions = array<i32: 2>} : vector<2x8x8xi32>
    %c1_i32_33 = arith.constant 1 : i32
    %127 = vector.broadcast %c1_i32_33 : i32 to vector<2x8x8xi32>
    %128 = arith.andi %126, %127 : vector<2x8x8xi32>
    %c0_i32_34 = arith.constant 0 : i32
    %129 = vector.broadcast %c0_i32_34 : i32 to vector<2x8x8xi32>
    %130 = arith.cmpi ne, %128, %129 : vector<2x8x8xi32>
    %131 = vector.extract_strided_slice %125 {offsets = [0, 0, 1], sizes = [2, 8, 7], strides = [1, 1, 1]} : vector<2x8x8xf32> to vector<2x8x7xf32>
    %132 = vector.extract_strided_slice %125 {offsets = [0, 0, 0], sizes = [2, 8, 1], strides = [1, 1, 1]} : vector<2x8x8xf32> to vector<2x8x1xf32>
    %133 = tpu.concatenate %131, %132 in 2 : vector<2x8x7xf32>, vector<2x8x1xf32> -> vector<2x8x8xf32>
    %134 = arith.select %130, %133, %125 : vector<2x8x8xi1>, vector<2x8x8xf32>
    %c2_i32_35 = arith.constant 2 : i32
    %135 = vector.broadcast %c2_i32_35 : i32 to vector<2x8x8xi32>
    %136 = arith.andi %126, %135 : vector<2x8x8xi32>
    %c0_i32_36 = arith.constant 0 : i32
    %137 = vector.broadcast %c0_i32_36 : i32 to vector<2x8x8xi32>
    %138 = arith.cmpi ne, %136, %137 : vector<2x8x8xi32>
    %139 = vector.extract_strided_slice %134 {offsets = [0, 0, 2], sizes = [2, 8, 6], strides = [1, 1, 1]} : vector<2x8x8xf32> to vector<2x8x6xf32>
    %140 = vector.extract_strided_slice %134 {offsets = [0, 0, 0], sizes = [2, 8, 2], strides = [1, 1, 1]} : vector<2x8x8xf32> to vector<2x8x2xf32>
    %141 = tpu.concatenate %139, %140 in 2 : vector<2x8x6xf32>, vector<2x8x2xf32> -> vector<2x8x8xf32>
    %142 = arith.select %138, %141, %134 : vector<2x8x8xi1>, vector<2x8x8xf32>
    %143 = vector.extract_strided_slice %142 {offsets = [0, 0, 0], sizes = [2, 8, 4], strides = [1, 1, 1]} : vector<2x8x8xf32> to vector<2x8x4xf32>
    %144 = tpu.concatenate %122, %143 in 1 : vector<2x8x4xf32>, vector<2x8x4xf32> -> vector<2x16x4xf32>
    %c0_37 = arith.constant 0 : index
    %c0_38 = arith.constant 0 : index
    %c0_39 = arith.constant 0 : index
    %145 = vector.load %arg5[%c0_37, %c0_38, %c0_39] : memref<2x16x80xf32, #tpu.memory_space<vmem>>, vector<1x16x80xf32>
    %146 = vector.shape_cast %145 : vector<1x16x80xf32> to vector<16x80xf32>
    %c0_40 = arith.constant 0 : index
    %c0_41 = arith.constant 0 : index
    %c0_42 = arith.constant 0 : index
    %147 = vector.load %arg6[%c0_40, %c0_41, %c0_42] : memref<2x16x1xf32, #tpu.memory_space<vmem>>, vector<1x16x1xf32>
    %148 = vector.shape_cast %147 : vector<1x16x1xf32> to vector<16x1xf32>
    %c0_43 = arith.constant 0 : index
    %c0_44 = arith.constant 0 : index
    %c0_45 = arith.constant 0 : index
    %149 = vector.load %arg7[%c0_43, %c0_44, %c0_45] : memref<2x16x48xf32, #tpu.memory_space<vmem>>, vector<1x16x48xf32>
    %150 = vector.shape_cast %149 : vector<1x16x48xf32> to vector<16x48xf32>
    %c0_46 = arith.constant 0 : index
    %c0_47 = arith.constant 0 : index
    %c0_48 = arith.constant 0 : index
    %151 = vector.load %arg8[%c0_46, %c0_47, %c0_48] : memref<2x16x1xf32, #tpu.memory_space<vmem>>, vector<1x16x1xf32>
    %152 = vector.shape_cast %151 : vector<1x16x1xf32> to vector<16x1xf32>
    %c1_49 = arith.constant 1 : index
    %c0_50 = arith.constant 0 : index
    %c0_51 = arith.constant 0 : index
    %153 = vector.load %arg5[%c1_49, %c0_50, %c0_51] : memref<2x16x80xf32, #tpu.memory_space<vmem>>, vector<1x16x80xf32>
    %154 = vector.shape_cast %153 : vector<1x16x80xf32> to vector<16x80xf32>
    %c1_52 = arith.constant 1 : index
    %c0_53 = arith.constant 0 : index
    %c0_54 = arith.constant 0 : index
    %155 = vector.load %arg6[%c1_52, %c0_53, %c0_54] : memref<2x16x1xf32, #tpu.memory_space<vmem>>, vector<1x16x1xf32>
    %156 = vector.shape_cast %155 : vector<1x16x1xf32> to vector<16x1xf32>
    %c1_55 = arith.constant 1 : index
    %c0_56 = arith.constant 0 : index
    %c0_57 = arith.constant 0 : index
    %157 = vector.load %arg7[%c1_55, %c0_56, %c0_57] : memref<2x16x48xf32, #tpu.memory_space<vmem>>, vector<1x16x48xf32>
    %158 = vector.shape_cast %157 : vector<1x16x48xf32> to vector<16x48xf32>
    %c1_58 = arith.constant 1 : index
    %c0_59 = arith.constant 0 : index
    %c0_60 = arith.constant 0 : index
    %159 = vector.load %arg8[%c1_58, %c0_59, %c0_60] : memref<2x16x1xf32, #tpu.memory_space<vmem>>, vector<1x16x1xf32>
    %160 = vector.shape_cast %159 : vector<1x16x1xf32> to vector<16x1xf32>
    %161 = vector.extract_strided_slice %144 {offsets = [0, 0, 0], sizes = [2, 16, 1], strides = [1, 1, 1]} : vector<2x16x4xf32> to vector<2x16x1xf32>
    %162 = vector.shape_cast %161 : vector<2x16x1xf32> to vector<2x16x1xf32>
    %163 = vector.broadcast %162 : vector<2x16x1xf32> to vector<2x16x3xf32>
    %164 = vector.extract_strided_slice %144 {offsets = [0, 0, 3], sizes = [2, 16, 1], strides = [1, 1, 1]} : vector<2x16x4xf32> to vector<2x16x1xf32>
    %165 = vector.shape_cast %164 : vector<2x16x1xf32> to vector<2x16x1xf32>
    %166 = vector.broadcast %165 : vector<2x16x1xf32> to vector<2x16x3xf32>
    %167 = tpu.concatenate %163, %144, %166 in 2 : vector<2x16x3xf32>, vector<2x16x4xf32>, vector<2x16x3xf32> -> vector<2x16x10xf32>
    %168 = vector.extract_strided_slice %167 {offsets = [0, 0, 0], sizes = [2, 16, 6], strides = [1, 1, 1]} : vector<2x16x10xf32> to vector<2x16x6xf32>
    %169 = vector.extract_strided_slice %167 {offsets = [0, 0, 1], sizes = [2, 16, 6], strides = [1, 1, 1]} : vector<2x16x10xf32> to vector<2x16x6xf32>
    %170 = vector.extract_strided_slice %167 {offsets = [0, 0, 2], sizes = [2, 16, 6], strides = [1, 1, 1]} : vector<2x16x10xf32> to vector<2x16x6xf32>
    %171 = vector.extract_strided_slice %167 {offsets = [0, 0, 3], sizes = [2, 16, 6], strides = [1, 1, 1]} : vector<2x16x10xf32> to vector<2x16x6xf32>
    %172 = vector.extract_strided_slice %167 {offsets = [0, 0, 4], sizes = [2, 16, 6], strides = [1, 1, 1]} : vector<2x16x10xf32> to vector<2x16x6xf32>
    %173 = tpu.concatenate %168, %169, %170, %171, %172 in 1 : vector<2x16x6xf32>, vector<2x16x6xf32>, vector<2x16x6xf32>, vector<2x16x6xf32>, vector<2x16x6xf32> -> vector<2x80x6xf32>
    %174 = vector.shape_cast %146 : vector<16x80xf32> to vector<1x16x80xf32>
    %175 = vector.shape_cast %174 : vector<1x16x80xf32> to vector<1x16x80xf32>
    %176 = vector.broadcast %175 : vector<1x16x80xf32> to vector<2x16x80xf32>
    %cst_61 = arith.constant dense<0.000000e+00> : vector<2x16x6xf32>
    %177 = tpu.matmul %176, %173, %cst_61 {dimension_numbers = #tpu.dot_dimension_numbers<[2], [1], [1], [2], [0, 0, 0, 1, 1, 2], [0], [0]>, precision = #tpu.contract_precision<fp32>} : vector<2x16x80xf32>, vector<2x80x6xf32>, vector<2x16x6xf32> -> vector<2x16x6xf32>
    %178 = vector.shape_cast %148 : vector<16x1xf32> to vector<1x16x1xf32>
    %179 = vector.broadcast %178 : vector<1x16x1xf32> to vector<2x16x6xf32>
    %180 = arith.addf %177, %179 : vector<2x16x6xf32>
    %cst_62 = arith.constant 0.000000e+00 : f32
    %181 = vector.broadcast %cst_62 : f32 to vector<2x16x6xf32>
    %182 = arith.cmpf oge, %180, %181 : vector<2x16x6xf32>
    %cst_63 = arith.constant 0.00999999977 : f32
    %183 = vector.broadcast %cst_63 : f32 to vector<2x16x6xf32>
    %184 = arith.mulf %183, %180 : vector<2x16x6xf32>
    %185 = arith.select %182, %180, %184 : vector<2x16x6xi1>, vector<2x16x6xf32>
    %186 = vector.extract_strided_slice %185 {offsets = [0, 0, 0], sizes = [2, 16, 4], strides = [1, 1, 1]} : vector<2x16x6xf32> to vector<2x16x4xf32>
    %187 = vector.extract_strided_slice %185 {offsets = [0, 0, 1], sizes = [2, 16, 4], strides = [1, 1, 1]} : vector<2x16x6xf32> to vector<2x16x4xf32>
    %188 = vector.extract_strided_slice %185 {offsets = [0, 0, 2], sizes = [2, 16, 4], strides = [1, 1, 1]} : vector<2x16x6xf32> to vector<2x16x4xf32>
    %189 = tpu.concatenate %186, %187, %188 in 1 : vector<2x16x4xf32>, vector<2x16x4xf32>, vector<2x16x4xf32> -> vector<2x48x4xf32>
    %190 = vector.shape_cast %150 : vector<16x48xf32> to vector<1x16x48xf32>
    %191 = vector.shape_cast %190 : vector<1x16x48xf32> to vector<1x16x48xf32>
    %192 = vector.broadcast %191 : vector<1x16x48xf32> to vector<2x16x48xf32>
    %cst_64 = arith.constant dense<0.000000e+00> : vector<2x16x4xf32>
    %193 = tpu.matmul %192, %189, %cst_64 {dimension_numbers = #tpu.dot_dimension_numbers<[2], [1], [1], [2], [0, 0, 0, 1, 1, 2], [0], [0]>, precision = #tpu.contract_precision<fp32>} : vector<2x16x48xf32>, vector<2x48x4xf32>, vector<2x16x4xf32> -> vector<2x16x4xf32>
    %194 = vector.shape_cast %152 : vector<16x1xf32> to vector<1x16x1xf32>
    %195 = vector.broadcast %194 : vector<1x16x1xf32> to vector<2x16x4xf32>
    %196 = arith.addf %193, %195 : vector<2x16x4xf32>
    %197 = math.tanh %196 : vector<2x16x4xf32>
    %198 = vector.extract_strided_slice %144 {offsets = [0, 8, 0], sizes = [2, 8, 4], strides = [1, 1, 1]} : vector<2x16x4xf32> to vector<2x8x4xf32>
    %199 = vector.extract_strided_slice %144 {offsets = [0, 0, 0], sizes = [2, 8, 4], strides = [1, 1, 1]} : vector<2x16x4xf32> to vector<2x8x4xf32>
    %200 = tpu.concatenate %198, %199 in 1 : vector<2x8x4xf32>, vector<2x8x4xf32> -> vector<2x16x4xf32>
    %201 = math.exp %197 : vector<2x16x4xf32>
    %202 = arith.mulf %200, %201 : vector<2x16x4xf32>
    %203 = vector.extract_strided_slice %202 {offsets = [0, 0, 0], sizes = [2, 16, 1], strides = [1, 1, 1]} : vector<2x16x4xf32> to vector<2x16x1xf32>
    %204 = vector.shape_cast %203 : vector<2x16x1xf32> to vector<2x16x1xf32>
    %205 = vector.broadcast %204 : vector<2x16x1xf32> to vector<2x16x3xf32>
    %206 = vector.extract_strided_slice %202 {offsets = [0, 0, 3], sizes = [2, 16, 1], strides = [1, 1, 1]} : vector<2x16x4xf32> to vector<2x16x1xf32>
    %207 = vector.shape_cast %206 : vector<2x16x1xf32> to vector<2x16x1xf32>
    %208 = vector.broadcast %207 : vector<2x16x1xf32> to vector<2x16x3xf32>
    %209 = tpu.concatenate %205, %202, %208 in 2 : vector<2x16x3xf32>, vector<2x16x4xf32>, vector<2x16x3xf32> -> vector<2x16x10xf32>
    %210 = vector.extract_strided_slice %209 {offsets = [0, 0, 0], sizes = [2, 16, 6], strides = [1, 1, 1]} : vector<2x16x10xf32> to vector<2x16x6xf32>
    %211 = vector.extract_strided_slice %209 {offsets = [0, 0, 1], sizes = [2, 16, 6], strides = [1, 1, 1]} : vector<2x16x10xf32> to vector<2x16x6xf32>
    %212 = vector.extract_strided_slice %209 {offsets = [0, 0, 2], sizes = [2, 16, 6], strides = [1, 1, 1]} : vector<2x16x10xf32> to vector<2x16x6xf32>
    %213 = vector.extract_strided_slice %209 {offsets = [0, 0, 3], sizes = [2, 16, 6], strides = [1, 1, 1]} : vector<2x16x10xf32> to vector<2x16x6xf32>
    %214 = vector.extract_strided_slice %209 {offsets = [0, 0, 4], sizes = [2, 16, 6], strides = [1, 1, 1]} : vector<2x16x10xf32> to vector<2x16x6xf32>
    %215 = tpu.concatenate %210, %211, %212, %213, %214 in 1 : vector<2x16x6xf32>, vector<2x16x6xf32>, vector<2x16x6xf32>, vector<2x16x6xf32>, vector<2x16x6xf32> -> vector<2x80x6xf32>
    %216 = vector.shape_cast %154 : vector<16x80xf32> to vector<1x16x80xf32>
    %217 = vector.shape_cast %216 : vector<1x16x80xf32> to vector<1x16x80xf32>
    %218 = vector.broadcast %217 : vector<1x16x80xf32> to vector<2x16x80xf32>
    %cst_65 = arith.constant dense<0.000000e+00> : vector<2x16x6xf32>
    %219 = tpu.matmul %218, %215, %cst_65 {dimension_numbers = #tpu.dot_dimension_numbers<[2], [1], [1], [2], [0, 0, 0, 1, 1, 2], [0], [0]>, precision = #tpu.contract_precision<fp32>} : vector<2x16x80xf32>, vector<2x80x6xf32>, vector<2x16x6xf32> -> vector<2x16x6xf32>
    %220 = vector.shape_cast %156 : vector<16x1xf32> to vector<1x16x1xf32>
    %221 = vector.broadcast %220 : vector<1x16x1xf32> to vector<2x16x6xf32>
    %222 = arith.addf %219, %221 : vector<2x16x6xf32>
    %cst_66 = arith.constant 0.000000e+00 : f32
    %223 = vector.broadcast %cst_66 : f32 to vector<2x16x6xf32>
    %224 = arith.cmpf oge, %222, %223 : vector<2x16x6xf32>
    %cst_67 = arith.constant 0.00999999977 : f32
    %225 = vector.broadcast %cst_67 : f32 to vector<2x16x6xf32>
    %226 = arith.mulf %225, %222 : vector<2x16x6xf32>
    %227 = arith.select %224, %222, %226 : vector<2x16x6xi1>, vector<2x16x6xf32>
    %228 = vector.extract_strided_slice %227 {offsets = [0, 0, 0], sizes = [2, 16, 4], strides = [1, 1, 1]} : vector<2x16x6xf32> to vector<2x16x4xf32>
    %229 = vector.extract_strided_slice %227 {offsets = [0, 0, 1], sizes = [2, 16, 4], strides = [1, 1, 1]} : vector<2x16x6xf32> to vector<2x16x4xf32>
    %230 = vector.extract_strided_slice %227 {offsets = [0, 0, 2], sizes = [2, 16, 4], strides = [1, 1, 1]} : vector<2x16x6xf32> to vector<2x16x4xf32>
    %231 = tpu.concatenate %228, %229, %230 in 1 : vector<2x16x4xf32>, vector<2x16x4xf32>, vector<2x16x4xf32> -> vector<2x48x4xf32>
    %232 = vector.shape_cast %158 : vector<16x48xf32> to vector<1x16x48xf32>
    %233 = vector.shape_cast %232 : vector<1x16x48xf32> to vector<1x16x48xf32>
    %234 = vector.broadcast %233 : vector<1x16x48xf32> to vector<2x16x48xf32>
    %cst_68 = arith.constant dense<0.000000e+00> : vector<2x16x4xf32>
    %235 = tpu.matmul %234, %231, %cst_68 {dimension_numbers = #tpu.dot_dimension_numbers<[2], [1], [1], [2], [0, 0, 0, 1, 1, 2], [0], [0]>, precision = #tpu.contract_precision<fp32>} : vector<2x16x48xf32>, vector<2x48x4xf32>, vector<2x16x4xf32> -> vector<2x16x4xf32>
    %236 = vector.shape_cast %160 : vector<16x1xf32> to vector<1x16x1xf32>
    %237 = vector.broadcast %236 : vector<1x16x1xf32> to vector<2x16x4xf32>
    %238 = arith.addf %235, %237 : vector<2x16x4xf32>
    %239 = math.tanh %238 : vector<2x16x4xf32>
    %240 = vector.extract_strided_slice %202 {offsets = [0, 8, 0], sizes = [2, 8, 4], strides = [1, 1, 1]} : vector<2x16x4xf32> to vector<2x8x4xf32>
    %241 = vector.extract_strided_slice %202 {offsets = [0, 0, 0], sizes = [2, 8, 4], strides = [1, 1, 1]} : vector<2x16x4xf32> to vector<2x8x4xf32>
    %242 = tpu.concatenate %240, %241 in 1 : vector<2x8x4xf32>, vector<2x8x4xf32> -> vector<2x16x4xf32>
    %243 = tpu.iota {dimensions = array<i32: 1>} : vector<2x16x4xi32>
    %c8_i32 = arith.constant 8 : i32
    %244 = vector.broadcast %c8_i32 : i32 to vector<2x16x4xi32>
    %245 = arith.cmpi slt, %243, %244 : vector<2x16x4xi32>
    %246 = arith.addf %242, %239 : vector<2x16x4xf32>
    %247 = arith.subf %242, %239 : vector<2x16x4xf32>
    %248 = arith.select %245, %246, %247 : vector<2x16x4xi1>, vector<2x16x4xf32>
    %c0_69 = arith.constant 0 : index
    %c0_70 = arith.constant 0 : index
    %c0_71 = arith.constant 0 : index
    %249 = vector.load %arg9[%c0_69, %c0_70, %c0_71] : memref<2x16x4xf32, #tpu.memory_space<vmem>>, vector<2x16x4xf32>
    tpu.vector_store %arg9[%c0_69, %c0_70, %c0_71], %248 {strides = array<i32>} : memref<2x16x4xf32, #tpu.memory_space<vmem>>, vector<2x16x4xf32>,
    return
  }
}

</mosaic_0001>

<bundles_post_ra>
// kernel: encoder_tree_forward.1
= control target key start
LH: loop header
LB: loop body
LE: loop exit
PB: predicated region body
PF: predicated region fallthrough
CT: control target
= control target key end

     0   :  { %v12696_v0 = vmov 7   ;;  %v14708_v1 = vmov 0   ;;  %s12698_s13 = smov 3   ;;  %v12699_v6 = vmov 0.0|0.0   ;;  %vm70_vm0 = vcmask 23552   ;;  %s12701_s14 = smov 126   ;;  %s14698_s0 = inlined_call_operand.vmem [shape: f32[2,8,8], index: 0, kind: input, shape index: {}]   ;;  %s14699_s1 = inlined_call_operand.vmem [shape: f32[2,8,40], index: 1, kind: input, shape index: {}]   ;;  %s14700_s2 = inlined_call_operand.vmem [shape: f32[2,8,1], index: 2, kind: input, shape index: {}]   ;;  %s14701_s4 = inlined_call_operand.vmem [shape: f32[2,8,1], index: 4, kind: input, shape index: {}]   ;;  %s14702_s3 = inlined_call_operand.vmem [shape: f32[2,8,24], index: 3, kind: input, shape index: {}]   ;;  %s14703_s5 = inlined_call_operand.vmem [shape: f32[2,16,80], index: 5, kind: input, shape index: {}]   ;;  %s14704_s6 = inlined_call_operand.vmem [shape: f32[2,16,1], index: 6, kind: input, shape index: {}]   ;;  %s14705_s7 = inlined_call_operand.vmem [shape: f32[2,16,48], index: 7, kind: input, shape index: {}]   ;;  %s14706_s8 = inlined_call_operand.vmem [shape: f32[2,16,1], index: 8, kind: input, shape index: {}]   ;;  %s14707_s9 = inlined_call_operand.vmem [shape: f32[2,16,4], index: 9, kind: output, shape index: {}]  }
   0x1   :  { %12642 = vset.pattern.permute.xlu1 %v12696_v0  ;;  %12641 = vset.pattern.permute.xlu0 %v14708_v1  ;;  %v12764_v2 = vld [vmem:[%s14698_s0] sm:$0xff]  ;;  %v12771_v3 = vld [vmem:[%s14698_s0 + $0x8] sm:$0xff]  ;;  %vm73_vm1 = vcmask 89088   ;;  %s12700_s0 = smov 127   ;;  %vm12702_vm2 = vmmov 0   ;;  %v12703_v15 = vmov 0.0  }
   0x2   :  { %57 = vperm.xlu1 %12642, %v12764_v2   ;;  %48 = vperm.xlu0 %12641, %v12764_v2   ;;  %v9288_v16 = vld [vmem:[%s14699_s1 + $0x8] sm:$0xff]  ;;  %vm107_vm3 = vcmask 326656   ;;  %s12704_s17 = smov 125   ;;  %s12705_s18 = smov 124   ;;  %v35_v18 = vld [vmem:[%s14700_s2] sm:$0xff]  ;;  %vm1132_vm6 = vcmask 195584  }
   0x3   :  { %11460 = vmatprep.subr.bf16.mxu0 %v12699_v6  ;;  %11496 = vmatprep.subr.bf16.mxu1 %v12699_v6  ;;  %v12797_v17 = vsel %vm107_vm3, %v9288_v16, 0  ;;  %v34_v19 = vld [vmem:[%s14699_s1] sm:$0xff]  ;;  %vm4160_vm10 = vcmask 56320   ;;  %vm4181_vm12 = vcmask 48128   ;;  %vm4360_vm14 = vcmask 654336  }
   0x4   :  { %10030 = vmatprep.mubr.msk.f32.mxu0 %vm12702_vm2, %v12703_v15  ;;  %10108 = vmatprep.mubr.msk.f32.mxu1 %vm12702_vm2, %v12703_v15  ;;  %v109_v20 = vsel %vm107_vm3, %v34_v19, 0  ;;  %vm5629_vm3 = vcmask 392192  }
   0x5   :  { %v12809_v23 = vand.u32 4294901760, %v109_v20 }
   0x6   :  { %61 = vperm.xlu1 %12642, %v12771_v3   ;;  %53 = vperm.xlu0 %12641, %v12771_v3  }
   0x7   :  { %v12816_v30 = vsub.f32 %v109_v20, %v12809_v23 }
   0x9   :  { %v12833_v41 = vand.u32 4294901760, %v12816_v30 }
   0xa   :  { %66 = vrot.lane.b32.xlu1 %v12771_v3, %s12698_s13  ;;  %64 = vrot.lane.b32.xlu0 %v12764_v2, %s12698_s13 }
   0xb   :  { %12643 = vset.pattern.permute.xlu1 %v14708_v1  ;;  %v184_v52 = vsub.f32 %v12816_v30, %v12833_v41 }
  0x81   :  { %v58_v4 = vpop.permute.xlu1 %57  ;;  %v49_v5 = vpop.permute.xlu0 %48 }
  0x85   :  { %v62_v7 = vpop.permute.xlu1 %61  ;;  %v54_v8 = vpop.permute.xlu0 %53 }
  0x89   :  { %v67_v9 = vpop.permute.xlu1 %66  ;;  %v65_v10 = vpop.permute.xlu0 %64 }
  0x8a   :  { %v72_v11 = vsel %vm70_vm0, %v54_v8, %v67_v9  ;;  %v71_v12 = vsel %vm70_vm0, %v49_v5, %v65_v10 }
  0x8b   :  { %v75_v13 = vsel %vm73_vm1, %v72_v11, %v62_v7  ;;  %v74_v14 = vsel %vm73_vm1, %v71_v12, %v58_v4 }
  0x8c   :  { %80 = vrot.lane.b32.xlu1 %v75_v13, %s12700_s0  ;;  %78 = vrot.lane.b32.xlu0 %v74_v14, %s12700_s0  ;;  %v112_v21 = vand.u32 4294901760, %v74_v14  ;;  %v610_v22 = vand.u32 4294901760, %v75_v13 }
  0x8e   :  { %v12811_v28 = vsub.f32 %v74_v14, %v112_v21  ;;  %v12813_v29 = vsub.f32 %v75_v13, %v610_v22 }
  0x90   :  { %86 = vrot.lane.b32.xlu1 %v75_v13, %s12701_s14  ;;  %84 = vrot.lane.b32.xlu0 %v74_v14, %s12701_s14  ;;  %v194_v42 = vand.u32 4294901760, %v12811_v28  ;;  %v692_v43 = vand.u32 4294901760, %v12813_v29 }
  0x92   :  { %v195_v53 = vsub.f32 %v12811_v28, %v194_v42  ;;  %v693_v54 = vsub.f32 %v12813_v29, %v692_v43 }
  0x94   :  { %92 = vrot.lane.b32.xlu1 %v75_v13, %s12704_s17  ;;  %90 = vrot.lane.b32.xlu0 %v74_v14, %s12704_s17  ;;  %v196_v16 = vand.u32 4294901760, %v195_v53  ;;  %v694_v20 = vand.u32 4294901760, %v693_v54 }
  0x98   :  { %98 = vrot.lane.b32.xlu1 %v75_v13, %s12705_s18  ;;  %96 = vrot.lane.b32.xlu0 %v74_v14, %s12705_s18  ;;  %v185_v14 = vand.u32 4294901760, %v184_v52 }
  0x9c   :  { %104 = vperm.xlu0 %12641, %v35_v18  }
  0xfe   :  { %v81_v24 = vpop.permute.xlu1 %80  ;;  %v79_v25 = vpop.permute.xlu0 %78 }
  0xff   :  { %v613_v26 = vand.u32 4294901760, %v81_v24  ;;  %v115_v27 = vand.u32 4294901760, %v79_v25 }
 0x101   :  { %v12818_v31 = vsub.f32 %v81_v24, %v613_v26  ;;  %v12820_v32 = vsub.f32 %v79_v25, %v115_v27  ;;  %v12822_v33 = vpack.c.bf16 %v115_v27, %v112_v21  ;;  %v12824_v34 = vpack.c.bf16 %v613_v26, %v610_v22 }
 0x102   :  { %v87_v35 = vpop.permute.xlu1 %86  ;;  %v85_v36 = vpop.permute.xlu0 %84 }
 0x103   :  { %v616_v37 = vand.u32 4294901760, %v87_v35  ;;  %v118_v38 = vand.u32 4294901760, %v85_v36  ;;  %11462 = vmatpush3.bf16.msra.mxu0 %v12822_v33  ;;  %11498 = vmatpush3.bf16.msra.mxu1 %v12824_v34  ;;  %v201_v39 = vand.u32 4294901760, %v12820_v32  ;;  %v699_v40 = vand.u32 4294901760, %v12818_v31 }
 0x104   :  { %11499 = vmatprep.subr.bf16.mxu1 %v12699_v6  ;;  %11463 = vmatprep.subr.bf16.mxu0 %v12699_v6 }
 0x105   :  { %v12837_v46 = vsub.f32 %v87_v35, %v616_v37  ;;  %v12839_v47 = vsub.f32 %v85_v36, %v118_v38  ;;  %v202_v48 = vsub.f32 %v12820_v32, %v201_v39  ;;  %v700_v51 = vsub.f32 %v12818_v31, %v699_v40 }
 0x106   :  { %v93_v44 = vpop.permute.xlu1 %92  ;;  %v91_v45 = vpop.permute.xlu0 %90  ;;  %v11521_v54 = vpack.c.bf16 %v699_v40, %v692_v43 }
 0x107   :  { %v619_v49 = vand.u32 4294901760, %v93_v44  ;;  %v121_v50 = vand.u32 4294901760, %v91_v45  ;;  %v706_v61 = vand.u32 4294901760, %v12837_v46  ;;  %v208_v62 = vand.u32 4294901760, %v12839_v47 }
 0x108   :  { %v203_v5 = vand.u32 4294901760, %v202_v48  ;;  %v701_v9 = vand.u32 4294901760, %v700_v51  ;;  %v11473_v51 = vpack.c.bf16 %v12820_v32, %v12811_v28 }
 0x109   :  { %v12855_v55 = vsub.f32 %v93_v44, %v619_v49  ;;  %v12857_v56 = vsub.f32 %v91_v45, %v121_v50  ;;  %v12859_v59 = vpack.c.bf16 %v121_v50, %v118_v38  ;;  %v12861_v60 = vpack.c.bf16 %v619_v49, %v616_v37 }
 0x10a   :  { %v99_v57 = vpop.permute.xlu1 %98  ;;  %v97_v58 = vpop.permute.xlu0 %96  ;;  %v707_v18 = vsub.f32 %v12837_v46, %v706_v61  ;;  %v209_v19 = vsub.f32 %v12839_v47, %v208_v62  ;;  %v11467_v22 = vpack.c.bf16 %v203_v5, %v196_v16  ;;  %v11503_v27 = vpack.c.bf16 %v701_v9, %v694_v20 }
 0x10b   :  { %v12865_v63 = vand.u32 4294901760, %v99_v57  ;;  %v12867_v4 = vand.u32 4294901760, %v97_v58  ;;  %v713_v7 = vand.u32 4294901760, %v12855_v55  ;;  %v215_v8 = vand.u32 4294901760, %v12857_v56  ;;  %11465 = vmatpush3.bf16.msra.mxu0 %v12859_v59  ;;  %11501 = vmatpush3.bf16.msra.mxu1 %v12861_v60 }
 0x10c   :  { %10028 = vmatprep.subr.mxu0 %v12703_v15  ;;  %10106 = vmatprep.subr.mxu1 %v12703_v15  ;;  %v708_v35 = vand.u32 4294901760, %v707_v18  ;;  %v210_v36 = vand.u32 4294901760, %v209_v19  ;;  %v11509_v50 = vpack.c.bf16 %v12818_v31, %v12813_v29  ;;  %v11476_v52 = vpack.c.bf16 %v12857_v56, %v12839_v47  ;;  %v37_v47 = vld [vmem:[%s14701_s4] sm:$0xff] }
 0x10d   :  { %v12874_v10 = vsub.f32 %v99_v57, %v12865_v63  ;;  %v12877_v11 = vsub.f32 %v97_v58, %v12867_v4  ;;  %v714_v12 = vsub.f32 %v12855_v55, %v713_v7  ;;  %v216_v13 = vsub.f32 %v12857_v56, %v215_v8 }
 0x10e   :  { %v11512_v53 = vpack.c.bf16 %v12855_v55, %v12837_v46  ;;  %v11488_v28 = vpack.c.bf16 %v215_v8, %v208_v62  ;;  %v11524_v29 = vpack.c.bf16 %v713_v7, %v706_v61  ;;  %v36_v55 = vld [vmem:[%s14702_s3] sm:$0xff] }
 0x10f   :  { %v222_v21 = vand.u32 4294901760, %v12877_v11  ;;  %10029 = vmatpush3.msra.mxu0 %v12867_v4  ;;  %10107 = vmatpush3.msra.mxu1 %v12865_v63  ;;  %v715_v24 = vand.u32 4294901760, %v714_v12  ;;  %v217_v25 = vand.u32 4294901760, %v216_v13  ;;  %v720_v26 = vand.u32 4294901760, %v12874_v10 }
 0x110   :  { %11466 = vmatprep.subr.bf16.mxu0 %v12699_v6  ;;  %11502 = vmatprep.subr.bf16.mxu1 %v12699_v6  ;;  %v1134_v56 = vsel %vm1132_vm6, %v36_v55, 0 }
 0x111   :  { %10031 = vmatmul.mubr.f32.vlgmr.msra.gmra.mrb[0].mxu0 %v185_v14  ;;  %10109 = vmatmul.mubr.f32.vlgmr.msra.gmra.mrb[0].mxu1 %v185_v14  ;;  %v223_v37 = vsub.f32 %v12877_v11, %v222_v21  ;;  %v11470_v38 = vpack.c.bf16 %v217_v25, %v210_v36  ;;  %v11506_v44 = vpack.c.bf16 %v715_v24, %v708_v35  ;;  %v13022_v57 = vand.u32 4294901760, %v1134_v56 }
 0x112   :  { %11468 = vmatpush3.bf16.msra.mxu0 %v11467_v22  ;;  %11504 = vmatpush3.bf16.msra.mxu1 %v11503_v27  ;;  %v721_v45 = vsub.f32 %v12874_v10, %v720_v26 }
 0x113   :  { %11469 = vmatprep.subr.bf16.mxu0 %v12699_v6  ;;  %11505 = vmatprep.subr.bf16.mxu1 %v12699_v6  ;;  %v224_v48 = vand.u32 4294901760, %v223_v37 }
 0x114   :  { %10043 = vmatprep.mubr.msk.f32.mxu0 %vm12702_vm2, %v12703_v15  ;;  %10121 = vmatprep.mubr.msk.f32.mxu1 %vm12702_vm2, %v12703_v15  ;;  %v722_v49 = vand.u32 4294901760, %v721_v45 }
 0x116   :  { %11471 = vmatpush3.bf16.msra.mxu0 %v11470_v38  ;;  %11507 = vmatpush3.bf16.msra.mxu1 %v11506_v44 }
 0x117   :  { %10041 = vmatprep.subr.mxu0 %v12703_v15  ;;  %10119 = vmatprep.subr.mxu1 %v12703_v15 }
 0x11a   :  { %10042 = vmatpush3.msra.mxu0 %v224_v48  ;;  %10120 = vmatpush3.msra.mxu1 %v722_v49 }
 0x11b   :  { %11472 = vmatprep.subr.bf16.mxu0 %v12699_v6  ;;  %11508 = vmatprep.subr.bf16.mxu1 %v12699_v6  ;;  %v105_v31 = vpop.permute.xlu0 %104 }
 0x11c   :  { %10122 = vmatmul.mubr.f32.vlgmr.msra.gmra.mrb[0].mxu1 %v12809_v23  ;;  %10044 = vmatmul.mubr.f32.vlgmr.msra.gmra.mrb[0].mxu0 %v12809_v23 }
 0x11d   :  { %11510 = vmatpush3.bf16.msra.mxu1 %v11509_v50  ;;  %11474 = vmatpush3.bf16.msra.mxu0 %v11473_v51 }
 0x11e   :  { %11475 = vmatprep.subr.bf16.mxu0 %v12699_v6  ;;  %11511 = vmatprep.subr.bf16.mxu1 %v12699_v6 }
 0x11f   :  { %10056 = vmatprep.mubr.msk.f32.mxu0 %vm12702_vm2, %v12703_v15  ;;  %10134 = vmatprep.mubr.msk.f32.mxu1 %vm12702_vm2, %v12703_v15 }
 0x121   :  { %11477 = vmatpush3.bf16.msra.mxu0 %v11476_v52  ;;  %11513 = vmatpush3.bf16.msra.mxu1 %v11512_v53 }
 0x122   :  { %10054 = vmatprep.subr.mxu0 %v12703_v15  ;;  %10132 = vmatprep.subr.mxu1 %v12703_v15 }
 0x125   :  { %10055 = vmatpush3.msra.mxu0 %v12877_v11  ;;  %10133 = vmatpush3.msra.mxu1 %v12874_v10 }
 0x126   :  { %11478 = vmatprep.subr.bf16.mxu0 %v12699_v6  ;;  %11514 = vmatprep.subr.bf16.mxu1 %v12699_v6 }
 0x127   :  { %10057 = vmatmul.mubr.f32.vlgmr.msra.gmra.mrb[0].mxu0 %v12816_v30  ;;  %10135 = vmatmul.mubr.f32.vlgmr.msra.gmra.mrb[0].mxu1 %v12816_v30  ;;  %v11485_v30 = vpack.c.bf16 %v201_v39, %v194_v42 }
 0x128   :  { %11480 = vmatpush3.bf16.msra.mxu0 %v12822_v33  ;;  %11516 = vmatpush3.bf16.msra.mxu1 %v12824_v34 }
 0x129   :  { %11481 = vmatprep.subr.bf16.mxu0 %v12699_v6  ;;  %11517 = vmatprep.subr.bf16.mxu1 %v12699_v6 }
 0x12a   :  { %10069 = vmatprep.mubr.msk.f32.mxu0 %vm12702_vm2, %v12703_v15  ;;  %10147 = vmatprep.mubr.msk.f32.mxu1 %vm12702_vm2, %v12703_v15 }
 0x12c   :  { %11483 = vmatpush3.bf16.msra.mxu0 %v12859_v59  ;;  %11519 = vmatpush3.bf16.msra.mxu1 %v12861_v60 }
 0x12d   :  { %10067 = vmatprep.subr.mxu0 %v12703_v15  ;;  %10145 = vmatprep.subr.mxu1 %v12703_v15 }
 0x130   :  { %10068 = vmatpush3.msra.mxu0 %v12867_v4  ;;  %10146 = vmatpush3.msra.mxu1 %v12865_v63 }
 0x131   :  { %11484 = vmatprep.subr.bf16.mxu0 %v12699_v6  ;;  %11520 = vmatprep.subr.bf16.mxu1 %v12699_v6 }
 0x132   :  { %10070 = vmatmul.mubr.f32.vlgmr.msra.gmra.mrb[0].mxu0 %v12833_v41  ;;  %10148 = vmatmul.mubr.f32.vlgmr.msra.gmra.mrb[0].mxu1 %v12833_v41 }
 0x133   :  { %11486 = vmatpush3.bf16.msra.mxu0 %v11485_v30  ;;  %11522 = vmatpush3.bf16.msra.mxu1 %v11521_v54 }
 0x134   :  { %11487 = vmatprep.subr.bf16.mxu0 %v12699_v6  ;;  %11523 = vmatprep.subr.bf16.mxu1 %v12699_v6 }
 0x135   :  { %10082 = vmatprep.mubr.msk.f32.mxu0 %vm12702_vm2, %v12703_v15  ;;  %10160 = vmatprep.mubr.msk.f32.mxu1 %vm12702_vm2, %v12703_v15 }
 0x137   :  { %11489 = vmatpush3.bf16.msra.mxu0 %v11488_v28  ;;  %11525 = vmatpush3.bf16.msra.mxu1 %v11524_v29 }
 0x138   :  { %10080 = vmatprep.subr.mxu0 %v12703_v15  ;;  %10158 = vmatprep.subr.mxu1 %v12703_v15 }
 0x13b   :  { %10081 = vmatpush3.msra.mxu0 %v222_v21  ;;  %10159 = vmatpush3.msra.mxu1 %v720_v26 }
 0x13c   :  { %11490 = vmatprep.subr.bf16.mxu0 %v12699_v6  ;;  %11526 = vmatprep.subr.bf16.mxu1 %v12699_v6 }
 0x13d   :  { %10083 = vmatmul.mubr.f32.vlgmr.msra.gmra.mrb[0].mxu0 %v12809_v23  ;;  %10161 = vmatmul.mubr.f32.vlgmr.msra.gmra.mrb[0].mxu1 %v12809_v23 }
 0x13e   :  { %11492 = vmatpush3.bf16.msra.mxu0 %v12822_v33  ;;  %11528 = vmatpush3.bf16.msra.mxu1 %v12824_v34 }
 0x13f   :  { %11493 = vmatprep.subr.bf16.mxu0 %v12699_v6  ;;  %11529 = vmatprep.subr.bf16.mxu1 %v12699_v6 }
 0x140   :  { %10095 = vmatprep.mubr.msk.f32.mxu0 %vm12702_vm2, %v12703_v15  ;;  %10173 = vmatprep.mubr.msk.f32.mxu1 %vm12702_vm2, %v12703_v15 }
 0x142   :  { %11495 = vmatpush3.bf16.msra.mxu0 %v12859_v59  ;;  %11531 = vmatpush3.bf16.msra.mxu1 %v12861_v60  ;;  %v13025_v60 = vsub.f32 %v1134_v56, %v13022_v57 }
 0x143   :  { %10093 = vmatprep.subr.mxu0 %v12703_v15  ;;  %10171 = vmatprep.subr.mxu1 %v12703_v15 }
 0x146   :  { %10094 = vmatpush3.msra.mxu0 %v12867_v4  ;;  %10172 = vmatpush3.msra.mxu1 %v12865_v63  ;;  %v13032_v63 = vand.u32 4294901760, %v13025_v60 }
 0x147   :  { %10096 = vmatmul.mubr.f32.vlgmr.msra.gmra.mrb[0].mxu0 %v12809_v23  ;;  %10174 = vmatmul.mubr.f32.vlgmr.msra.gmra.mrb[0].mxu1 %v12809_v23 }
 0x148   :  { %11550 = vmatprep.subr.bf16.mxu1 %v12699_v6  ;;  %11532 = vmatprep.subr.bf16.mxu0 %v12699_v6  ;;  %v1207_v11 = vsub.f32 %v13025_v60, %v13032_v63 }
 0x149   :  { %10182 = vmatprep.mubr.msk.f32.mxu0 %vm12702_vm2, %v12703_v15  ;;  %10236 = vmatprep.mubr.msk.f32.mxu1 %vm12702_vm2, %v12703_v15 }
 0x14a   :  { %v1208_v27 = vand.u32 4294901760, %v1207_v11 }
 0x21a   :  { %v605_v32 = vpop.f32.mrb[0].mxu0  ;;  %v1103_v33 = vpop.f32.mrb[0].mxu1 }
 0x21b   :  { %v12444_v34 = vadd.f32 %v605_v32, %v105_v31  ;;  %v12445_v39 = vadd.f32 %v1103_v33, %v105_v31  ;;  %v10097_v40 = vpop.f32.mrb[1].mxu0  ;;  %v10175_v41 = vpop.f32.mrb[1].mxu1 }
 0x21d   :  { %vm1107_vm4 = vcmp.ge.f32.partialorder %v12444_v34, 0.0  ;;  %v1109_v42 = vmul.f32 0.01, %v12444_v34  ;;  %vm1108_vm5 = vcmp.ge.f32.partialorder %v12445_v39, 0.0  ;;  %v1110_v23 = vmul.f32 0.01, %v12445_v39 }
 0x21f   :  { %v1112_v43 = vsel %vm1108_vm5, %v12445_v39, %v1110_v23  ;;  %v1111_v46 = vsel %vm1107_vm4, %v12444_v34, %v1109_v42 }
 0x220   :  { %1117 = vrot.lane.b32.xlu0 %v1112_v43, %s12700_s0  ;;  %1115 = vrot.lane.b32.xlu1 %v1111_v46, %s12700_s0  ;;  %v1609_v58 = vand.u32 4294901760, %v1112_v43  ;;  %v1137_v59 = vand.u32 4294901760, %v1111_v46 }
 0x222   :  { %v13027_v61 = vsub.f32 %v1112_v43, %v1609_v58  ;;  %v13029_v62 = vsub.f32 %v1111_v46, %v1137_v59 }
 0x224   :  { %1123 = vrot.lane.b32.xlu0 %v1112_v43, %s12701_s14  ;;  %1121 = vrot.lane.b32.xlu1 %v1111_v46, %s12701_s14  ;;  %v1217_v7 = vand.u32 4294901760, %v13029_v62  ;;  %v1689_v8 = vand.u32 4294901760, %v13027_v61 }
 0x226   :  { %v1218_v20 = vsub.f32 %v13029_v62, %v1217_v7  ;;  %v1690_v21 = vsub.f32 %v13027_v61, %v1689_v8 }
 0x228   :  { %1129 = vperm.xlu1 %12643, %v37_v47   ;;  %v1219_v44 = vand.u32 4294901760, %v1218_v20  ;;  %v1691_v45 = vand.u32 4294901760, %v1690_v21 }
 0x292   :  { %v1118_v4 = vpop.permute.xlu0 %1117  ;;  %v1116_v5 = vpop.permute.xlu1 %1115 }
 0x293   :  { %v1612_v9 = vand.u32 4294901760, %v1118_v4  ;;  %v1140_v10 = vand.u32 4294901760, %v1116_v5 }
 0x295   :  { %v13038_v12 = vpack.c.bf16 %v1612_v9, %v1609_v58  ;;  %v13040_v13 = vsub.f32 %v1118_v4, %v1612_v9  ;;  %v13042_v14 = vpack.c.bf16 %v1140_v10, %v1137_v59  ;;  %v13044_v16 = vsub.f32 %v1116_v5, %v1140_v10 }
 0x296   :  { %v1124_v18 = vpop.permute.xlu0 %1123  ;;  %v1122_v19 = vpop.permute.xlu1 %1121  ;;  %v2083_v59 = vrot.slane %v12771_v3, 4 }
 0x297   :  { %v1696_v22 = vand.u32 4294901760, %v13040_v13  ;;  %v1224_v24 = vand.u32 4294901760, %v13044_v16  ;;  %v13054_v25 = vand.u32 4294901760, %v1124_v18  ;;  %v13056_v26 = vand.u32 4294901760, %v1122_v19  ;;  %11534 = vmatpush3.bf16.msra.mxu0 %v13042_v14  ;;  %11552 = vmatpush3.bf16.msra.mxu1 %v13038_v12 }
 0x298   :  { %10180 = vmatprep.subr.mxu0 %v12703_v15  ;;  %10234 = vmatprep.subr.mxu1 %v12703_v15  ;;  %v11539_v31 = vpack.c.bf16 %v13044_v16, %v13029_v62  ;;  %v11557_v32 = vpack.c.bf16 %v13040_v13, %v13027_v61 }
 0x299   :  { %v1697_v35 = vsub.f32 %v13040_v13, %v1696_v22  ;;  %v1225_v36 = vsub.f32 %v13044_v16, %v1224_v24  ;;  %v13069_v37 = vsub.f32 %v1124_v18, %v13054_v25  ;;  %v13072_v38 = vsub.f32 %v1122_v19, %v13056_v26 }
 0x29a   :  { %v11545_v33 = vpack.c.bf16 %v1224_v24, %v1217_v7  ;;  %v11563_v34 = vpack.c.bf16 %v1696_v22, %v1689_v8  ;;  %v13192_v13 = vand.u32 4294901760, %v12797_v17 }
 0x29b   :  { %v1698_v48 = vand.u32 4294901760, %v1697_v35  ;;  %v1226_v49 = vand.u32 4294901760, %v1225_v36  ;;  %v1703_v50 = vand.u32 4294901760, %v13069_v37  ;;  %v1231_v51 = vand.u32 4294901760, %v13072_v38  ;;  %10181 = vmatpush3.msra.mxu0 %v13056_v26  ;;  %10235 = vmatpush3.msra.mxu1 %v13054_v25 }
 0x29c   :  { %10183 = vmatmul.mubr.f32.vlgmr.msra.gmra.mrb[2].mxu0 %v1208_v27  ;;  %10237 = vmatmul.mubr.f32.vlgmr.msra.gmra.mrb[2].mxu1 %v1208_v27 }
 0x29d   :  { %11535 = vmatprep.subr.bf16.mxu0 %v12699_v6  ;;  %11553 = vmatprep.subr.bf16.mxu1 %v12699_v6  ;;  %v11536_v52 = vpack.c.bf16 %v1226_v49, %v1219_v44  ;;  %v11554_v53 = vpack.c.bf16 %v1698_v48, %v1691_v45  ;;  %v1232_v30 = vsub.f32 %v13072_v38, %v1231_v51 }
 0x29e   :  { %10191 = vmatprep.mubr.msk.f32.mxu0 %vm12702_vm2, %v12703_v15  ;;  %v1704_v54 = vsub.f32 %v13069_v37, %v1703_v50  ;;  %10245 = vmatprep.mubr.msk.f32.mxu1 %vm12702_vm2, %v12703_v15 }
 0x29f   :  { %11537 = vmatpush3.bf16.msra.mxu0 %v11536_v52  ;;  %11555 = vmatpush3.bf16.msra.mxu1 %v11554_v53  ;;  %v1233_v28 = vand.u32 4294901760, %v1232_v30 }
 0x2a0   :  { %10189 = vmatprep.subr.mxu0 %v12703_v15  ;;  %10243 = vmatprep.subr.mxu1 %v12703_v15  ;;  %v1705_v29 = vand.u32 4294901760, %v1704_v54 }
 0x2a3   :  { %10190 = vmatpush3.msra.mxu0 %v1233_v28  ;;  %10244 = vmatpush3.msra.mxu1 %v1705_v29 }
 0x2a4   :  { %10192 = vmatmul.mubr.f32.vlgmr.msra.gmra.mrb[2].mxu0 %v13022_v57  ;;  %11538 = vmatprep.subr.bf16.mxu0 %v12699_v6 }
 0x2a5   :  { %10246 = vmatmul.mubr.f32.vlgmr.msra.gmra.mrb[2].mxu1 %v13022_v57  ;;  %11556 = vmatprep.subr.bf16.mxu1 %v12699_v6 }
 0x2a6   :  { %11540 = vmatpush3.bf16.msra.mxu0 %v11539_v31  ;;  %11558 = vmatpush3.bf16.msra.mxu1 %v11557_v32 }
 0x2a7   :  { %10198 = vmatprep.subr.mxu0 %v12703_v15  ;;  %10252 = vmatprep.subr.mxu1 %v12703_v15  ;;  %v1130_v39 = vpop.permute.xlu1 %1129 }
 0x2a8   :  { %10200 = vmatprep.mubr.msk.f32.mxu0 %vm12702_vm2, %v12703_v15  ;;  %10254 = vmatprep.mubr.msk.f32.mxu1 %vm12702_vm2, %v12703_v15 }
 0x2aa   :  { %10199 = vmatpush3.msra.mxu0 %v13072_v38  ;;  %10253 = vmatpush3.msra.mxu1 %v13069_v37 }
 0x2ab   :  { %11541 = vmatprep.subr.bf16.mxu0 %v12699_v6  ;;  %11559 = vmatprep.subr.bf16.mxu1 %v12699_v6 }
 0x2ac   :  { %10201 = vmatmul.mubr.f32.vlgmr.msra.gmra.mrb[2].mxu0 %v13025_v60 }
 0x2ad   :  { %11543 = vmatpush3.bf16.msra.mxu0 %v13042_v14  ;;  %10255 = vmatmul.mubr.f32.vlgmr.msra.gmra.mrb[2].mxu1 %v13025_v60 }
 0x2ae   :  { %11561 = vmatpush3.bf16.msra.mxu1 %v13038_v12  ;;  %10207 = vmatprep.subr.mxu0 %v12703_v15 }
 0x2af   :  { %10261 = vmatprep.subr.mxu1 %v12703_v15  ;;  %10209 = vmatprep.mubr.msk.f32.mxu0 %vm12702_vm2, %v12703_v15 }
 0x2b0   :  { %10263 = vmatprep.mubr.msk.f32.mxu1 %vm12702_vm2, %v12703_v15 }
 0x2b1   :  { %10208 = vmatpush3.msra.mxu0 %v13056_v26 }
 0x2b2   :  { %10262 = vmatpush3.msra.mxu1 %v13054_v25  ;;  %11544 = vmatprep.subr.bf16.mxu0 %v12699_v6 }
 0x2b3   :  { %11562 = vmatprep.subr.bf16.mxu1 %v12699_v6 }
 0x2b4   :  { %10210 = vmatmul.mubr.f32.vlgmr.msra.gmra.mrb[2].mxu0 %v13032_v63 }
 0x2b5   :  { %11546 = vmatpush3.bf16.msra.mxu0 %v11545_v33  ;;  %10264 = vmatmul.mubr.f32.vlgmr.msra.gmra.mrb[2].mxu1 %v13032_v63 }
 0x2b6   :  { %11564 = vmatpush3.bf16.msra.mxu1 %v11563_v34  ;;  %10216 = vmatprep.subr.mxu0 %v12703_v15 }
 0x2b7   :  { %10270 = vmatprep.subr.mxu1 %v12703_v15  ;;  %10218 = vmatprep.mubr.msk.f32.mxu0 %vm12702_vm2, %v12703_v15 }
 0x2b8   :  { %10272 = vmatprep.mubr.msk.f32.mxu1 %vm12702_vm2, %v12703_v15 }
 0x2b9   :  { %10217 = vmatpush3.msra.mxu0 %v1231_v51 }
 0x2ba   :  { %10271 = vmatpush3.msra.mxu1 %v1703_v50  ;;  %11547 = vmatprep.subr.bf16.mxu0 %v12699_v6 }
 0x2bb   :  { %11565 = vmatprep.subr.bf16.mxu1 %v12699_v6 }
 0x2bc   :  { %10219 = vmatmul.mubr.f32.vlgmr.msra.gmra.mrb[2].mxu0 %v13022_v57 }
 0x2bd   :  { %11549 = vmatpush3.bf16.msra.mxu0 %v13042_v14  ;;  %10273 = vmatmul.mubr.f32.vlgmr.msra.gmra.mrb[2].mxu1 %v13022_v57 }
 0x2be   :  { %11567 = vmatpush3.bf16.msra.mxu1 %v13038_v12  ;;  %10225 = vmatprep.subr.mxu0 %v12703_v15  ;;  %v9289_v12 = vld [vmem:[%s14700_s2 + $0x8] sm:$0xff] }
 0x2bf   :  { %10279 = vmatprep.subr.mxu1 %v12703_v15  ;;  %10227 = vmatprep.mubr.msk.f32.mxu0 %vm12702_vm2, %v12703_v15 }
 0x2c0   :  { %10281 = vmatprep.mubr.msk.f32.mxu1 %vm12702_vm2, %v12703_v15 }
 0x2c1   :  { %10226 = vmatpush3.msra.mxu0 %v13056_v26 }
 0x2c2   :  { %10280 = vmatpush3.msra.mxu1 %v13054_v25  ;;  %11568 = vmatprep.subr.bf16.mxu0 %v12699_v6  ;;  %v13200_v25 = vsub.f32 %v12797_v17, %v13192_v13 }
 0x2c3   :  { %11604 = vmatprep.subr.bf16.mxu1 %v12699_v6 }
 0x2c4   :  { %10228 = vmatmul.mubr.f32.vlgmr.msra.gmra.mrb[2].mxu0 %v13022_v57  ;;  %v13217_v49 = vand.u32 4294901760, %v13200_v25 }
 0x2c5   :  { %10282 = vmatmul.mubr.f32.vlgmr.msra.gmra.mrb[2].mxu1 %v13022_v57  ;;  %10294 = vmatprep.mubr.msk.f32.mxu0 %vm12702_vm2, %v12703_v15  ;;  %v2082_v57 = vrot.slane %v12764_v2, 4 }
 0x2c6   :  { %10372 = vmatprep.mubr.msk.f32.mxu1 %vm12702_vm2, %v12703_v15 }
 0x397   :  { %v1604_v40 = vpop.f32.mrb[2].mxu0 }
 0x398   :  { %v2076_v41 = vpop.f32.mrb[2].mxu1  ;;  %v12446_v42 = vadd.f32 %v1604_v40, %v1130_v39  ;;  %v10229_v23 = vpop.f32.mrb[3].mxu0 }
 0x399   :  { %v12447_v43 = vadd.f32 %v2076_v41, %v1130_v39  ;;  %v10283_v46 = vpop.f32.mrb[3].mxu1  ;;  %v2230_v39 = vsub.f32 %v13200_v25, %v13217_v49 }
 0x39a   :  { %12660 = vtanh.f32 %v12446_v42 }
 0x39b   :  { %12662 = vtanh.f32 %v12447_v43 }
 0x3a4   :  { %v12661_v47 = vpop.eup %12660 }
 0x3a5   :  { %v12663_v55 = vpop.eup %12662  ;;  %v2089_v56 = vmul.f32 1.442695, %v12661_v47 }
 0x3a6   :  { %v2091_v58 = vmul.f32 1.442695, %v12663_v55 }
 0x3a7   :  { %12664 = vpow2.f32 %v2089_v56 }
 0x3a8   :  { %12666 = vpow2.f32 %v2091_v58 }
 0x3b1   :  { %v12665_v60 = vpop.eup %12664 }
 0x3b2   :  { %v12667_v61 = vpop.eup %12666  ;;  %v13160_v62 = vmul.f32 %v12665_v60, %v2082_v57 }
 0x3b3   :  { %v13162_v63 = vmul.f32 %v12667_v61, %v2083_v59 }
 0x3b4   :  { %2097 = vperm.xlu0 %12641, %v13160_v62  }
 0x3b5   :  { %2102 = vperm.xlu1 %12643, %v13162_v63  }
 0x3b8   :  { %12644 = vset.pattern.permute.xlu0 %v12696_v0 }
 0x3b9   :  { %12645 = vset.pattern.permute.xlu1 %v12696_v0  ;;  %2106 = vperm.xlu0 %12644, %v13160_v62  }
 0x3ba   :  { %2110 = vperm.xlu1 %12645, %v13162_v63  }
 0x3bd   :  { %2115 = vrot.lane.b32.xlu0 %v13162_v63, %s12698_s13 }
 0x3be   :  { %2113 = vrot.lane.b32.xlu1 %v13160_v62, %s12698_s13  ;;  %12647 = vset.pattern.permute.xlu0 %v14708_v1 }
 0x3bf   :  { %12646 = vset.pattern.permute.xlu1 %v14708_v1 }
 0x433   :  { %v2098_v2 = vpop.permute.xlu0 %2097 }
 0x434   :  { %v2103_v3 = vpop.permute.xlu1 %2102 }
 0x438   :  { %v2107_v4 = vpop.permute.xlu0 %2106 }
 0x439   :  { %v2111_v5 = vpop.permute.xlu1 %2110 }
 0x43c   :  { %v2116_v7 = vpop.permute.xlu0 %2115 }
 0x43d   :  { %v2114_v0 = vpop.permute.xlu1 %2113  ;;  %v2120_v8 = vsel %vm70_vm0, %v2103_v3, %v2116_v7 }
 0x43e   :  { %v2119_v9 = vsel %vm70_vm0, %v2098_v2, %v2114_v0  ;;  %v2122_v10 = vsel %vm73_vm1, %v2120_v8, %v2111_v5 }
 0x43f   :  { %v2121_v11 = vsel %vm73_vm1, %v2119_v9, %v2107_v4  ;;  %2127 = vrot.lane.b32.xlu0 %v2122_v10, %s12700_s0  ;;  %v2656_v19 = vand.u32 4294901760, %v2122_v10  ;;  %v2231_v4 = vand.u32 4294901760, %v2230_v39 }
 0x440   :  { %2125 = vrot.lane.b32.xlu1 %v2121_v11, %s12700_s0  ;;  %v2158_v14 = vand.u32 4294901760, %v2121_v11 }
 0x441   :  { %v13208_v37 = vsub.f32 %v2122_v10, %v2656_v19 }
 0x442   :  { %v13204_v27 = vsub.f32 %v2121_v11, %v2158_v14 }
 0x443   :  { %2133 = vrot.lane.b32.xlu0 %v2122_v10, %s12701_s14  ;;  %v2738_v28 = vand.u32 4294901760, %v13208_v37 }
 0x444   :  { %2131 = vrot.lane.b32.xlu1 %v2121_v11, %s12701_s14  ;;  %v2240_v52 = vand.u32 4294901760, %v13204_v27 }
 0x445   :  { %v2739_v58 = vsub.f32 %v13208_v37, %v2738_v28 }
 0x446   :  { %v2241_v43 = vsub.f32 %v13204_v27, %v2240_v52 }
 0x447   :  { %2139 = vrot.lane.b32.xlu0 %v2122_v10, %s12704_s17 }
 0x448   :  { %2137 = vrot.lane.b32.xlu1 %v2121_v11, %s12704_s17  ;;  %v2242_v8 = vand.u32 4294901760, %v2241_v43 }
 0x44b   :  { %2145 = vrot.lane.b32.xlu0 %v2122_v10, %s12705_s18  ;;  %v2740_v10 = vand.u32 4294901760, %v2739_v58 }
 0x44c   :  { %2143 = vrot.lane.b32.xlu1 %v2121_v11, %s12705_s18 }
 0x450   :  { %2151 = vperm.xlu1 %12646, %v9289_v12  }
 0x4b1   :  { %v2128_v16 = vpop.permute.xlu0 %2127 }
 0x4b2   :  { %v2126_v18 = vpop.permute.xlu1 %2125  ;;  %v2659_v20 = vand.u32 4294901760, %v2128_v16 }
 0x4b3   :  { %v2161_v21 = vand.u32 4294901760, %v2126_v18 }
 0x4b4   :  { %v13194_v22 = vpack.c.bf16 %v2659_v20, %v2656_v19  ;;  %v13196_v24 = vsub.f32 %v2128_v16, %v2659_v20 }
 0x4b5   :  { %v13202_v26 = vpack.c.bf16 %v2161_v21, %v2158_v14  ;;  %v13206_v35 = vsub.f32 %v2126_v18, %v2161_v21  ;;  %v2134_v36 = vpop.permute.xlu0 %2133 }
 0x4b6   :  { %v2132_v38 = vpop.permute.xlu1 %2131  ;;  %v2662_v44 = vand.u32 4294901760, %v2134_v36  ;;  %11606 = vmatpush3.bf16.msra.mxu1 %v13194_v22  ;;  %v2745_v17 = vand.u32 4294901760, %v13196_v24 }
 0x4b7   :  { %v2247_v45 = vand.u32 4294901760, %v13206_v35  ;;  %v2164_v48 = vand.u32 4294901760, %v2132_v38  ;;  %11570 = vmatpush3.bf16.msra.mxu0 %v13202_v26  ;;  %11607 = vmatprep.subr.bf16.mxu1 %v12699_v6 }
 0x4b8   :  { %11571 = vmatprep.subr.bf16.mxu0 %v12699_v6  ;;  %v13222_v53 = vsub.f32 %v2134_v36, %v2662_v44  ;;  %v2746_v32 = vsub.f32 %v13196_v24, %v2745_v17  ;;  %v11629_v39 = vpack.c.bf16 %v2745_v17, %v2738_v28  ;;  %v9291_v28 = vld [vmem:[%s14701_s4 + $0x8] sm:$0xff]  ;;  %s12708_s4 = smov 6  }
 0x4b9   :  { %v13219_v50 = vsub.f32 %v2132_v38, %v2164_v48  ;;  %v2140_v51 = vpop.permute.xlu0 %2139  ;;  %v2248_v29 = vsub.f32 %v13206_v35, %v2247_v45 }
 0x4ba   :  { %v2138_v30 = vpop.permute.xlu1 %2137  ;;  %v2665_v54 = vand.u32 4294901760, %v2140_v51  ;;  %v2752_v46 = vand.u32 4294901760, %v13222_v53  ;;  %v2747_v61 = vand.u32 4294901760, %v2746_v32 }
 0x4bb   :  { %v2167_v31 = vand.u32 4294901760, %v2138_v30  ;;  %v2254_v40 = vand.u32 4294901760, %v13219_v50  ;;  %v2249_v57 = vand.u32 4294901760, %v2248_v29  ;;  %v11617_v29 = vpack.c.bf16 %v13196_v24, %v13208_v37 }
 0x4bc   :  { %v13231_v33 = vpack.c.bf16 %v2665_v54, %v2662_v44  ;;  %v13233_v34 = vsub.f32 %v2140_v51, %v2665_v54  ;;  %v2753_v9 = vsub.f32 %v13222_v53, %v2752_v46  ;;  %v11611_v19 = vpack.c.bf16 %v2747_v61, %v2740_v10 }
 0x4bd   :  { %v13238_v41 = vpack.c.bf16 %v2167_v31, %v2164_v48  ;;  %v13240_v42 = vsub.f32 %v2138_v30, %v2167_v31  ;;  %v2146_v23 = vpop.permute.xlu0 %2145  ;;  %v2255_v5 = vsub.f32 %v13219_v50, %v2254_v40  ;;  %v11575_v14 = vpack.c.bf16 %v2249_v57, %v2242_v8 }
 0x4be   :  { %v2759_v47 = vand.u32 4294901760, %v13233_v34  ;;  %v2144_v55 = vpop.permute.xlu1 %2143  ;;  %v13247_v56 = vand.u32 4294901760, %v2146_v23  ;;  %11609 = vmatpush3.bf16.msra.mxu1 %v13231_v33  ;;  %v2754_v21 = vand.u32 4294901760, %v2753_v9  ;;  %v11581_v54 = vpack.c.bf16 %v13206_v35, %v13204_v27 }
 0x4bf   :  { %v2261_v59 = vand.u32 4294901760, %v13240_v42  ;;  %v13254_v60 = vand.u32 4294901760, %v2144_v55  ;;  %11573 = vmatpush3.bf16.msra.mxu0 %v13238_v41  ;;  %10370 = vmatprep.subr.mxu1 %v12703_v15  ;;  %v2256_v20 = vand.u32 4294901760, %v2255_v5  ;;  %v11584_v31 = vpack.c.bf16 %v13240_v42, %v13219_v50 }
 0x4c0   :  { %v2760_v2 = vsub.f32 %v13233_v34, %v2759_v47  ;;  %v13262_v3 = vsub.f32 %v2146_v23, %v13247_v56  ;;  %10292 = vmatprep.subr.mxu0 %v12703_v15  ;;  %v11620_v32 = vpack.c.bf16 %v13233_v34, %v13222_v53  ;;  %v11632_v24 = vpack.c.bf16 %v2759_v47, %v2752_v46 }
 0x4c1   :  { %v2262_v7 = vsub.f32 %v13240_v42, %v2261_v59  ;;  %v13272_v0 = vsub.f32 %v2144_v55, %v13254_v60  ;;  %v11596_v27 = vpack.c.bf16 %v2261_v59, %v2254_v40 }
 0x4c2   :  { %10371 = vmatpush3.msra.mxu1 %v13247_v56  ;;  %v2761_v16 = vand.u32 4294901760, %v2760_v2  ;;  %v2766_v18 = vand.u32 4294901760, %v13262_v3 }
 0x4c3   :  { %v2263_v11 = vand.u32 4294901760, %v2262_v7  ;;  %v2268_v12 = vand.u32 4294901760, %v13272_v0  ;;  %10293 = vmatpush3.msra.mxu0 %v13254_v60  ;;  %11610 = vmatprep.subr.bf16.mxu1 %v12699_v6 }
 0x4c4   :  { %11574 = vmatprep.subr.bf16.mxu0 %v12699_v6  ;;  %10295 = vmatmul.mubr.f32.vlgmr.msra.gmra.mrb[4].mxu0 %v2231_v4  ;;  %v2767_v44 = vsub.f32 %v13262_v3, %v2766_v18  ;;  %v11614_v48 = vpack.c.bf16 %v2761_v16, %v2754_v21 }
 0x4c5   :  { %11576 = vmatpush3.bf16.msra.mxu0 %v11575_v14  ;;  %10373 = vmatmul.mubr.f32.vlgmr.msra.gmra.mrb[4].mxu1 %v2231_v4  ;;  %v11578_v36 = vpack.c.bf16 %v2263_v11, %v2256_v20  ;;  %v2269_v38 = vsub.f32 %v13272_v0, %v2268_v12 }
 0x4c6   :  { %11612 = vmatpush3.bf16.msra.mxu1 %v11611_v19  ;;  %11577 = vmatprep.subr.bf16.mxu0 %v12699_v6  ;;  %v2768_v30 = vand.u32 4294901760, %v2767_v44 }
 0x4c7   :  { %11613 = vmatprep.subr.bf16.mxu1 %v12699_v6  ;;  %10307 = vmatprep.mubr.msk.f32.mxu0 %vm12702_vm2, %v12703_v15  ;;  %v2270_v51 = vand.u32 4294901760, %v2269_v38 }
 0x4c8   :  { %10385 = vmatprep.mubr.msk.f32.mxu1 %vm12702_vm2, %v12703_v15 }
 0x4c9   :  { %11579 = vmatpush3.bf16.msra.mxu0 %v11578_v36 }
 0x4ca   :  { %11615 = vmatpush3.bf16.msra.mxu1 %v11614_v48  ;;  %10305 = vmatprep.subr.mxu0 %v12703_v15 }
 0x4cb   :  { %10383 = vmatprep.subr.mxu1 %v12703_v15 }
 0x4cd   :  { %10306 = vmatpush3.msra.mxu0 %v2270_v51 }
 0x4ce   :  { %10384 = vmatpush3.msra.mxu1 %v2768_v30  ;;  %11580 = vmatprep.subr.bf16.mxu0 %v12699_v6 }
 0x4cf   :  { %11616 = vmatprep.subr.bf16.mxu1 %v12699_v6  ;;  %10308 = vmatmul.mubr.f32.vlgmr.msra.gmra.mrb[4].mxu0 %v13192_v13 }
 0x4d0   :  { %11582 = vmatpush3.bf16.msra.mxu0 %v11581_v54  ;;  %10386 = vmatmul.mubr.f32.vlgmr.msra.gmra.mrb[4].mxu1 %v13192_v13 }
 0x4d1   :  { %11618 = vmatpush3.bf16.msra.mxu1 %v11617_v29  ;;  %11583 = vmatprep.subr.bf16.mxu0 %v12699_v6 }
 0x4d2   :  { %11619 = vmatprep.subr.bf16.mxu1 %v12699_v6  ;;  %10320 = vmatprep.mubr.msk.f32.mxu0 %vm12702_vm2, %v12703_v15 }
 0x4d3   :  { %10398 = vmatprep.mubr.msk.f32.mxu1 %vm12702_vm2, %v12703_v15 }
 0x4d4   :  { %11585 = vmatpush3.bf16.msra.mxu0 %v11584_v31 }
 0x4d5   :  { %11621 = vmatpush3.bf16.msra.mxu1 %v11620_v32  ;;  %10318 = vmatprep.subr.mxu0 %v12703_v15 }
 0x4d6   :  { %10396 = vmatprep.subr.mxu1 %v12703_v15 }
 0x4d8   :  { %10319 = vmatpush3.msra.mxu0 %v13272_v0 }
 0x4d9   :  { %10397 = vmatpush3.msra.mxu1 %v13262_v3  ;;  %11586 = vmatprep.subr.bf16.mxu0 %v12699_v6 }
 0x4da   :  { %11622 = vmatprep.subr.bf16.mxu1 %v12699_v6  ;;  %10321 = vmatmul.mubr.f32.vlgmr.msra.gmra.mrb[4].mxu0 %v13200_v25 }
 0x4db   :  { %11588 = vmatpush3.bf16.msra.mxu0 %v13202_v26  ;;  %10399 = vmatmul.mubr.f32.vlgmr.msra.gmra.mrb[4].mxu1 %v13200_v25  ;;  %v11593_v25 = vpack.c.bf16 %v2247_v45, %v2240_v52 }
 0x4dc   :  { %11624 = vmatpush3.bf16.msra.mxu1 %v13194_v22  ;;  %11589 = vmatprep.subr.bf16.mxu0 %v12699_v6 }
 0x4dd   :  { %11625 = vmatprep.subr.bf16.mxu1 %v12699_v6  ;;  %10333 = vmatprep.mubr.msk.f32.mxu0 %vm12702_vm2, %v12703_v15 }
 0x4de   :  { %10411 = vmatprep.mubr.msk.f32.mxu1 %vm12702_vm2, %v12703_v15 }
 0x4df   :  { %11591 = vmatpush3.bf16.msra.mxu0 %v13238_v41 }
 0x4e0   :  { %11627 = vmatpush3.bf16.msra.mxu1 %v13231_v33  ;;  %10331 = vmatprep.subr.mxu0 %v12703_v15 }
 0x4e1   :  { %10409 = vmatprep.subr.mxu1 %v12703_v15 }
 0x4e3   :  { %10332 = vmatpush3.msra.mxu0 %v13254_v60 }
 0x4e4   :  { %10410 = vmatpush3.msra.mxu1 %v13247_v56  ;;  %11592 = vmatprep.subr.bf16.mxu0 %v12699_v6 }
 0x4e5   :  { %11628 = vmatprep.subr.bf16.mxu1 %v12699_v6  ;;  %10334 = vmatmul.mubr.f32.vlgmr.msra.gmra.mrb[4].mxu0 %v13217_v49 }
 0x4e6   :  { %11594 = vmatpush3.bf16.msra.mxu0 %v11593_v25  ;;  %10412 = vmatmul.mubr.f32.vlgmr.msra.gmra.mrb[4].mxu1 %v13217_v49 }
 0x4e7   :  { %11630 = vmatpush3.bf16.msra.mxu1 %v11629_v39  ;;  %11595 = vmatprep.subr.bf16.mxu0 %v12699_v6 }
 0x4e8   :  { %11631 = vmatprep.subr.bf16.mxu1 %v12699_v6  ;;  %10346 = vmatprep.mubr.msk.f32.mxu0 %vm12702_vm2, %v12703_v15 }
 0x4e9   :  { %10424 = vmatprep.mubr.msk.f32.mxu1 %vm12702_vm2, %v12703_v15 }
 0x4ea   :  { %11597 = vmatpush3.bf16.msra.mxu0 %v11596_v27 }
 0x4eb   :  { %11633 = vmatpush3.bf16.msra.mxu1 %v11632_v24  ;;  %10344 = vmatprep.subr.mxu0 %v12703_v15 }
 0x4ec   :  { %10422 = vmatprep.subr.mxu1 %v12703_v15 }
 0x4ee   :  { %10345 = vmatpush3.msra.mxu0 %v2268_v12 }
 0x4ef   :  { %10423 = vmatpush3.msra.mxu1 %v2766_v18  ;;  %11598 = vmatprep.subr.bf16.mxu0 %v12699_v6 }
 0x4f0   :  { %11634 = vmatprep.subr.bf16.mxu1 %v12699_v6  ;;  %10347 = vmatmul.mubr.f32.vlgmr.msra.gmra.mrb[4].mxu0 %v13192_v13 }
 0x4f1   :  { %11600 = vmatpush3.bf16.msra.mxu0 %v13202_v26  ;;  %10425 = vmatmul.mubr.f32.vlgmr.msra.gmra.mrb[4].mxu1 %v13192_v13 }
 0x4f2   :  { %11636 = vmatpush3.bf16.msra.mxu1 %v13194_v22  ;;  %11601 = vmatprep.subr.bf16.mxu0 %v12699_v6  ;;  %v2152_v22 = vpop.permute.xlu1 %2151 }
 0x4f3   :  { %11637 = vmatprep.subr.bf16.mxu1 %v12699_v6  ;;  %10359 = vmatprep.mubr.msk.f32.mxu0 %vm12702_vm2, %v12703_v15 }
 0x4f4   :  { %10437 = vmatprep.mubr.msk.f32.mxu1 %vm12702_vm2, %v12703_v15 }
 0x4f5   :  { %11603 = vmatpush3.bf16.msra.mxu0 %v13238_v41 }
 0x4f6   :  { %11639 = vmatpush3.bf16.msra.mxu1 %v13231_v33  ;;  %10357 = vmatprep.subr.mxu0 %v12703_v15  ;;  %v9290_v33 = vld [vmem:[%s14702_s3 + $0x8] sm:$0xff]  ;;  %s12706_s3 = smov 7  }
 0x4f7   :  { %10435 = vmatprep.subr.mxu1 %v12703_v15  ;;  %v3179_v34 = vsel %vm1132_vm6, %v9290_v33, 0 }
 0x4f8   :  { %v13406_v40 = vand.u32 4294901760, %v3179_v34 }
 0x4f9   :  { %10358 = vmatpush3.msra.mxu0 %v13254_v60 }
 0x4fa   :  { %10436 = vmatpush3.msra.mxu1 %v13247_v56  ;;  %10360 = vmatmul.mubr.f32.vlgmr.msra.gmra.mrb[4].mxu0 %v13192_v13  ;;  %v13409_v23 = vsub.f32 %v3179_v34, %v13406_v40 }
 0x4fb   :  { %10438 = vmatmul.mubr.f32.vlgmr.msra.gmra.mrb[4].mxu1 %v13192_v13  ;;  %11640 = vmatprep.subr.bf16.mxu0 %v12699_v6 }
 0x4fc   :  { %11658 = vmatprep.subr.bf16.mxu1 %v12699_v6  ;;  %10446 = vmatprep.mubr.msk.f32.mxu0 %vm12702_vm2, %v12703_v15  ;;  %v13416_v47 = vand.u32 4294901760, %v13409_v23 }
 0x4fd   :  { %10500 = vmatprep.mubr.msk.f32.mxu1 %vm12702_vm2, %v12703_v15 }
 0x4fe   :  { %v3252_v60 = vsub.f32 %v13409_v23, %v13416_v47 }
 0x500   :  { %v3253_v14 = vand.u32 4294901760, %v3252_v60 }
 0x5cd   :  { %v2651_v26 = vpop.f32.mrb[4].mxu0 }
 0x5ce   :  { %v12448_v35 = vadd.f32 %v2651_v26, %v2152_v22  ;;  %v3149_v37 = vpop.f32.mrb[4].mxu1  ;;  %v10361_v45 = vpop.f32.mrb[5].mxu0 }
 0x5cf   :  { %v12449_v17 = vadd.f32 %v3149_v37, %v2152_v22  ;;  %v10439_v49 = vpop.f32.mrb[5].mxu1 }
 0x5d0   :  { %vm3153_vm7 = vcmp.ge.f32.partialorder %v12448_v35, 0.0  ;;  %v3155_v50 = vmul.f32 0.01, %v12448_v35 }
 0x5d1   :  { %vm3154_vm8 = vcmp.ge.f32.partialorder %v12449_v17, 0.0  ;;  %v3156_v13 = vmul.f32 0.01, %v12449_v17 }
 0x5d2   :  { %v3157_v52 = vsel %vm3153_vm7, %v12448_v35, %v3155_v50 }
 0x5d3   :  { %3161 = vrot.lane.b32.xlu0 %v3157_v52, %s12700_s0  ;;  %v3158_v53 = vsel %vm3154_vm8, %v12449_v17, %v3156_v13  ;;  %v3182_v41 = vand.u32 4294901760, %v3157_v52  ;;  %v4133_v13 = vlaneseq  ;;  %vm9279_vm8 = vcmask 31744  }
 0x5d4   :  { %3163 = vrot.lane.b32.xlu1 %v3158_v53, %s12700_s0  ;;  %v3654_v42 = vand.u32 4294901760, %v3158_v53 }
 0x5d5   :  { %v13411_v43 = vsub.f32 %v3157_v52, %v3182_v41 }
 0x5d6   :  { %v13413_v46 = vsub.f32 %v3158_v53, %v3654_v42 }
 0x5d7   :  { %3167 = vrot.lane.b32.xlu0 %v3157_v52, %s12701_s14  ;;  %v3262_v57 = vand.u32 4294901760, %v13411_v43  ;;  %v4134_v52 = vshrl.u32 %v4133_v13, 7 }
 0x5d8   :  { %3169 = vrot.lane.b32.xlu1 %v3158_v53, %s12701_s14  ;;  %v3734_v61 = vand.u32 4294901760, %v13413_v46 }
 0x5d9   :  { %v3263_v10 = vsub.f32 %v13411_v43, %v3262_v57  ;;  %vm4135_vm9 = vcmp.lt.s32.totalorder %v4134_v52, 4 }
 0x5da   :  { %v3735_v16 = vsub.f32 %v13413_v46, %v3734_v61 }
 0x5db   :  { %3175 = vperm.xlu0 %12647, %v9291_v28   ;;  %v3264_v44 = vand.u32 4294901760, %v3263_v10  ;;  %v4128_v28 = vrot.slane %v13162_v63, 4 }
 0x5dc   :  { %v3736_v30 = vand.u32 4294901760, %v3735_v16 }
 0x645   :  { %v3162_v55 = vpop.permute.xlu0 %3161 }
 0x646   :  { %v3185_v56 = vand.u32 4294901760, %v3162_v55  ;;  %v3164_v58 = vpop.permute.xlu1 %3163 }
 0x647   :  { %v3657_v59 = vand.u32 4294901760, %v3164_v58 }
 0x648   :  { %v13422_v2 = vpack.c.bf16 %v3185_v56, %v3182_v41  ;;  %v13424_v3 = vsub.f32 %v3162_v55, %v3185_v56 }
 0x649   :  { %v13426_v4 = vpack.c.bf16 %v3657_v59, %v3654_v42  ;;  %v13428_v5 = vsub.f32 %v3164_v58, %v3657_v59  ;;  %v3168_v7 = vpop.permute.xlu0 %3167 }
 0x64a   :  { %v3269_v0 = vand.u32 4294901760, %v13424_v3  ;;  %v13431_v8 = vand.u32 4294901760, %v3168_v7  ;;  %v3170_v9 = vpop.permute.xlu1 %3169  ;;  %11642 = vmatpush3.bf16.msra.mxu0 %v13422_v2  ;;  %v11647_v27 = vpack.c.bf16 %v13424_v3, %v13411_v43 }
 0x64b   :  { %v3741_v11 = vand.u32 4294901760, %v13428_v5  ;;  %v13438_v12 = vand.u32 4294901760, %v3170_v9  ;;  %11660 = vmatpush3.bf16.msra.mxu1 %v13426_v4  ;;  %10444 = vmatprep.subr.mxu0 %v12703_v15  ;;  %v11665_v24 = vpack.c.bf16 %v13428_v5, %v13413_v46 }
 0x64c   :  { %v3270_v18 = vsub.f32 %v13424_v3, %v3269_v0  ;;  %v13449_v19 = vsub.f32 %v3168_v7, %v13431_v8  ;;  %10498 = vmatprep.subr.mxu1 %v12703_v15  ;;  %v11653_v22 = vpack.c.bf16 %v3269_v0, %v3262_v57 }
 0x64d   :  { %v3742_v20 = vsub.f32 %v13428_v5, %v3741_v11  ;;  %v13456_v21 = vsub.f32 %v3170_v9, %v13438_v12  ;;  %v11671_v26 = vpack.c.bf16 %v3741_v11, %v3734_v61  ;;  %v14710_v61 = vmov 3  }
 0x64e   :  { %v3271_v36 = vand.u32 4294901760, %v3270_v18  ;;  %v3276_v38 = vand.u32 4294901760, %v13449_v19  ;;  %10445 = vmatpush3.msra.mxu0 %v13431_v8  ;;  %12649 = vset.pattern.permute.xlu1 %v14710_v61 }
 0x64f   :  { %v3743_v48 = vand.u32 4294901760, %v3742_v20  ;;  %v3748_v51 = vand.u32 4294901760, %v13456_v21  ;;  %10499 = vmatpush3.msra.mxu1 %v13438_v12  ;;  %10447 = vmatmul.mubr.f32.vlgmr.msra.gmra.mrb[6].mxu0 %v3253_v14 }
 0x650   :  { %v3277_v54 = vsub.f32 %v13449_v19, %v3276_v38  ;;  %10501 = vmatmul.mubr.f32.vlgmr.msra.gmra.mrb[6].mxu1 %v3253_v14  ;;  %11643 = vmatprep.subr.bf16.mxu0 %v12699_v6  ;;  %v11644_v29 = vpack.c.bf16 %v3271_v36, %v3264_v44 }
 0x651   :  { %11661 = vmatprep.subr.bf16.mxu1 %v12699_v6  ;;  %v11662_v31 = vpack.c.bf16 %v3743_v48, %v3736_v30  ;;  %10455 = vmatprep.mubr.msk.f32.mxu0 %vm12702_vm2, %v12703_v15  ;;  %v3749_v32 = vsub.f32 %v13456_v21, %v3748_v51 }
 0x652   :  { %11645 = vmatpush3.bf16.msra.mxu0 %v11644_v29  ;;  %10509 = vmatprep.mubr.msk.f32.mxu1 %vm12702_vm2, %v12703_v15  ;;  %v3278_v25 = vand.u32 4294901760, %v3277_v54 }
 0x653   :  { %11663 = vmatpush3.bf16.msra.mxu1 %v11662_v31  ;;  %10453 = vmatprep.subr.mxu0 %v12703_v15  ;;  %v3750_v39 = vand.u32 4294901760, %v3749_v32 }
 0x654   :  { %10507 = vmatprep.subr.mxu1 %v12703_v15 }
 0x656   :  { %10454 = vmatpush3.msra.mxu0 %v3278_v25 }
 0x657   :  { %10508 = vmatpush3.msra.mxu1 %v3750_v39  ;;  %10456 = vmatmul.mubr.f32.vlgmr.msra.gmra.mrb[6].mxu0 %v13406_v40 }
 0x658   :  { %11646 = vmatprep.subr.bf16.mxu0 %v12699_v6  ;;  %10510 = vmatmul.mubr.f32.vlgmr.msra.gmra.mrb[6].mxu1 %v13406_v40 }
 0x659   :  { %11664 = vmatprep.subr.bf16.mxu1 %v12699_v6  ;;  %11648 = vmatpush3.bf16.msra.mxu0 %v11647_v27 }
 0x65a   :  { %11666 = vmatpush3.bf16.msra.mxu1 %v11665_v24  ;;  %10462 = vmatprep.subr.mxu0 %v12703_v15 }
 0x65b   :  { %10516 = vmatprep.subr.mxu1 %v12703_v15  ;;  %10464 = vmatprep.mubr.msk.f32.mxu0 %vm12702_vm2, %v12703_v15 }
 0x65c   :  { %10518 = vmatprep.mubr.msk.f32.mxu1 %vm12702_vm2, %v12703_v15 }
 0x65d   :  { %10463 = vmatpush3.msra.mxu0 %v13449_v19 }
 0x65e   :  { %10517 = vmatpush3.msra.mxu1 %v13456_v21  ;;  %11649 = vmatprep.subr.bf16.mxu0 %v12699_v6 }
 0x65f   :  { %11667 = vmatprep.subr.bf16.mxu1 %v12699_v6  ;;  %10465 = vmatmul.mubr.f32.vlgmr.msra.gmra.mrb[6].mxu0 %v13409_v23 }
 0x660   :  { %11651 = vmatpush3.bf16.msra.mxu0 %v13422_v2  ;;  %10519 = vmatmul.mubr.f32.vlgmr.msra.gmra.mrb[6].mxu1 %v13409_v23 }
 0x661   :  { %11669 = vmatpush3.bf16.msra.mxu1 %v13426_v4  ;;  %10471 = vmatprep.subr.mxu0 %v12703_v15 }
 0x662   :  { %10525 = vmatprep.subr.mxu1 %v12703_v15  ;;  %10473 = vmatprep.mubr.msk.f32.mxu0 %vm12702_vm2, %v12703_v15 }
 0x663   :  { %10527 = vmatprep.mubr.msk.f32.mxu1 %vm12702_vm2, %v12703_v15 }
 0x664   :  { %10472 = vmatpush3.msra.mxu0 %v13431_v8 }
 0x665   :  { %10526 = vmatpush3.msra.mxu1 %v13438_v12  ;;  %11652 = vmatprep.subr.bf16.mxu0 %v12699_v6 }
 0x666   :  { %11670 = vmatprep.subr.bf16.mxu1 %v12699_v6 }
 0x667   :  { %10474 = vmatmul.mubr.f32.vlgmr.msra.gmra.mrb[6].mxu0 %v13416_v47 }
 0x668   :  { %11654 = vmatpush3.bf16.msra.mxu0 %v11653_v22  ;;  %10528 = vmatmul.mubr.f32.vlgmr.msra.gmra.mrb[6].mxu1 %v13416_v47 }
 0x669   :  { %11672 = vmatpush3.bf16.msra.mxu1 %v11671_v26  ;;  %10480 = vmatprep.subr.mxu0 %v12703_v15 }
 0x66a   :  { %10534 = vmatprep.subr.mxu1 %v12703_v15  ;;  %10482 = vmatprep.mubr.msk.f32.mxu0 %vm12702_vm2, %v12703_v15 }
 0x66b   :  { %10536 = vmatprep.mubr.msk.f32.mxu1 %vm12702_vm2, %v12703_v15 }
 0x66c   :  { %10481 = vmatpush3.msra.mxu0 %v3276_v38 }
 0x66d   :  { %10535 = vmatpush3.msra.mxu1 %v3748_v51  ;;  %11655 = vmatprep.subr.bf16.mxu0 %v12699_v6 }
 0x66e   :  { %11673 = vmatprep.subr.bf16.mxu1 %v12699_v6  ;;  %v3176_v6 = vpop.permute.xlu0 %3175 }
 0x66f   :  { %10483 = vmatmul.mubr.f32.vlgmr.msra.gmra.mrb[6].mxu0 %v13406_v40 }
 0x670   :  { %11657 = vmatpush3.bf16.msra.mxu0 %v13422_v2  ;;  %10537 = vmatmul.mubr.f32.vlgmr.msra.gmra.mrb[6].mxu1 %v13406_v40 }
 0x671   :  { %11675 = vmatpush3.bf16.msra.mxu1 %v13426_v4  ;;  %10489 = vmatprep.subr.mxu0 %v12703_v15 }
 0x672   :  { %10543 = vmatprep.subr.mxu1 %v12703_v15  ;;  %10491 = vmatprep.mubr.msk.f32.mxu0 %vm12702_vm2, %v12703_v15 }
 0x673   :  { %10545 = vmatprep.mubr.msk.f32.mxu1 %vm12702_vm2, %v12703_v15  ;;  %v4127_v15 = vrot.slane %v13160_v62, 4  ;;  %v4143_v62 = vand.u32 127, %v4133_v13 }
 0x674   :  { %10490 = vmatpush3.msra.mxu0 %v13431_v8 }
 0x675   :  { %10544 = vmatpush3.msra.mxu1 %v13438_v12  ;;  %v4144_v55 = vand.u32 1, %v4143_v62  ;;  %v4165_v0 = vand.u32 2, %v4143_v62 }
 0x677   :  { %10492 = vmatmul.mubr.f32.vlgmr.msra.gmra.mrb[6].mxu0 %v13406_v40  ;;  %vm13546_vm11 = vcmp.ne.s32.totalorder %v4144_v55, 0  ;;  %vm13563_vm13 = vcmp.ne.s32.totalorder %v4165_v0, 0 }
 0x678   :  { %10546 = vmatmul.mubr.f32.vlgmr.msra.gmra.mrb[6].mxu1 %v13406_v40 }
 0x74a   :  { %v3649_v35 = vpop.f32.mrb[6].mxu0 }
 0x74b   :  { %v12450_v37 = vadd.f32 %v3649_v35, %v3176_v6  ;;  %v4121_v45 = vpop.f32.mrb[6].mxu1  ;;  %v10493_v17 = vpop.f32.mrb[7].mxu0 }
 0x74c   :  { %v12451_v49 = vadd.f32 %v4121_v45, %v3176_v6  ;;  %v10547_v50 = vpop.f32.mrb[7].mxu1 }
 0x74d   :  { %12668 = vtanh.f32 %v12450_v37 }
 0x74e   :  { %12670 = vtanh.f32 %v12451_v49 }
 0x757   :  { %v12669_v53 = vpop.eup %12668 }
 0x758   :  { %v12671_v33 = vpop.eup %12670  ;;  %v4136_v34 = vadd.f32 %v12669_v53, %v4127_v15  ;;  %v4138_v40 = vsub.f32 %v4127_v15, %v12669_v53 }
 0x759   :  { %v4137_v41 = vadd.f32 %v12671_v33, %v4128_v28  ;;  %v4139_v42 = vsub.f32 %v4128_v28, %v12671_v33 }
 0x75a   :  { %v4140_v23 = vsel %vm4135_vm9, %v4136_v34, %v4138_v40 }
 0x75b   :  { %4154 = vrot.lane.b32.xlu0 %v4140_v23, %s12706_s3  ;;  %4148 = vrot.lane.b32.xlu1 %v4140_v23, %s12700_s0  ;;  %v4141_v43 = vsel %vm4135_vm9, %v4137_v41, %v4139_v42 }
 0x75f   :  { %4150 = vrot.lane.b32.xlu1 %v4141_v43, %s12700_s0 }
 0x763   :  { %4156 = vrot.lane.b32.xlu1 %v4141_v43, %s12706_s3 }
 0x7cd   :  { %v4155_v46 = vpop.permute.xlu0 %4154  ;;  %v4149_v47 = vpop.permute.xlu1 %4148 }
 0x7ce   :  { %v4161_v63 = vsel %vm4160_vm10, %v4149_v47, %v4155_v46 }
 0x7cf   :  { %4188 = vrot.lane.b32.xlu0 %v4161_v63, %s12700_s0  ;;  %v4163_v60 = vsel %vm13546_vm11, %v4161_v63, %v4140_v23 }
 0x7d1   :  { %v4151_v56 = vpop.permute.xlu1 %4150 }
 0x7d3   :  { %4194 = vrot.lane.b32.xlu0 %v4161_v63, %s12706_s3 }
 0x7d5   :  { %v4157_v57 = vpop.permute.xlu1 %4156 }
 0x7d6   :  { %v4162_v59 = vsel %vm4160_vm10, %v4151_v56, %v4157_v57 }
 0x7d7   :  { %4169 = vrot.lane.b32.xlu0 %v4163_v60, %s12701_s14  ;;  %4190 = vrot.lane.b32.xlu1 %v4162_v59, %s12700_s0  ;;  %v4164_v2 = vsel %vm13546_vm11, %v4162_v59, %v4141_v43 }
 0x7db   :  { %4175 = vrot.lane.b32.xlu0 %v4163_v60, %s12708_s4  ;;  %4196 = vrot.lane.b32.xlu1 %v4162_v59, %s12706_s3 }
 0x7df   :  { %4171 = vrot.lane.b32.xlu1 %v4164_v2, %s12701_s14 }
 0x7e3   :  { %4177 = vrot.lane.b32.xlu1 %v4164_v2, %s12708_s4 }
 0x841   :  { %v4189_v3 = vpop.permute.xlu0 %4188 }
 0x845   :  { %v4195_v4 = vpop.permute.xlu0 %4194 }
 0x846   :  { %v4200_v5 = vsel %vm4160_vm10, %v4189_v3, %v4195_v4 }
 0x847   :  { %v4202_v7 = vsel %vm13546_vm11, %v4200_v5, %v4161_v63 }
 0x848   :  { %4206 = vrot.lane.b32.xlu0 %v4202_v7, %s12701_s14 }
 0x849   :  { %v4170_v8 = vpop.permute.xlu0 %4169  ;;  %v4191_v9 = vpop.permute.xlu1 %4190 }
 0x84c   :  { %4212 = vrot.lane.b32.xlu0 %v4202_v7, %s12708_s4 }
 0x84d   :  { %v4176_v11 = vpop.permute.xlu0 %4175  ;;  %v4197_v12 = vpop.permute.xlu1 %4196 }
 0x84e   :  { %v4182_v14 = vsel %vm4181_vm12, %v4170_v8, %v4176_v11  ;;  %v4201_v16 = vsel %vm4160_vm10, %v4191_v9, %v4197_v12  ;;  %v4222_v9 = vld [vmem:[%s14703_s5] sm:$0xff] }
 0x84f   :  { %v13571_v18 = vsel %vm13563_vm13, %v4182_v14, %v4163_v60  ;;  %v4203_v19 = vsel %vm13546_vm11, %v4201_v16, %v4162_v59  ;;  %v4362_v11 = vsel %vm4360_vm14, %v4222_v9, 0 }
 0x850   :  { %14739 = vst [vmem:[#allocation2_spill] sm:$0xff] %v13571_v18  ;;  %4244 = vperm.xlu0 %12647, %v13571_v18   ;;  %4208 = vrot.lane.b32.xlu1 %v4203_v19, %s12701_s14  ;;  %v13650_v16 = vand.u32 4294901760, %v4362_v11 }
 0x851   :  { %v4172_v20 = vpop.permute.xlu1 %4171 }
 0x854   :  { %4214 = vrot.lane.b32.xlu1 %v4203_v19, %s12708_s4 }
 0x855   :  { %v4178_v21 = vpop.permute.xlu1 %4177 }
 0x856   :  { %v4183_v36 = vsel %vm4181_vm12, %v4172_v20, %v4178_v21  ;;  %v13654_v21 = vsub.f32 %v4362_v11, %v13650_v16 }
 0x857   :  { %v13580_v38 = vsel %vm13563_vm13, %v4183_v36, %v4164_v2 }
 0x858   :  { %14740 = vst [vmem:[#allocation3_spill] sm:$0xff] %v13580_v38  ;;  %4271 = vperm.xlu1 %12649, %v13580_v38   ;;  %4254 = vperm.xlu0 %12647, %v13580_v38  }
 0x85c   :  { %12648 = vset.pattern.permute.xlu0 %v14710_v61  ;;  %12650 = vset.pattern.permute.xlu1 %v14708_v1 }
 0x85d   :  { %4263 = vperm.xlu0 %12648, %v13571_v18  }
 0x8ba   :  { %v4207_v44 = vpop.permute.xlu0 %4206 }
 0x8be   :  { %v4213_v48 = vpop.permute.xlu0 %4212 }
 0x8bf   :  { %v4218_v51 = vsel %vm4181_vm12, %v4207_v44, %v4213_v48  ;;  %v13660_v44 = vand.u32 4294901760, %v13654_v21 }
 0x8c0   :  { %v13590_v30 = vsel %vm13563_vm13, %v4218_v51, %v4202_v7 }
 0x8c1   :  { %14741 = vst [vmem:[#allocation4_spill] sm:$0xff] %v13590_v30  ;;  %4249 = vperm.xlu1 %12650, %v13590_v30   ;;  %v4445_v48 = vsub.f32 %v13654_v21, %v13660_v44 }
 0x8c2   :  { %v4209_v54 = vpop.permute.xlu1 %4208 }
 0x8c3   :  { %v4446_v51 = vand.u32 4294901760, %v4445_v48 }
 0x8c5   :  { %10568 = vmatprep.mubr.f32.mxu0 %v4446_v51  ;;  %10706 = vmatprep.mubr.f32.mxu1 %v4446_v51 }
 0x8c6   :  { %v4215_v29 = vpop.permute.xlu1 %4214 }
 0x8c7   :  { %v4219_v31 = vsel %vm4181_vm12, %v4209_v54, %v4215_v29 }
 0x8c8   :  { %v13596_v32 = vsel %vm13563_vm13, %v4219_v31, %v4203_v19 }
 0x8c9   :  { %14742 = vst [vmem:[#allocation5_spill] sm:$0xff] %v13596_v32  ;;  %4275 = vperm.xlu0 %12648, %v13596_v32   ;;  %4259 = vperm.xlu1 %12650, %v13596_v32  }
 0x8cd   :  { %4280 = vrot.lane.b32.xlu0 %v13590_v30, %s12698_s13  ;;  %12651 = vset.pattern.permute.xlu1 %v14710_v61 }
 0x8ce   :  { %4267 = vperm.xlu1 %12651, %v13590_v30   ;;  %12653 = vset.pattern.permute.xlu0 %v14708_v1 }
 0x8cf   :  { %v4245_v25 = vpop.permute.xlu0 %4244 }
 0x8d1   :  { %4284 = vrot.lane.b32.xlu0 %v13596_v32, %s12698_s13 }
 0x8d2   :  { %4278 = vrot.lane.b32.xlu1 %v13571_v18, %s12698_s13 }
 0x8d3   :  { %12652 = vset.pattern.permute.xlu1 %v14708_v1 }
 0x8d6   :  { %4282 = vrot.lane.b32.xlu1 %v13580_v38, %s12698_s13 }
 0x8d7   :  { %v4255_v39 = vpop.permute.xlu0 %4254  ;;  %v4272_v27 = vpop.permute.xlu1 %4271 }
 0x8dc   :  { %v4264_v24 = vpop.permute.xlu0 %4263 }
 0x940   :  { %v4250_v22 = vpop.permute.xlu1 %4249 }
 0x948   :  { %v4276_v26 = vpop.permute.xlu0 %4275  ;;  %v4260_v6 = vpop.permute.xlu1 %4259 }
 0x94c   :  { %v4281_v35 = vpop.permute.xlu0 %4280 }
 0x94d   :  { %v4291_v37 = vsel %vm70_vm0, %v4250_v22, %v4281_v35  ;;  %v4268_v45 = vpop.permute.xlu1 %4267 }
 0x94e   :  { %v4295_v17 = vsel %vm4160_vm10, %v4291_v37, %v4268_v45 }
 0x94f   :  { %v4371_v49 = vand.u32 4294901760, %v4295_v17  ;;  %4304 = vrot.lane.b32.xlu0 %v4295_v17, %s12700_s0 }
 0x950   :  { %v4285_v50 = vpop.permute.xlu0 %4284 }
 0x951   :  { %v4471_v13 = vsub.f32 %v4295_v17, %v4371_v49  ;;  %v4293_v52 = vsel %vm70_vm0, %v4260_v6, %v4285_v50  ;;  %v4279_v15 = vpop.permute.xlu1 %4278 }
 0x952   :  { %v4297_v53 = vsel %vm4160_vm10, %v4293_v52, %v4276_v26  ;;  %v4290_v28 = vsel %vm70_vm0, %v4245_v25, %v4279_v15 }
 0x953   :  { %v4977_v33 = vand.u32 4294901760, %v4297_v53  ;;  %v4294_v34 = vsel %vm4160_vm10, %v4290_v28, %v4264_v24  ;;  %4308 = vrot.lane.b32.xlu0 %v4297_v53, %s12700_s0  ;;  %v4472_v40 = vand.u32 4294901760, %v4471_v13 }
 0x954   :  { %v4368_v41 = vand.u32 4294901760, %v4294_v34  ;;  %4302 = vrot.lane.b32.xlu1 %v4294_v34, %s12700_s0 }
 0x955   :  { %v4283_v42 = vpop.permute.xlu1 %4282  ;;  %v5077_v23 = vsub.f32 %v4297_v53, %v4977_v33  ;;  %v4473_v63 = vsub.f32 %v4471_v13, %v4472_v40 }
 0x956   :  { %v13621_v43 = vpack.c.bf16 %v4371_v49, %v4368_v41  ;;  %v4292_v62 = vsel %vm70_vm0, %v4255_v39, %v4283_v42  ;;  %v4464_v46 = vsub.f32 %v4294_v34, %v4368_v41 }
 0x957   :  { %v4296_v47 = vsel %vm4160_vm10, %v4292_v62, %v4272_v27  ;;  %4316 = vrot.lane.b32.xlu0 %v4295_v17, %s12701_s14  ;;  %v5078_v58 = vand.u32 4294901760, %v5077_v23  ;;  %v4474_v4 = vand.u32 4294901760, %v4473_v63 }
 0x958   :  { %v4974_v55 = vand.u32 4294901760, %v4296_v47  ;;  %11677 = vmatprep.subr.bf16.mxu0 %v13621_v43  ;;  %4306 = vrot.lane.b32.xlu1 %v4296_v47, %s12700_s0  ;;  %v4465_v56 = vand.u32 4294901760, %v4464_v46  ;;  %v13628_v57 = vpack.c.bf16 %v4471_v13, %v4464_v46  ;;  %v4223_v13 = vld [vmem:[%s14703_s5 + $0x8] sm:$0xff] }
 0x959   :  { %11679 = vmatpush3.bf16.msra.mxu0 %v13621_v43  ;;  %v5079_v0 = vsub.f32 %v5077_v23, %v5078_v58  ;;  %v4365_v41 = vsel %vm4360_vm14, %v4223_v13, 0 }
 0x95a   :  { %v13631_v59 = vpack.c.bf16 %v4977_v33, %v4974_v55  ;;  %v4466_v60 = vsub.f32 %v4464_v46, %v4465_v56  ;;  %v5070_v2 = vsub.f32 %v4296_v47, %v4974_v55  ;;  %v13633_v3 = vpack.c.bf16 %v4472_v40, %v4465_v56  ;;  %v4225_v46 = vld [vmem:[%s14704_s6 + $0x8] sm:$0xff] }
 0x95b   :  { %4320 = vrot.lane.b32.xlu0 %v4297_v53, %s12701_s14  ;;  %v5080_v20 = vand.u32 4294901760, %v5079_v0 }
 0x95c   :  { %4314 = vrot.lane.b32.xlu1 %v4294_v34, %s12701_s14  ;;  %11797 = vmatprep.subr.bf16.mxu1 %v13631_v59  ;;  %v4467_v5 = vand.u32 4294901760, %v4466_v60  ;;  %v5071_v7 = vand.u32 4294901760, %v5070_v2  ;;  %v13638_v8 = vpack.c.bf16 %v5077_v23, %v5070_v2  ;;  %v13712_v60 = vand.u32 4294901760, %v4365_v41 }
 0x95d   :  { %11799 = vmatpush3.bf16.msra.mxu1 %v13631_v59 }
 0x95e   :  { %v13644_v10 = vpack.c.bf16 %v4474_v4, %v4467_v5  ;;  %v5072_v12 = vsub.f32 %v5070_v2, %v5071_v7  ;;  %v13647_v14 = vpack.c.bf16 %v5078_v58, %v5071_v7  ;;  %v13731_v48 = vsub.f32 %v4365_v41, %v13712_v60 }
 0x95f   :  { %4328 = vrot.lane.b32.xlu0 %v4295_v17, %s12704_s17 }
 0x960   :  { %14743 = vst [vmem:[#allocation6_spill] sm:$0xff] %v13647_v14  ;;  %4318 = vrot.lane.b32.xlu1 %v4296_v47, %s12701_s14  ;;  %v5073_v19 = vand.u32 4294901760, %v5072_v12 }
 0x962   :  { %v13656_v36 = vpack.c.bf16 %v5080_v20, %v5073_v19 }
 0x963   :  { %4332 = vrot.lane.b32.xlu0 %v4297_v53, %s12704_s17 }
 0x964   :  { %4326 = vrot.lane.b32.xlu1 %v4294_v34, %s12704_s17 }
 0x967   :  { %4340 = vrot.lane.b32.xlu0 %v4295_v17, %s12705_s18 }
 0x968   :  { %4330 = vrot.lane.b32.xlu1 %v4296_v47, %s12704_s17 }
 0x96b   :  { %4344 = vrot.lane.b32.xlu0 %v4297_v53, %s12705_s18 }
 0x96c   :  { %4338 = vrot.lane.b32.xlu1 %v4294_v34, %s12705_s18 }
 0x96f   :  { %4357 = vperm.xlu0 %12653, %v4225_v46  }
 0x970   :  { %4342 = vrot.lane.b32.xlu1 %v4296_v47, %s12705_s18  ;;  %v4224_v47 = vld [vmem:[%s14704_s6] sm:$0xff] }
 0x974   :  { %4352 = vperm.xlu1 %12652, %v4224_v47  }
 0x9c1   :  { %v4305_v54 = vpop.permute.xlu0 %4304 }
 0x9c2   :  { %v4377_v29 = vand.u32 4294901760, %v4305_v54 }
 0x9c4   :  { %v13670_v39 = vsub.f32 %v4305_v54, %v4377_v29 }
 0x9c5   :  { %v4309_v31 = vpop.permute.xlu0 %4308 }
 0x9c6   :  { %v4303_v25 = vpop.permute.xlu1 %4302  ;;  %v4983_v24 = vand.u32 4294901760, %v4309_v31  ;;  %v4486_v37 = vand.u32 4294901760, %v13670_v39 }
 0x9c7   :  { %v4374_v27 = vand.u32 4294901760, %v4303_v25 }
 0x9c8   :  { %v13679_v49 = vsub.f32 %v4309_v31, %v4983_v24 }
 0x9c9   :  { %v13672_v22 = vpack.c.bf16 %v4377_v29, %v4374_v27  ;;  %v13674_v26 = vsub.f32 %v4303_v25, %v4374_v27  ;;  %v4317_v6 = vpop.permute.xlu0 %4316 }
 0x9ca   :  { %v4307_v35 = vpop.permute.xlu1 %4306  ;;  %v4383_v50 = vand.u32 4294901760, %v4317_v6  ;;  %v14712_v42 = vand.u32 4294901760, %v13679_v49 }
 0x9cb   :  { %v4479_v45 = vand.u32 4294901760, %v13674_v26  ;;  %v4980_v17 = vand.u32 4294901760, %v4307_v35  ;;  %11681 = vmatprep.subr.bf16.mxu0 %v13672_v22 }
 0x9cc   :  { %11683 = vmatpush3.bf16.msra.mxu0 %v13672_v22  ;;  %v13699_v23 = vsub.f32 %v4317_v6, %v4383_v50 }
 0x9cd   :  { %v13685_v52 = vpack.c.bf16 %v4983_v24, %v4980_v17  ;;  %v13687_v15 = vsub.f32 %v4307_v35, %v4980_v17  ;;  %v4321_v53 = vpop.permute.xlu0 %4320  ;;  %v13693_v28 = vpack.c.bf16 %v4486_v37, %v4479_v45 }
 0x9ce   :  { %v4315_v33 = vpop.permute.xlu1 %4314  ;;  %v4989_v62 = vand.u32 4294901760, %v4321_v53  ;;  %v4500_v7 = vand.u32 4294901760, %v13699_v23 }
 0x9cf   :  { %v5085_v34 = vand.u32 4294901760, %v13687_v15  ;;  %v4380_v40 = vand.u32 4294901760, %v4315_v33  ;;  %11801 = vmatprep.subr.bf16.mxu1 %v13685_v52 }
 0x9d0   :  { %11803 = vmatpush3.bf16.msra.mxu1 %v13685_v52  ;;  %v13723_v0 = vsub.f32 %v4321_v53, %v4989_v62 }
 0x9d1   :  { %v13708_v63 = vpack.c.bf16 %v4383_v50, %v4380_v40  ;;  %v13710_v55 = vsub.f32 %v4315_v33, %v4380_v40  ;;  %v4329_v56 = vpop.permute.xlu0 %4328  ;;  %v13718_v2 = vpack.c.bf16 %v14712_v42, %v5085_v34  ;;  %v13746_v50 = vand.u32 4294901760, %v13731_v48 }
 0x9d2   :  { %v4319_v58 = vpop.permute.xlu1 %4318  ;;  %v4389_v9 = vand.u32 4294901760, %v4329_v56  ;;  %v5106_v31 = vand.u32 4294901760, %v13723_v0  ;;  %v5086_v42 = vsub.f32 %v13687_v15, %v5085_v34 }
 0x9d3   :  { %14744 = vst [vmem:[#allocation7_spill] sm:$0xff] %v13718_v2  ;;  %v4493_v4 = vand.u32 4294901760, %v13710_v55  ;;  %v4986_v5 = vand.u32 4294901760, %v4319_v58  ;;  %11685 = vmatprep.subr.bf16.mxu0 %v13708_v63 }
 0x9d4   :  { %11687 = vmatpush3.bf16.msra.mxu0 %v13708_v63  ;;  %v13738_v25 = vsub.f32 %v4329_v56, %v4389_v9  ;;  %v5087_v2 = vand.u32 4294901760, %v5086_v42 }
 0x9d5   :  { %v13726_v11 = vpack.c.bf16 %v4989_v62, %v4986_v5  ;;  %v13728_v12 = vsub.f32 %v4319_v58, %v4986_v5  ;;  %v4333_v19 = vpop.permute.xlu0 %4332  ;;  %v13733_v51 = vpack.c.bf16 %v4500_v7, %v4493_v4  ;;  %v4480_v58 = vsub.f32 %v13674_v26, %v4479_v45 }
 0x9d6   :  { %v4327_v20 = vpop.permute.xlu1 %4326  ;;  %v4995_v27 = vand.u32 4294901760, %v4333_v19  ;;  %v4514_v40 = vand.u32 4294901760, %v13738_v25 }
 0x9d7   :  { %14745 = vst [vmem:[#allocation8_spill] sm:$0xff] %v13733_v51  ;;  %v5099_v54 = vand.u32 4294901760, %v13728_v12  ;;  %v4386_v29 = vand.u32 4294901760, %v4327_v20  ;;  %11805 = vmatprep.subr.bf16.mxu1 %v13726_v11  ;;  %v4481_v38 = vand.u32 4294901760, %v4480_v58 }
 0x9d8   :  { %11807 = vmatpush3.bf16.msra.mxu1 %v13726_v11  ;;  %v13753_v41 = vsub.f32 %v4333_v19, %v4995_v27  ;;  %v4515_v42 = vsub.f32 %v13738_v25, %v4514_v40 }
 0x9d9   :  { %v13741_v24 = vpack.c.bf16 %v4389_v9, %v4386_v29  ;;  %v13743_v6 = vsub.f32 %v4327_v20, %v4386_v29  ;;  %v4341_v35 = vpop.permute.xlu0 %4340  ;;  %v13748_v13 = vpack.c.bf16 %v5106_v31, %v5099_v54  ;;  %v4455_v9 = vsub.f32 %v13731_v48, %v13746_v50 }
 0x9da   :  { %v4331_v17 = vpop.permute.xlu1 %4330  ;;  %v4395_v62 = vand.u32 4294901760, %v4341_v35 }
 0x9db   :  { %14746 = vst [vmem:[#allocation9_spill] sm:$0xff] %v13748_v13  ;;  %v4507_v53 = vand.u32 4294901760, %v13743_v6  ;;  %v4992_v33 = vand.u32 4294901760, %v4331_v17  ;;  %11689 = vmatprep.subr.bf16.mxu0 %v13741_v24  ;;  %v4456_v30 = vand.u32 4294901760, %v4455_v9 }
 0x9dc   :  { %11691 = vmatpush3.bf16.msra.mxu0 %v13741_v24 }
 0x9dd   :  { %v13756_v46 = vpack.c.bf16 %v4995_v27, %v4992_v33  ;;  %v13758_v47 = vsub.f32 %v4331_v17, %v4992_v33  ;;  %v4345_v56 = vpop.permute.xlu0 %4344  ;;  %v13765_v20 = vpack.c.bf16 %v4514_v40, %v4507_v53  ;;  %v4487_v27 = vsub.f32 %v13670_v39, %v4486_v37 }
 0x9de   :  { %v4339_v5 = vpop.permute.xlu1 %4338  ;;  %v5001_v29 = vand.u32 4294901760, %v4345_v56  ;;  %v5120_v17 = vand.u32 4294901760, %v13753_v41  ;;  %v13773_v33 = vsub.f32 %v4341_v35, %v4395_v62  ;;  %v4494_v37 = vsub.f32 %v13710_v55, %v4493_v4 }
 0x9df   :  { %14747 = vst [vmem:[#allocation10_spill] sm:$0xff] %v13765_v20  ;;  %v5113_v19 = vand.u32 4294901760, %v13758_v47  ;;  %v4392_v1 = vand.u32 4294901760, %v4339_v5  ;;  %11809 = vmatprep.subr.bf16.mxu1 %v13756_v46  ;;  %v4488_v58 = vand.u32 4294901760, %v4487_v27 }
 0x9e0   :  { %11811 = vmatpush3.bf16.msra.mxu1 %v13756_v46  ;;  %v13786_v13 = vsub.f32 %v4345_v56, %v5001_v29  ;;  %v4528_v34 = vand.u32 4294901760, %v13773_v33  ;;  %v5100_v56 = vsub.f32 %v13728_v12, %v5099_v54 }
 0x9e1   :  { %v13776_v45 = vpack.c.bf16 %v4395_v62, %v4392_v1  ;;  %v13778_v61 = vsub.f32 %v4339_v5, %v4392_v1  ;;  %v13783_v18 = vpack.c.bf16 %v5120_v17, %v5113_v19  ;;  %v14749_v1 = vand.u32 4294901760, %v13679_v49 }
 0x9e2   :  { %v4343_v32 = vpop.permute.xlu1 %4342  ;;  %v4501_v5 = vsub.f32 %v13699_v23, %v4500_v7  ;;  %v5134_v14 = vand.u32 4294901760, %v13786_v13  ;;  %v4495_v7 = vand.u32 4294901760, %v4494_v37  ;;  %v5114_v37 = vsub.f32 %v13758_v47, %v5113_v19 }
 0x9e3   :  { %14748 = vst [vmem:[#allocation11_spill] sm:$0xff] %v13783_v18  ;;  %v4521_v35 = vand.u32 4294901760, %v13778_v61  ;;  %v4998_v20 = vand.u32 4294901760, %v4343_v32  ;;  %11693 = vmatprep.subr.bf16.mxu0 %v13776_v45  ;;  %v5093_v62 = vsub.f32 %v13679_v49, %v14749_v1  ;;  %v11700_v18 = vpack.c.bf16 %v4488_v58, %v4481_v38 }
 0x9e4   :  { %11695 = vmatpush3.bf16.msra.mxu0 %v13776_v45  ;;  %v4508_v1 = vsub.f32 %v13743_v6, %v4507_v53  ;;  %v4502_v54 = vand.u32 4294901760, %v4501_v5  ;;  %v4529_v5 = vsub.f32 %v13773_v33, %v4528_v34 }
 0x9e5   :  { %v13796_v9 = vpack.c.bf16 %v5001_v29, %v4998_v20  ;;  %v13798_v4 = vsub.f32 %v4343_v32, %v4998_v20  ;;  %11697 = vmatprep.subr.bf16.mxu0 %v13644_v10  ;;  %v13802_v51 = vpack.c.bf16 %v4528_v34, %v4521_v35  ;;  %v5107_v32 = vsub.f32 %v13723_v0, %v5106_v31 }
 0x9e6   :  { %v5094_v38 = vand.u32 4294901760, %v5093_v62  ;;  %v5101_v29 = vand.u32 4294901760, %v5100_v56  ;;  %v4522_v31 = vsub.f32 %v13778_v61, %v4521_v35  ;;  %v4509_v58 = vand.u32 4294901760, %v4508_v1 }
 0x9e7   :  { %v5127_v27 = vand.u32 4294901760, %v13798_v4  ;;  %11813 = vmatprep.subr.bf16.mxu1 %v13796_v9  ;;  %10569 = vmatmul.mubr.f32.vlgmr.msra.gmra.mrb[8].mxu0 %v4456_v30  ;;  %v5108_v40 = vand.u32 4294901760, %v5107_v32  ;;  %v5121_v62 = vsub.f32 %v13753_v41, %v5120_v17 }
 0x9e8   :  { %11699 = vmatpush3.bf16.msra.mxu0 %v13644_v10  ;;  %11815 = vmatpush3.bf16.msra.mxu1 %v13796_v9  ;;  %v11820_v20 = vpack.c.bf16 %v5094_v38, %v5087_v2  ;;  %v11704_v10 = vpack.c.bf16 %v4502_v54, %v4495_v7  ;;  %v4516_v2 = vand.u32 4294901760, %v4515_v42  ;;  %v5115_v7 = vand.u32 4294901760, %v5114_v37 }
 0x9e9   :  { %11701 = vmatprep.subr.bf16.mxu0 %v11700_v18  ;;  %11817 = vmatprep.subr.bf16.mxu1 %v13656_v36  ;;  %v13813_v53 = vpack.c.bf16 %v5134_v14, %v5127_v27  ;;  %v11824_v56 = vpack.c.bf16 %v5108_v40, %v5101_v29  ;;  %v5128_v19 = vsub.f32 %v13798_v4, %v5127_v27  ;;  %v5122_v17 = vand.u32 4294901760, %v5121_v62 }
 0x9ea   :  { %10591 = vmatprep.mubr.f32.mxu0 %v13650_v16  ;;  %v11708_v35 = vpack.c.bf16 %v4516_v2, %v4509_v58  ;;  %v11724_v42 = vpack.c.bf16 %v13699_v23, %v13710_v55  ;;  %v11840_v54 = vpack.c.bf16 %v13679_v49, %v13687_v15  ;;  %v14752_v49 = vld [vmem:[#allocation7_spill] sm:$0xff]  ;;  %v14754_v15 = vld [vmem:[#allocation9_spill] sm:$0xff] }
 0x9eb   :  { %10707 = vmatmul.mubr.f32.vlgmr.msra.gmra.mrb[8].mxu1 %v4456_v30  ;;  %v4523_v30 = vand.u32 4294901760, %v4522_v31  ;;  %v11828_v1 = vpack.c.bf16 %v5122_v17, %v5115_v7  ;;  %v5129_v32 = vand.u32 4294901760, %v5128_v19 }
 0x9ec   :  { %11703 = vmatpush3.bf16.msra.mxu0 %v11700_v18  ;;  %11819 = vmatpush3.bf16.msra.mxu1 %v13656_v36  ;;  %v5135_v18 = vsub.f32 %v13786_v13, %v5134_v14  ;;  %v4530_v36 = vand.u32 4294901760, %v4529_v5  ;;  %v11720_v14 = vpack.c.bf16 %v13670_v39, %v13674_v26  ;;  %v11844_v39 = vpack.c.bf16 %v13723_v0, %v13728_v12 }
 0x9ed   :  { %11705 = vmatprep.subr.bf16.mxu0 %v11704_v10  ;;  %11821 = vmatprep.subr.bf16.mxu1 %v11820_v20  ;;  %v11732_v26 = vpack.c.bf16 %v13773_v33, %v13778_v61  ;;  %v14750_v61 = vld [vmem:[#allocation6_spill] sm:$0xff] }
 0x9ee   :  { %10729 = vmatprep.mubr.f32.mxu1 %v13650_v16  ;;  %v11712_v34 = vpack.c.bf16 %v4530_v36, %v4523_v30  ;;  %v5136_v38 = vand.u32 4294901760, %v5135_v18 }
 0x9f0   :  { %11707 = vmatpush3.bf16.msra.mxu0 %v11704_v10  ;;  %11823 = vmatpush3.bf16.msra.mxu1 %v11820_v20  ;;  %v11832_v27 = vpack.c.bf16 %v5136_v38, %v5129_v32 }
 0x9f1   :  { %11709 = vmatprep.subr.bf16.mxu0 %v11708_v35  ;;  %11825 = vmatprep.subr.bf16.mxu1 %v11824_v56 }
 0x9f4   :  { %11711 = vmatpush3.bf16.msra.mxu0 %v11708_v35  ;;  %11827 = vmatpush3.bf16.msra.mxu1 %v11824_v56 }
 0x9f5   :  { %11713 = vmatprep.subr.bf16.mxu0 %v11712_v34  ;;  %11829 = vmatprep.subr.bf16.mxu1 %v11828_v1 }
 0x9f8   :  { %11715 = vmatpush3.bf16.msra.mxu0 %v11712_v34  ;;  %11831 = vmatpush3.bf16.msra.mxu1 %v11828_v1 }
 0x9f9   :  { %11717 = vmatprep.subr.bf16.mxu0 %v13628_v57  ;;  %11833 = vmatprep.subr.bf16.mxu1 %v11832_v27 }
 0x9fb   :  { %10592 = vmatmul.mubr.f32.vlgmr.msra.gmra.mrb[8].mxu0 %v13712_v60 }
 0x9fc   :  { %11719 = vmatpush3.bf16.msra.mxu0 %v13628_v57  ;;  %11835 = vmatpush3.bf16.msra.mxu1 %v11832_v27  ;;  %v11728_v57 = vpack.c.bf16 %v13738_v25, %v13743_v6 }
 0x9fd   :  { %11721 = vmatprep.subr.bf16.mxu0 %v11720_v14  ;;  %11837 = vmatprep.subr.bf16.mxu1 %v13638_v8 }
 0x9fe   :  { %10614 = vmatprep.mubr.f32.mxu0 %v13654_v21 }
 0x9ff   :  { %10730 = vmatmul.mubr.f32.vlgmr.msra.gmra.mrb[8].mxu1 %v13712_v60 }
 0xa00   :  { %11723 = vmatpush3.bf16.msra.mxu0 %v11720_v14  ;;  %11839 = vmatpush3.bf16.msra.mxu1 %v13638_v8  ;;  %v11848_v8 = vpack.c.bf16 %v13753_v41, %v13758_v47 }
 0xa01   :  { %11725 = vmatprep.subr.bf16.mxu0 %v11724_v42  ;;  %11841 = vmatprep.subr.bf16.mxu1 %v11840_v54 }
 0xa02   :  { %10752 = vmatprep.mubr.f32.mxu1 %v13654_v21  ;;  %v11852_v21 = vpack.c.bf16 %v13786_v13, %v13798_v4 }
 0xa04   :  { %11727 = vmatpush3.bf16.msra.mxu0 %v11724_v42  ;;  %11843 = vmatpush3.bf16.msra.mxu1 %v11840_v54  ;;  %v4228_v54 = vld [vmem:[%s14706_s8] sm:$0xff] }
 0xa05   :  { %11729 = vmatprep.subr.bf16.mxu0 %v11728_v57  ;;  %11845 = vmatprep.subr.bf16.mxu1 %v11844_v39 }
 0xa08   :  { %11731 = vmatpush3.bf16.msra.mxu0 %v11728_v57  ;;  %11847 = vmatpush3.bf16.msra.mxu1 %v11844_v39  ;;  %v4229_v39 = vld [vmem:[%s14706_s8 + $0x8] sm:$0xff] }
 0xa09   :  { %11733 = vmatprep.subr.bf16.mxu0 %v11732_v26  ;;  %11849 = vmatprep.subr.bf16.mxu1 %v11848_v8 }
 0xa0c   :  { %11735 = vmatpush3.bf16.msra.mxu0 %v11732_v26  ;;  %11851 = vmatpush3.bf16.msra.mxu1 %v11848_v8  ;;  %v14756_v26 = vmov 3   ;;  %v4227_v8 = vld [vmem:[%s14705_s7 + $0x8] sm:$0xff] }
 0xa0d   :  { %11737 = vmatprep.subr.bf16.mxu0 %v13621_v43  ;;  %11853 = vmatprep.subr.bf16.mxu1 %v11852_v21 }
 0xa0f   :  { %10615 = vmatmul.mubr.f32.vlgmr.msra.gmra.mrb[8].mxu0 %v13731_v48 }
 0xa10   :  { %11739 = vmatpush3.bf16.msra.mxu0 %v13621_v43  ;;  %11855 = vmatpush3.bf16.msra.mxu1 %v11852_v21 }
 0xa11   :  { %11741 = vmatprep.subr.bf16.mxu0 %v13672_v22  ;;  %11857 = vmatprep.subr.bf16.mxu1 %v13631_v59 }
 0xa12   :  { %10637 = vmatprep.mubr.f32.mxu0 %v13660_v44 }
 0xa13   :  { %10753 = vmatmul.mubr.f32.vlgmr.msra.gmra.mrb[8].mxu1 %v13731_v48 }
 0xa14   :  { %11743 = vmatpush3.bf16.msra.mxu0 %v13672_v22  ;;  %11859 = vmatpush3.bf16.msra.mxu1 %v13631_v59 }
 0xa15   :  { %11745 = vmatprep.subr.bf16.mxu0 %v13708_v63  ;;  %11861 = vmatprep.subr.bf16.mxu1 %v13685_v52 }
 0xa16   :  { %10775 = vmatprep.mubr.f32.mxu1 %v13660_v44  ;;  %v14751_v44 = vld [vmem:[#allocation8_spill] sm:$0xff] }
 0xa18   :  { %11747 = vmatpush3.bf16.msra.mxu0 %v13708_v63  ;;  %11863 = vmatpush3.bf16.msra.mxu1 %v13685_v52 }
 0xa19   :  { %11749 = vmatprep.subr.bf16.mxu0 %v13741_v24  ;;  %11865 = vmatprep.subr.bf16.mxu1 %v13726_v11 }
 0xa1c   :  { %11751 = vmatpush3.bf16.msra.mxu0 %v13741_v24  ;;  %11867 = vmatpush3.bf16.msra.mxu1 %v13726_v11 }
 0xa1d   :  { %11753 = vmatprep.subr.bf16.mxu0 %v13776_v45  ;;  %11869 = vmatprep.subr.bf16.mxu1 %v13756_v46 }
 0xa20   :  { %11755 = vmatpush3.bf16.msra.mxu0 %v13776_v45  ;;  %11871 = vmatpush3.bf16.msra.mxu1 %v13756_v46 }
 0xa21   :  { %11757 = vmatprep.subr.bf16.mxu0 %v13633_v3  ;;  %11873 = vmatprep.subr.bf16.mxu1 %v13796_v9 }
 0xa23   :  { %10638 = vmatmul.mubr.f32.vlgmr.msra.gmra.mrb[8].mxu0 %v13746_v50 }
 0xa24   :  { %11759 = vmatpush3.bf16.msra.mxu0 %v13633_v3  ;;  %11875 = vmatpush3.bf16.msra.mxu1 %v13796_v9  ;;  %v14753_v3 = vld [vmem:[#allocation10_spill] sm:$0xff] }
 0xa25   :  { %11761 = vmatprep.subr.bf16.mxu0 %v13693_v28  ;;  %11877 = vmatprep.subr.bf16.mxu1 %v14750_v61 }
 0xa26   :  { %10660 = vmatprep.mubr.f32.mxu0 %v13650_v16 }
 0xa27   :  { %10776 = vmatmul.mubr.f32.vlgmr.msra.gmra.mrb[8].mxu1 %v13746_v50  ;;  %v4226_v50 = vld [vmem:[%s14705_s7] sm:$0xff] }
 0xa28   :  { %11763 = vmatpush3.bf16.msra.mxu0 %v13693_v28  ;;  %11879 = vmatpush3.bf16.msra.mxu1 %v14750_v61  ;;  %v14755_v28 = vld [vmem:[#allocation11_spill] sm:$0xff]  ;;  %v5634_v61 = vsel %vm5629_vm3, %v4227_v8, 0 }
 0xa29   :  { %11765 = vmatprep.subr.bf16.mxu0 %v14751_v44  ;;  %11881 = vmatprep.subr.bf16.mxu1 %v14752_v49 }
 0xa2a   :  { %10798 = vmatprep.mubr.f32.mxu1 %v13650_v16 }
 0xa2c   :  { %11767 = vmatpush3.bf16.msra.mxu0 %v14751_v44  ;;  %11883 = vmatpush3.bf16.msra.mxu1 %v14752_v49  ;;  %v13975_v44 = vand.u32 4294901760, %v5634_v61 }
 0xa2d   :  { %11769 = vmatprep.subr.bf16.mxu0 %v14753_v3  ;;  %11885 = vmatprep.subr.bf16.mxu1 %v14754_v15 }
 0xa30   :  { %11771 = vmatpush3.bf16.msra.mxu0 %v14753_v3  ;;  %11887 = vmatpush3.bf16.msra.mxu1 %v14754_v15 }
 0xa31   :  { %11773 = vmatprep.subr.bf16.mxu0 %v13802_v51  ;;  %11889 = vmatprep.subr.bf16.mxu1 %v14755_v28 }
 0xa34   :  { %11775 = vmatpush3.bf16.msra.mxu0 %v13802_v51  ;;  %11891 = vmatpush3.bf16.msra.mxu1 %v14755_v28 }
 0xa35   :  { %11777 = vmatprep.subr.bf16.mxu0 %v13621_v43  ;;  %11893 = vmatprep.subr.bf16.mxu1 %v13813_v53 }
 0xa37   :  { %10661 = vmatmul.mubr.f32.vlgmr.msra.gmra.mrb[8].mxu0 %v13712_v60 }
 0xa38   :  { %11779 = vmatpush3.bf16.msra.mxu0 %v13621_v43  ;;  %11895 = vmatpush3.bf16.msra.mxu1 %v13813_v53  ;;  %v4358_v43 = vpop.permute.xlu0 %4357 }
 0xa39   :  { %11781 = vmatprep.subr.bf16.mxu0 %v13672_v22  ;;  %11897 = vmatprep.subr.bf16.mxu1 %v13631_v59 }
 0xa3a   :  { %10683 = vmatprep.mubr.f32.mxu0 %v13650_v16 }
 0xa3b   :  { %10799 = vmatmul.mubr.f32.vlgmr.msra.gmra.mrb[8].mxu1 %v13712_v60 }
 0xa3c   :  { %11783 = vmatpush3.bf16.msra.mxu0 %v13672_v22  ;;  %11899 = vmatpush3.bf16.msra.mxu1 %v13631_v59  ;;  %v4353_v59 = vpop.permute.xlu1 %4352 }
 0xa3d   :  { %11785 = vmatprep.subr.bf16.mxu0 %v13708_v63  ;;  %11901 = vmatprep.subr.bf16.mxu1 %v13685_v52 }
 0xa3e   :  { %10821 = vmatprep.mubr.f32.mxu1 %v13650_v16 }
 0xa40   :  { %11787 = vmatpush3.bf16.msra.mxu0 %v13708_v63  ;;  %11903 = vmatpush3.bf16.msra.mxu1 %v13685_v52 }
 0xa41   :  { %11789 = vmatprep.subr.bf16.mxu0 %v13741_v24  ;;  %11905 = vmatprep.subr.bf16.mxu1 %v13726_v11 }
 0xa44   :  { %11791 = vmatpush3.bf16.msra.mxu0 %v13741_v24  ;;  %11907 = vmatpush3.bf16.msra.mxu1 %v13726_v11 }
 0xa45   :  { %11793 = vmatprep.subr.bf16.mxu0 %v13776_v45  ;;  %11909 = vmatprep.subr.bf16.mxu1 %v13756_v46 }
 0xa48   :  { %11795 = vmatpush3.bf16.msra.mxu0 %v13776_v45  ;;  %11911 = vmatpush3.bf16.msra.mxu1 %v13756_v46  ;;  %v5631_v46 = vsel %vm5629_vm3, %v4226_v50, 0 }
 0xa49   :  { %11913 = vmatprep.subr.bf16.mxu1 %v13796_v9 }
 0xa4b   :  { %10684 = vmatmul.mubr.f32.vlgmr.msra.gmra.mrb[8].mxu0 %v13712_v60 }
 0xa4c   :  { %11915 = vmatpush3.bf16.msra.mxu1 %v13796_v9  ;;  %v13929_v9 = vand.u32 4294901760, %v5631_v46 }
 0xa4e   :  { %v13935_v31 = vsub.f32 %v5631_v46, %v13929_v9 }
 0xa4f   :  { %10822 = vmatmul.mubr.f32.vlgmr.msra.gmra.mrb[8].mxu1 %v13712_v60 }
 0xa50   :  { %v13943_v56 = vand.u32 4294901760, %v13935_v31 }
 0xa52   :  { %v5710_v36 = vsub.f32 %v13935_v31, %v13943_v56 }
 0xa54   :  { %v5711_v38 = vand.u32 4294901760, %v5710_v36 }
 0xa56   :  { %10836 = vmatprep.mubr.f32.mxu0 %v5711_v38  ;;  %10926 = vmatprep.mubr.f32.mxu1 %v5711_v38 }
 0xb1e   :  { %v10685_v16 = vpop.f32.mrb[8].mxu0 }
 0xb1f   :  { %v12452_v22 = vadd.f32 %v10685_v16, %v4358_v43  ;;  %v4963_v52 = vpop.f32.mrb[9].mxu0 }
 0xb20   :  { %v12453_v23 = vadd.f32 %v4963_v52, %v4353_v59 }
 0xb21   :  { %vm5580_vm15 = vcmp.ge.f32.partialorder %v12452_v22, 0.0  ;;  %v5584_v63 = vmul.f32 0.01, %v12452_v22 }
 0xb22   :  { %vm5579_vm1 = vcmp.ge.f32.partialorder %v12453_v23, 0.0  ;;  %v5583_v55 = vmul.f32 0.01, %v12453_v23  ;;  %v10823_v0 = vpop.f32.mrb[8].mxu1 }
 0xb23   :  { %v12454_v11 = vadd.f32 %v10823_v0, %v4358_v43  ;;  %v5569_v12 = vpop.f32.mrb[9].mxu1  ;;  %v5588_v48 = vsel %vm5580_vm15, %v12452_v22, %v5584_v63 }
 0xb24   :  { %v5587_v51 = vsel %vm5579_vm1, %v12453_v23, %v5583_v55  ;;  %v12455_v25 = vadd.f32 %v5569_v12, %v4353_v59  ;;  %5597 = vrot.lane.b32.xlu1 %v5588_v48, %s12700_s0  ;;  %v5640_v24 = vand.u32 4294901760, %v5588_v48  ;;  %v13978_v59 = vsub.f32 %v5634_v61, %v13975_v44 }
 0xb25   :  { %v5637_v60 = vand.u32 4294901760, %v5587_v51  ;;  %vm5582_vm2 = vcmp.ge.f32.partialorder %v12454_v11, 0.0  ;;  %v5586_v6 = vmul.f32 0.01, %v12454_v11 }
 0xb26   :  { %vm5581_vm4 = vcmp.ge.f32.partialorder %v12455_v25, 0.0  ;;  %v5585_v13 = vmul.f32 0.01, %v12455_v25  ;;  %v5736_v41 = vsub.f32 %v5588_v48, %v5640_v24  ;;  %v13991_v12 = vand.u32 4294901760, %v13978_v59 }
 0xb27   :  { %v5729_v47 = vsub.f32 %v5587_v51, %v5637_v60  ;;  %v13927_v33 = vpack.c.bf16 %v5640_v24, %v5637_v60  ;;  %v5590_v45 = vsel %vm5582_vm2, %v12454_v11, %v5586_v6 }
 0xb28   :  { %5601 = vrot.lane.b32.xlu1 %v5590_v45, %s12700_s0  ;;  %v6194_v4 = vand.u32 4294901760, %v5590_v45  ;;  %v5589_v53 = vsel %vm5581_vm4, %v12455_v25, %v5585_v13  ;;  %v5737_v20 = vand.u32 4294901760, %v5736_v41 }
 0xb29   :  { %5599 = vrot.lane.b32.xlu0 %v5589_v53, %s12700_s0  ;;  %v6191_v29 = vand.u32 4294901760, %v5589_v53  ;;  %11917 = vmatprep.subr.bf16.mxu0 %v13927_v33  ;;  %v5730_v37 = vand.u32 4294901760, %v5729_v47  ;;  %v13938_v40 = vpack.c.bf16 %v5736_v41, %v5729_v47 }
 0xb2a   :  { %v6290_v10 = vsub.f32 %v5590_v45, %v6194_v4  ;;  %11919 = vmatpush3.bf16.msra.mxu0 %v13927_v33  ;;  %v5738_v58 = vsub.f32 %v5736_v41, %v5737_v20 }
 0xb2b   :  { %v13940_v62 = vpack.c.bf16 %v6194_v4, %v6191_v29  ;;  %v6283_v5 = vsub.f32 %v5589_v53, %v6191_v29  ;;  %v5731_v2 = vsub.f32 %v5729_v47, %v5730_v37  ;;  %v13946_v30 = vpack.c.bf16 %v5737_v20, %v5730_v37 }
 0xb2c   :  { %5609 = vrot.lane.b32.xlu1 %v5588_v48, %s12701_s14  ;;  %v5739_v19 = vand.u32 4294901760, %v5738_v58  ;;  %v6291_v35 = vand.u32 4294901760, %v6290_v10 }
 0xb2d   :  { %11989 = vmatprep.subr.bf16.mxu1 %v13940_v62  ;;  %5607 = vrot.lane.b32.xlu0 %v5587_v51, %s12701_s14  ;;  %v5732_v7 = vand.u32 4294901760, %v5731_v2  ;;  %v6284_v18 = vand.u32 4294901760, %v6283_v5  ;;  %v13952_v17 = vpack.c.bf16 %v6290_v10, %v6283_v5 }
 0xb2e   :  { %11991 = vmatpush3.bf16.msra.mxu1 %v13940_v62  ;;  %v6292_v34 = vsub.f32 %v6290_v10, %v6291_v35 }
 0xb2f   :  { %v13955_v1 = vpack.c.bf16 %v5739_v19, %v5732_v7  ;;  %v6285_v32 = vsub.f32 %v6283_v5, %v6284_v18  ;;  %v13957_v27 = vpack.c.bf16 %v6291_v35, %v6284_v18 }
 0xb30   :  { %5595 = vrot.lane.b32.xlu1 %v5587_v51, %s12700_s0  ;;  %v6293_v14 = vand.u32 4294901760, %v6292_v34 }
 0xb31   :  { %5611 = vrot.lane.b32.xlu0 %v5589_v53, %s12701_s14  ;;  %v6286_v42 = vand.u32 4294901760, %v6285_v32 }
 0xb33   :  { %v13964_v57 = vpack.c.bf16 %v6293_v14, %v6286_v42 }
 0xb34   :  { %5613 = vrot.lane.b32.xlu1 %v5590_v45, %s12701_s14  ;;  %v5720_v45 = vsub.f32 %v13978_v59, %v13991_v12 }
 0xb35   :  { %5621 = vperm.xlu0 %12653, %v4228_v54  }
 0xb36   :  { %v5721_v34 = vand.u32 4294901760, %v5720_v45  ;;  %v14759_v45 = vld [vmem:[#allocation3_spill] sm:$0xff] }
 0xb38   :  { %5626 = vperm.xlu1 %12652, %v4229_v39  }
 0xb39   :  { %12655 = vset.pattern.permute.xlu0 %v14756_v26 }
 0xb96   :  { %v5598_v21 = vpop.permute.xlu1 %5597 }
 0xb97   :  { %v5646_v28 = vand.u32 4294901760, %v5598_v21 }
 0xb99   :  { %v13986_v0 = vsub.f32 %v5598_v21, %v5646_v28 }
 0xb9a   :  { %v5602_v49 = vpop.permute.xlu1 %5601 }
 0xb9b   :  { %v6200_v3 = vand.u32 4294901760, %v5602_v49  ;;  %v5600_v15 = vpop.permute.xlu0 %5599  ;;  %v5751_v13 = vand.u32 4294901760, %v13986_v0 }
 0xb9c   :  { %v6197_v43 = vand.u32 4294901760, %v5600_v15 }
 0xb9d   :  { %v13980_v16 = vsub.f32 %v5602_v49, %v6200_v3  ;;  %v5752_v19 = vsub.f32 %v13986_v0, %v5751_v13 }
 0xb9e   :  { %v13982_v22 = vpack.c.bf16 %v6200_v3, %v6197_v43  ;;  %v13984_v52 = vsub.f32 %v5600_v15, %v6197_v43  ;;  %v5610_v23 = vpop.permute.xlu1 %5609 }
 0xb9f   :  { %v5652_v63 = vand.u32 4294901760, %v5610_v23  ;;  %v5608_v55 = vpop.permute.xlu0 %5607  ;;  %v6305_v48 = vand.u32 4294901760, %v13980_v16  ;;  %v5753_v61 = vand.u32 4294901760, %v5752_v19 }
 0xba0   :  { %v5649_v11 = vand.u32 4294901760, %v5608_v55  ;;  %11993 = vmatprep.subr.bf16.mxu1 %v13982_v22  ;;  %v6298_v51 = vand.u32 4294901760, %v13984_v52 }
 0xba1   :  { %11995 = vmatpush3.bf16.msra.mxu1 %v13982_v22  ;;  %v13995_v24 = vsub.f32 %v5610_v23, %v5652_v63  ;;  %v6306_v4 = vsub.f32 %v13980_v16, %v6305_v48 }
 0xba2   :  { %v5596_v25 = vpop.permute.xlu1 %5595  ;;  %v13997_v60 = vsub.f32 %v5608_v55, %v5649_v11  ;;  %v6299_v53 = vsub.f32 %v13984_v52, %v6298_v51  ;;  %v14012_v20 = vpack.c.bf16 %v5652_v63, %v5649_v11 }
 0xba3   :  { %v5643_v6 = vand.u32 4294901760, %v5596_v25  ;;  %v5612_v50 = vpop.permute.xlu0 %5611  ;;  %v5765_v10 = vand.u32 4294901760, %v13995_v24  ;;  %v6307_v38 = vand.u32 4294901760, %v6306_v4 }
 0xba4   :  { %v6203_v41 = vand.u32 4294901760, %v5612_v50  ;;  %v5758_v58 = vand.u32 4294901760, %v13997_v60  ;;  %v6300_v32 = vand.u32 4294901760, %v6299_v53  ;;  %v11948_v11 = vpack.c.bf16 %v13995_v24, %v13997_v60 }
 0xba5   :  { %v14000_v46 = vpack.c.bf16 %v5646_v28, %v5643_v6  ;;  %v14002_v47 = vsub.f32 %v5596_v25, %v5643_v6  ;;  %v5766_v14 = vsub.f32 %v13995_v24, %v5765_v10 }
 0xba6   :  { %v14014_v29 = vsub.f32 %v5612_v50, %v6203_v41  ;;  %v5614_v37 = vpop.permute.xlu1 %5613  ;;  %v5759_v42 = vsub.f32 %v13997_v60, %v5758_v58  ;;  %v12004_v49 = vpack.c.bf16 %v6307_v38, %v6300_v32 }
 0xba7   :  { %v5744_v5 = vand.u32 4294901760, %v14002_v47  ;;  %v6206_v2 = vand.u32 4294901760, %v5614_v37  ;;  %11921 = vmatprep.subr.bf16.mxu0 %v14000_v46  ;;  %v5767_v28 = vand.u32 4294901760, %v5766_v14 }
 0xba8   :  { %11923 = vmatpush3.bf16.msra.mxu0 %v14000_v46  ;;  %v6312_v7 = vand.u32 4294901760, %v14014_v29  ;;  %v5760_v15 = vand.u32 4294901760, %v5759_v42 }
 0xba9   :  { %v5745_v35 = vsub.f32 %v14002_v47, %v5744_v5  ;;  %v14028_v18 = vpack.c.bf16 %v6206_v2, %v6203_v41  ;;  %v14030_v36 = vsub.f32 %v5614_v37, %v6206_v2  ;;  %11925 = vmatprep.subr.bf16.mxu0 %v14012_v20 }
 0xbaa   :  { %v6313_v8 = vsub.f32 %v14014_v29, %v6312_v7  ;;  %v11936_v63 = vpack.c.bf16 %v5767_v28, %v5760_v15 }
 0xbab   :  { %v6319_v54 = vand.u32 4294901760, %v14030_v36  ;;  %11997 = vmatprep.subr.bf16.mxu1 %v14028_v18  ;;  %v5746_v39 = vand.u32 4294901760, %v5745_v35  ;;  %v12020_v25 = vpack.c.bf16 %v14030_v36, %v14014_v29  ;;  %v14762_v29 = vld [vmem:[#allocation4_spill] sm:$0xff] }
 0xbac   :  { %11927 = vmatpush3.bf16.msra.mxu0 %v14012_v20  ;;  %11999 = vmatpush3.bf16.msra.mxu1 %v14028_v18  ;;  %v6314_v23 = vand.u32 4294901760, %v6313_v8 }
 0xbad   :  { %v6320_v21 = vsub.f32 %v14030_v36, %v6319_v54  ;;  %11929 = vmatprep.subr.bf16.mxu0 %v13955_v1  ;;  %12001 = vmatprep.subr.bf16.mxu1 %v13964_v57  ;;  %v11932_v3 = vpack.c.bf16 %v5753_v61, %v5746_v39 }
 0xbaf   :  { %10837 = vmatmul.mubr.f32.vlgmr.msra.gmra.mrb[10].mxu0 %v5721_v34  ;;  %10927 = vmatmul.mubr.f32.vlgmr.msra.gmra.mrb[10].mxu1 %v5721_v34  ;;  %v6321_v43 = vand.u32 4294901760, %v6320_v21 }
 0xbb0   :  { %11931 = vmatpush3.bf16.msra.mxu0 %v13955_v1  ;;  %12003 = vmatpush3.bf16.msra.mxu1 %v13964_v57  ;;  %v11944_v1 = vpack.c.bf16 %v13986_v0, %v14002_v47  ;;  %v12016_v57 = vpack.c.bf16 %v13980_v16, %v13984_v52 }
 0xbb1   :  { %11933 = vmatprep.subr.bf16.mxu0 %v11932_v3  ;;  %12005 = vmatprep.subr.bf16.mxu1 %v12004_v49  ;;  %v12008_v55 = vpack.c.bf16 %v6321_v43, %v6314_v23 }
 0xbb2   :  { %10851 = vmatprep.mubr.f32.mxu0 %v13929_v9  ;;  %10941 = vmatprep.mubr.f32.mxu1 %v13929_v9 }
 0xbb4   :  { %11935 = vmatpush3.bf16.msra.mxu0 %v11932_v3  ;;  %12007 = vmatpush3.bf16.msra.mxu1 %v12004_v49 }
 0xbb5   :  { %11937 = vmatprep.subr.bf16.mxu0 %v11936_v63  ;;  %12009 = vmatprep.subr.bf16.mxu1 %v12008_v55 }
 0xbb8   :  { %11939 = vmatpush3.bf16.msra.mxu0 %v11936_v63  ;;  %12011 = vmatpush3.bf16.msra.mxu1 %v12008_v55 }
 0xbb9   :  { %11941 = vmatprep.subr.bf16.mxu0 %v13938_v40  ;;  %12013 = vmatprep.subr.bf16.mxu1 %v13952_v17 }
 0xbbb   :  { %10852 = vmatmul.mubr.f32.vlgmr.msra.gmra.mrb[10].mxu0 %v13975_v44  ;;  %10942 = vmatmul.mubr.f32.vlgmr.msra.gmra.mrb[10].mxu1 %v13975_v44 }
 0xbbc   :  { %11943 = vmatpush3.bf16.msra.mxu0 %v13938_v40  ;;  %12015 = vmatpush3.bf16.msra.mxu1 %v13952_v17  ;;  %v12040_v40 = vpack.c.bf16 %v6305_v48, %v6298_v51  ;;  %v12044_v17 = vpack.c.bf16 %v6319_v54, %v6312_v7 }
 0xbbd   :  { %11945 = vmatprep.subr.bf16.mxu0 %v11944_v1  ;;  %12017 = vmatprep.subr.bf16.mxu1 %v12016_v57 }
 0xbbe   :  { %10866 = vmatprep.mubr.f32.mxu0 %v13935_v31  ;;  %10956 = vmatprep.mubr.f32.mxu1 %v13935_v31  ;;  %v11968_v31 = vpack.c.bf16 %v5751_v13, %v5744_v5 }
 0xbc0   :  { %11947 = vmatpush3.bf16.msra.mxu0 %v11944_v1  ;;  %12019 = vmatpush3.bf16.msra.mxu1 %v12016_v57 }
 0xbc1   :  { %11949 = vmatprep.subr.bf16.mxu0 %v11948_v11  ;;  %12021 = vmatprep.subr.bf16.mxu1 %v12020_v25 }
 0xbc4   :  { %11951 = vmatpush3.bf16.msra.mxu0 %v11948_v11  ;;  %12023 = vmatpush3.bf16.msra.mxu1 %v12020_v25 }
 0xbc5   :  { %11953 = vmatprep.subr.bf16.mxu0 %v13927_v33  ;;  %12025 = vmatprep.subr.bf16.mxu1 %v13940_v62 }
 0xbc7   :  { %10867 = vmatmul.mubr.f32.vlgmr.msra.gmra.mrb[10].mxu0 %v13978_v59  ;;  %10957 = vmatmul.mubr.f32.vlgmr.msra.gmra.mrb[10].mxu1 %v13978_v59 }
 0xbc8   :  { %11955 = vmatpush3.bf16.msra.mxu0 %v13927_v33  ;;  %12027 = vmatpush3.bf16.msra.mxu1 %v13940_v62 }
 0xbc9   :  { %11957 = vmatprep.subr.bf16.mxu0 %v14000_v46  ;;  %12029 = vmatprep.subr.bf16.mxu1 %v13982_v22 }
 0xbca   :  { %10881 = vmatprep.mubr.f32.mxu0 %v13943_v56  ;;  %10971 = vmatprep.mubr.f32.mxu1 %v13943_v56  ;;  %v11972_v56 = vpack.c.bf16 %v5765_v10, %v5758_v58  ;;  %v14764_v58 = vld [vmem:[#allocation5_spill] sm:$0xff] }
 0xbcc   :  { %11959 = vmatpush3.bf16.msra.mxu0 %v14000_v46  ;;  %12031 = vmatpush3.bf16.msra.mxu1 %v13982_v22 }
 0xbcd   :  { %11961 = vmatprep.subr.bf16.mxu0 %v14012_v20  ;;  %12033 = vmatprep.subr.bf16.mxu1 %v14028_v18 }
 0xbd0   :  { %11963 = vmatpush3.bf16.msra.mxu0 %v14012_v20  ;;  %12035 = vmatpush3.bf16.msra.mxu1 %v14028_v18 }
 0xbd1   :  { %11965 = vmatprep.subr.bf16.mxu0 %v13946_v30  ;;  %12037 = vmatprep.subr.bf16.mxu1 %v13957_v27 }
 0xbd3   :  { %10882 = vmatmul.mubr.f32.vlgmr.msra.gmra.mrb[10].mxu0 %v13991_v12  ;;  %10972 = vmatmul.mubr.f32.vlgmr.msra.gmra.mrb[10].mxu1 %v13991_v12 }
 0xbd4   :  { %11967 = vmatpush3.bf16.msra.mxu0 %v13946_v30  ;;  %12039 = vmatpush3.bf16.msra.mxu1 %v13957_v27 }
 0xbd5   :  { %11969 = vmatprep.subr.bf16.mxu0 %v11968_v31  ;;  %12041 = vmatprep.subr.bf16.mxu1 %v12040_v40 }
 0xbd6   :  { %10896 = vmatprep.mubr.f32.mxu0 %v13929_v9  ;;  %10986 = vmatprep.mubr.f32.mxu1 %v13929_v9 }
 0xbd8   :  { %11971 = vmatpush3.bf16.msra.mxu0 %v11968_v31  ;;  %12043 = vmatpush3.bf16.msra.mxu1 %v12040_v40 }
 0xbd9   :  { %11973 = vmatprep.subr.bf16.mxu0 %v11972_v56  ;;  %12045 = vmatprep.subr.bf16.mxu1 %v12044_v17 }
 0xbdc   :  { %11975 = vmatpush3.bf16.msra.mxu0 %v11972_v56  ;;  %12047 = vmatpush3.bf16.msra.mxu1 %v12044_v17 }
 0xbdd   :  { %11977 = vmatprep.subr.bf16.mxu0 %v13927_v33  ;;  %12049 = vmatprep.subr.bf16.mxu1 %v13940_v62 }
 0xbdf   :  { %10897 = vmatmul.mubr.f32.vlgmr.msra.gmra.mrb[10].mxu0 %v13975_v44  ;;  %10987 = vmatmul.mubr.f32.vlgmr.msra.gmra.mrb[10].mxu1 %v13975_v44 }
 0xbe0   :  { %11979 = vmatpush3.bf16.msra.mxu0 %v13927_v33  ;;  %12051 = vmatpush3.bf16.msra.mxu1 %v13940_v62  ;;  %v5622_v33 = vpop.permute.xlu0 %5621  ;;  %v5627_v62 = vpop.permute.xlu1 %5626 }
 0xbe1   :  { %11981 = vmatprep.subr.bf16.mxu0 %v14000_v46  ;;  %12053 = vmatprep.subr.bf16.mxu1 %v13982_v22 }
 0xbe2   :  { %10911 = vmatprep.mubr.f32.mxu0 %v13929_v9  ;;  %11001 = vmatprep.mubr.f32.mxu1 %v13929_v9 }
 0xbe4   :  { %11983 = vmatpush3.bf16.msra.mxu0 %v14000_v46  ;;  %12055 = vmatpush3.bf16.msra.mxu1 %v13982_v22  ;;  %v14757_v46 = vld [vmem:[#allocation2_spill] sm:$0xff] }
 0xbe5   :  { %11985 = vmatprep.subr.bf16.mxu0 %v14012_v20  ;;  %12057 = vmatprep.subr.bf16.mxu1 %v14028_v18 }
 0xbe8   :  { %11987 = vmatpush3.bf16.msra.mxu0 %v14012_v20  ;;  %12059 = vmatpush3.bf16.msra.mxu1 %v14028_v18  ;;  %v14761_v20 = vmov 0  }
 0xbeb   :  { %10912 = vmatmul.mubr.f32.vlgmr.msra.gmra.mrb[10].mxu0 %v13975_v44  ;;  %11002 = vmatmul.mubr.f32.vlgmr.msra.gmra.mrb[10].mxu1 %v13975_v44 }
 0xcbe   :  { %v10913_v30 = vpop.f32.mrb[10].mxu0  ;;  %v11003_v9 = vpop.f32.mrb[10].mxu1 }
 0xcbf   :  { %v12456_v27 = vadd.f32 %v10913_v30, %v5627_v62  ;;  %v12458_v59 = vadd.f32 %v11003_v9, %v5627_v62  ;;  %v6180_v16 = vpop.f32.mrb[11].mxu0  ;;  %v6734_v22 = vpop.f32.mrb[11].mxu1 }
 0xcc0   :  { %v12457_v52 = vadd.f32 %v6180_v16, %v5622_v33  ;;  %v12459_v0 = vadd.f32 %v6734_v22, %v5622_v33  ;;  %v9292_v16 = vld [vmem:[%s14703_s5 + $0x10] sm:$0xff] }
 0xcc1   :  { %12672 = vtanh.f32 %v12456_v27 }
 0xcc2   :  { %12674 = vtanh.f32 %v12458_v59 }
 0xcc3   :  { %12676 = vtanh.f32 %v12457_v52 }
 0xcc4   :  { %12678 = vtanh.f32 %v12459_v0 }
 0xccb   :  { %v12673_v12 = vpop.eup %12672 }
 0xccc   :  { %v12675_v48 = vpop.eup %12674  ;;  %v6750_v51 = vmul.f32 1.442695, %v12673_v12  ;;  %v6879_v12 = vsel %vm4360_vm14, %v9292_v16, 0 }
 0xccd   :  { %v6754_v24 = vmul.f32 1.442695, %v12675_v48  ;;  %v12677_v60 = vpop.eup %12676 }
 0xcce   :  { %12680 = vpow2.f32 %v6750_v51  ;;  %v6748_v44 = vmul.f32 1.442695, %v12677_v60  ;;  %v12679_v6 = vpop.eup %12678  ;;  %v14202_v51 = vand.u32 4294901760, %v6879_v12 }
 0xccf   :  { %12682 = vpow2.f32 %v6754_v24  ;;  %v6752_v50 = vmul.f32 1.442695, %v12679_v6 }
 0xcd0   :  { %12684 = vpow2.f32 %v6748_v44  ;;  %v14209_v6 = vsub.f32 %v6879_v12, %v14202_v51 }
 0xcd1   :  { %12686 = vpow2.f32 %v6752_v50 }
 0xcd8   :  { %v12681_v13 = vpop.eup %12680 }
 0xcd9   :  { %v12683_v41 = vpop.eup %12682  ;;  %v14130_v47 = vmul.f32 %v12681_v13, %v14757_v46  ;;  %v14212_v13 = vand.u32 4294901760, %v14209_v6 }
 0xcda   :  { %v14133_v4 = vmul.f32 %v12683_v41, %v14759_v45  ;;  %v12685_v53 = vpop.eup %12684 }
 0xcdb   :  { %14758 = vst [vmem:[#allocation6_spill] sm:$0xff] %v14130_v47  ;;  %6767 = vperm.xlu1 %12652, %v14130_v47   ;;  %v14142_v37 = vmul.f32 %v12685_v53, %v14762_v29  ;;  %v12687_v10 = vpop.eup %12686  ;;  %v6962_v46 = vsub.f32 %v14209_v6, %v14212_v13 }
 0xcdc   :  { %14760 = vst [vmem:[#allocation8_spill] sm:$0xff] %v14133_v4  ;;  %6793 = vperm.xlu0 %12655, %v14133_v4   ;;  %v14148_v5 = vmul.f32 %v12687_v10, %v14764_v58 }
 0xcdd   :  { %14763 = vst [vmem:[#allocation7_spill] sm:$0xff] %v14142_v37  ;;  %v6963_v45 = vand.u32 4294901760, %v6962_v46 }
 0xcde   :  { %14765 = vst [vmem:[#allocation10_spill] sm:$0xff] %v14148_v5 }
 0xcdf   :  { %6777 = vperm.xlu1 %12652, %v14133_v4   ;;  %11024 = vmatprep.mubr.f32.mxu0 %v6963_v45 }
 0xce0   :  { %6798 = vrot.lane.b32.xlu0 %v14130_v47, %s12698_s13  ;;  %11162 = vmatprep.mubr.f32.mxu1 %v6963_v45 }
 0xce1   :  { %12656 = vset.pattern.permute.xlu0 %v14761_v20 }
 0xce3   :  { %12654 = vset.pattern.permute.xlu1 %v14756_v26 }
 0xce4   :  { %6762 = vperm.xlu0 %12656, %v14142_v37   ;;  %6785 = vperm.xlu1 %12654, %v14130_v47  }
 0xce8   :  { %6772 = vperm.xlu0 %12656, %v14148_v5   ;;  %6789 = vperm.xlu1 %12654, %v14148_v5  }
 0xcec   :  { %12657 = vset.pattern.permute.xlu0 %v14756_v26  ;;  %6796 = vrot.lane.b32.xlu1 %v14142_v37, %s12698_s13 }
 0xced   :  { %6781 = vperm.xlu0 %12657, %v14142_v37   ;;  %12658 = vset.pattern.permute.xlu1 %v14761_v20 }
 0xcf0   :  { %6800 = vrot.lane.b32.xlu1 %v14148_v5, %s12698_s13 }
 0xcf1   :  { %6802 = vrot.lane.b32.xlu0 %v14133_v4, %s12698_s13 }
 0xcf2   :  { %12659 = vset.pattern.permute.xlu0 %v14761_v20 }
 0xd5a   :  { %v6768_v2 = vpop.permute.xlu1 %6767 }
 0xd5b   :  { %v6794_v19 = vpop.permute.xlu0 %6793 }
 0xd5e   :  { %v6778_v35 = vpop.permute.xlu1 %6777 }
 0xd5f   :  { %v6799_v7 = vpop.permute.xlu0 %6798 }
 0xd60   :  { %v6809_v26 = vsel %vm70_vm0, %v6768_v2, %v6799_v7 }
 0xd63   :  { %v6763_v18 = vpop.permute.xlu0 %6762  ;;  %v6786_v36 = vpop.permute.xlu1 %6785 }
 0xd64   :  { %v14164_v34 = vsel %vm4160_vm10, %v6809_v26, %v6786_v36 }
 0xd65   :  { %v6888_v32 = vand.u32 4294901760, %v14164_v34  ;;  %6822 = vrot.lane.b32.xlu0 %v14164_v34, %s12700_s0 }
 0xd67   :  { %v6988_v38 = vsub.f32 %v14164_v34, %v6888_v32  ;;  %v6773_v14 = vpop.permute.xlu0 %6772  ;;  %v6790_v42 = vpop.permute.xlu1 %6789 }
 0xd69   :  { %v6989_v61 = vand.u32 4294901760, %v6988_v38 }
 0xd6b   :  { %v6797_v54 = vpop.permute.xlu1 %6796  ;;  %v6990_v1 = vsub.f32 %v6988_v38, %v6989_v61 }
 0xd6c   :  { %v6782_v39 = vpop.permute.xlu0 %6781  ;;  %v6808_v8 = vsel %vm70_vm0, %v6763_v18, %v6797_v54 }
 0xd6d   :  { %v6812_v21 = vsel %vm4160_vm10, %v6808_v8, %v6782_v39  ;;  %v6991_v27 = vand.u32 4294901760, %v6990_v1 }
 0xd6e   :  { %v6885_v49 = vand.u32 4294901760, %v6812_v21  ;;  %6820 = vrot.lane.b32.xlu1 %v6812_v21, %s12700_s0 }
 0xd6f   :  { %v6801_v3 = vpop.permute.xlu1 %6800 }
 0xd70   :  { %v14173_v15 = vpack.c.bf16 %v6888_v32, %v6885_v49  ;;  %v6803_v28 = vpop.permute.xlu0 %6802  ;;  %v6810_v43 = vsel %vm70_vm0, %v6773_v14, %v6801_v3  ;;  %v6981_v23 = vsub.f32 %v6812_v21, %v6885_v49  ;;  %v9293_v32 = vld [vmem:[%s14703_s5 + $0x18] sm:$0xff] }
 0xd71   :  { %v6811_v63 = vsel %vm70_vm0, %v6778_v35, %v6803_v28  ;;  %v6814_v55 = vsel %vm4160_vm10, %v6810_v43, %v6790_v42  ;;  %v6882_v49 = vsel %vm4360_vm14, %v9293_v32, 0  ;;  %v9295_v43 = vld [vmem:[%s14704_s6 + $0x18] sm:$0xff] }
 0xd72   :  { %v6815_v57 = vsel %vm4160_vm10, %v6811_v63, %v6794_v19  ;;  %v7491_v11 = vand.u32 4294901760, %v6814_v55  ;;  %12061 = vmatprep.subr.bf16.mxu0 %v14173_v15  ;;  %6824 = vrot.lane.b32.xlu1 %v6814_v55, %s12700_s0  ;;  %v6982_v25 = vand.u32 4294901760, %v6981_v23  ;;  %v14181_v31 = vpack.c.bf16 %v6988_v38, %v6981_v23 }
 0xd73   :  { %v7494_v40 = vand.u32 4294901760, %v6815_v57  ;;  %6826 = vrot.lane.b32.xlu0 %v6815_v57, %s12700_s0  ;;  %12063 = vmatpush3.bf16.msra.mxu0 %v14173_v15 }
 0xd74   :  { %v6983_v56 = vsub.f32 %v6981_v23, %v6982_v25  ;;  %v7587_v17 = vsub.f32 %v6814_v55, %v7491_v11  ;;  %v14185_v33 = vpack.c.bf16 %v6989_v61, %v6982_v25  ;;  %v9294_v23 = vld [vmem:[%s14704_s6 + $0x10] sm:$0xff] }
 0xd75   :  { %v14187_v62 = vpack.c.bf16 %v7494_v40, %v7491_v11  ;;  %v7594_v30 = vsub.f32 %v6815_v57, %v7494_v40  ;;  %v14268_v11 = vand.u32 4294901760, %v6882_v49 }
 0xd76   :  { %6832 = vrot.lane.b32.xlu1 %v6812_v21, %s12701_s14  ;;  %v6984_v9 = vand.u32 4294901760, %v6983_v56  ;;  %v7588_v59 = vand.u32 4294901760, %v7587_v17 }
 0xd77   :  { %6834 = vrot.lane.b32.xlu0 %v14164_v34, %s12701_s14  ;;  %12181 = vmatprep.subr.bf16.mxu1 %v14187_v62  ;;  %v7595_v22 = vand.u32 4294901760, %v7594_v30  ;;  %v14196_v52 = vpack.c.bf16 %v7594_v30, %v7587_v17  ;;  %v14287_v12 = vsub.f32 %v6882_v49, %v14268_v11 }
 0xd78   :  { %12183 = vmatpush3.bf16.msra.mxu1 %v14187_v62  ;;  %v14199_v0 = vpack.c.bf16 %v6991_v27, %v6984_v9  ;;  %v7589_v48 = vsub.f32 %v7587_v17, %v7588_v59 }
 0xd79   :  { %v7596_v24 = vsub.f32 %v7594_v30, %v7595_v22  ;;  %v14204_v60 = vpack.c.bf16 %v7595_v22, %v7588_v59 }
 0xd7a   :  { %6836 = vrot.lane.b32.xlu1 %v6814_v55, %s12701_s14  ;;  %v7590_v44 = vand.u32 4294901760, %v7589_v48 }
 0xd7b   :  { %14766 = vst [vmem:[#allocation9_spill] sm:$0xff] %v14204_v60  ;;  %6838 = vrot.lane.b32.xlu0 %v6815_v57, %s12701_s14  ;;  %v7597_v50 = vand.u32 4294901760, %v7596_v24 }
 0xd7d   :  { %v14214_v41 = vpack.c.bf16 %v7597_v50, %v7590_v44 }
 0xd7e   :  { %6844 = vrot.lane.b32.xlu1 %v6812_v21, %s12704_s17 }
 0xd7f   :  { %6846 = vrot.lane.b32.xlu0 %v14164_v34, %s12704_s17 }
 0xd82   :  { %6848 = vrot.lane.b32.xlu1 %v6814_v55, %s12704_s17 }
 0xd83   :  { %6850 = vrot.lane.b32.xlu0 %v6815_v57, %s12704_s17 }
 0xd86   :  { %6856 = vrot.lane.b32.xlu1 %v6812_v21, %s12705_s18 }
 0xd87   :  { %6858 = vrot.lane.b32.xlu0 %v14164_v34, %s12705_s18 }
 0xd8a   :  { %6860 = vrot.lane.b32.xlu1 %v6814_v55, %s12705_s18 }
 0xd8b   :  { %6862 = vrot.lane.b32.xlu0 %v6815_v57, %s12705_s18 }
 0xd8e   :  { %6870 = vperm.xlu1 %12658, %v9294_v23  }
 0xd8f   :  { %6875 = vperm.xlu0 %12659, %v9295_v43  }
 0xdd7   :  { %v6823_v53 = vpop.permute.xlu0 %6822 }
 0xdd8   :  { %v6894_v20 = vand.u32 4294901760, %v6823_v53 }
 0xdda   :  { %v14228_v10 = vsub.f32 %v6823_v53, %v6894_v20 }
 0xddc   :  { %v7003_v7 = vand.u32 4294901760, %v14228_v10 }
 0xde0   :  { %v6821_v29 = vpop.permute.xlu1 %6820 }
 0xde1   :  { %v6891_v58 = vand.u32 4294901760, %v6821_v29 }
 0xde3   :  { %v14230_v2 = vpack.c.bf16 %v6894_v20, %v6891_v58  ;;  %v14232_v19 = vsub.f32 %v6821_v29, %v6891_v58 }
 0xde4   :  { %v6825_v35 = vpop.permute.xlu1 %6824 }
 0xde5   :  { %v6996_v26 = vand.u32 4294901760, %v14232_v19  ;;  %v6827_v18 = vpop.permute.xlu0 %6826  ;;  %v7497_v36 = vand.u32 4294901760, %v6825_v35  ;;  %12065 = vmatprep.subr.bf16.mxu0 %v14230_v2 }
 0xde6   :  { %v7500_v34 = vand.u32 4294901760, %v6827_v18  ;;  %12067 = vmatpush3.bf16.msra.mxu0 %v14230_v2 }
 0xde7   :  { %v14241_v38 = vsub.f32 %v6825_v35, %v7497_v36  ;;  %v14245_v14 = vpack.c.bf16 %v7003_v7, %v6996_v26  ;;  %v14302_v35 = vand.u32 4294901760, %v14287_v12 }
 0xde8   :  { %v14247_v42 = vsub.f32 %v6827_v18, %v7500_v34  ;;  %v14249_v54 = vpack.c.bf16 %v7500_v34, %v7497_v36  ;;  %v6833_v39 = vpop.permute.xlu1 %6832 }
 0xde9   :  { %v7602_v8 = vand.u32 4294901760, %v14241_v38  ;;  %v6835_v21 = vpop.permute.xlu0 %6834  ;;  %v6897_v61 = vand.u32 4294901760, %v6833_v39 }
 0xdea   :  { %v14723_v3 = vand.u32 4294901760, %v14247_v42  ;;  %v6900_v28 = vand.u32 4294901760, %v6835_v21  ;;  %12185 = vmatprep.subr.bf16.mxu1 %v14249_v54  ;;  %v14771_v47 = vand.u32 4294901760, %v14247_v42 }
 0xdeb   :  { %v14261_v63 = vsub.f32 %v6833_v39, %v6897_v61  ;;  %12187 = vmatpush3.bf16.msra.mxu1 %v14249_v54 }
 0xdec   :  { %v14264_v55 = vsub.f32 %v6835_v21, %v6900_v28  ;;  %v14266_v1 = vpack.c.bf16 %v6900_v28, %v6897_v61  ;;  %v6837_v57 = vpop.permute.xlu1 %6836  ;;  %v14274_v25 = vpack.c.bf16 %v14723_v3, %v7602_v8  ;;  %v6997_v61 = vsub.f32 %v14232_v19, %v6996_v26 }
 0xded   :  { %v7010_v40 = vand.u32 4294901760, %v14261_v63  ;;  %v6839_v56 = vpop.permute.xlu0 %6838  ;;  %v7503_v17 = vand.u32 4294901760, %v6837_v57  ;;  %v7004_v28 = vsub.f32 %v14228_v10, %v7003_v7  ;;  %v7603_v7 = vsub.f32 %v14241_v38, %v7602_v8 }
 0xdee   :  { %14767 = vst [vmem:[#allocation11_spill] sm:$0xff] %v14274_v25  ;;  %v7017_v30 = vand.u32 4294901760, %v14264_v55  ;;  %v7506_v9 = vand.u32 4294901760, %v6839_v56  ;;  %12069 = vmatprep.subr.bf16.mxu0 %v14266_v1  ;;  %v7610_v5 = vsub.f32 %v14247_v42, %v14771_v47 }
 0xdef   :  { %v14279_v27 = vsub.f32 %v6837_v57, %v7503_v17  ;;  %12071 = vmatpush3.bf16.msra.mxu0 %v14266_v1  ;;  %v7005_v4 = vand.u32 4294901760, %v7004_v28 }
 0xdf0   :  { %v14282_v59 = vsub.f32 %v6839_v56, %v7506_v9  ;;  %v14284_v16 = vpack.c.bf16 %v7506_v9, %v7503_v17  ;;  %v6845_v22 = vpop.permute.xlu1 %6844  ;;  %v14290_v50 = vpack.c.bf16 %v7017_v30, %v7010_v40  ;;  %v6972_v56 = vsub.f32 %v14287_v12, %v14302_v35 }
 0xdf1   :  { %v7616_v48 = vand.u32 4294901760, %v14279_v27  ;;  %v6847_v24 = vpop.permute.xlu0 %6846  ;;  %v6903_v44 = vand.u32 4294901760, %v6845_v22 }
 0xdf2   :  { %14768 = vst [vmem:[#allocation2_spill] sm:$0xff] %v14290_v50  ;;  %v7623_v46 = vand.u32 4294901760, %v14282_v59  ;;  %v6906_v45 = vand.u32 4294901760, %v6847_v24  ;;  %12189 = vmatprep.subr.bf16.mxu1 %v14284_v16  ;;  %v6973_v3 = vand.u32 4294901760, %v6972_v56  ;;  %v7604_v56 = vand.u32 4294901760, %v7603_v7 }
 0xdf3   :  { %v14294_v53 = vsub.f32 %v6845_v22, %v6903_v44  ;;  %12191 = vmatpush3.bf16.msra.mxu1 %v14284_v16  ;;  %v7617_v25 = vsub.f32 %v14279_v27, %v7616_v48 }
 0xdf4   :  { %v14297_v20 = vsub.f32 %v6847_v24, %v6906_v45  ;;  %v14299_v29 = vpack.c.bf16 %v6906_v45, %v6903_v44  ;;  %v6849_v58 = vpop.permute.xlu1 %6848  ;;  %v14305_v32 = vpack.c.bf16 %v7623_v46, %v7616_v48 }
 0xdf5   :  { %v7024_v18 = vand.u32 4294901760, %v14294_v53  ;;  %v6851_v36 = vpop.permute.xlu0 %6850  ;;  %v7509_v34 = vand.u32 4294901760, %v6849_v58 }
 0xdf6   :  { %14769 = vst [vmem:[#allocation3_spill] sm:$0xff] %v14305_v32  ;;  %v7031_v39 = vand.u32 4294901760, %v14297_v20  ;;  %v7512_v21 = vand.u32 4294901760, %v6851_v36  ;;  %12073 = vmatprep.subr.bf16.mxu0 %v14299_v29 }
 0xdf7   :  { %v14310_v49 = vsub.f32 %v6849_v58, %v7509_v34  ;;  %12075 = vmatpush3.bf16.msra.mxu0 %v14299_v29  ;;  %v6998_v58 = vand.u32 4294901760, %v6997_v61  ;;  %v7011_v61 = vsub.f32 %v14261_v63, %v7010_v40  ;;  %v7025_v50 = vsub.f32 %v14294_v53, %v7024_v18 }
 0xdf8   :  { %v14316_v43 = vsub.f32 %v6851_v36, %v7512_v21  ;;  %v14318_v23 = vpack.c.bf16 %v7512_v21, %v7509_v34  ;;  %v6857_v57 = vpop.permute.xlu1 %6856  ;;  %v14323_v22 = vpack.c.bf16 %v7031_v39, %v7024_v18  ;;  %v7032_v40 = vsub.f32 %v14297_v20, %v7031_v39 }
 0xdf9   :  { %v7630_v17 = vand.u32 4294901760, %v14310_v49  ;;  %v6859_v9 = vpop.permute.xlu0 %6858  ;;  %v6909_v26 = vand.u32 4294901760, %v6857_v57  ;;  %v12084_v47 = vpack.c.bf16 %v7005_v4, %v6998_v58  ;;  %v7012_v48 = vand.u32 4294901760, %v7011_v61 }
 0xdfa   :  { %14770 = vst [vmem:[#allocation4_spill] sm:$0xff] %v14323_v22  ;;  %v7637_v24 = vand.u32 4294901760, %v14316_v43  ;;  %v6912_v44 = vand.u32 4294901760, %v6859_v9  ;;  %12193 = vmatprep.subr.bf16.mxu1 %v14318_v23  ;;  %v7018_v22 = vsub.f32 %v14264_v55, %v7017_v30  ;;  %v7618_v18 = vand.u32 4294901760, %v7617_v25 }
 0xdfb   :  { %v14330_v45 = vsub.f32 %v6857_v57, %v6909_v26  ;;  %12195 = vmatpush3.bf16.msra.mxu1 %v14318_v23 }
 0xdfc   :  { %v14333_v36 = vsub.f32 %v6859_v9, %v6912_v44  ;;  %v14335_v34 = vpack.c.bf16 %v6912_v44, %v6909_v26  ;;  %v6861_v21 = vpop.permute.xlu1 %6860  ;;  %v14341_v57 = vpack.c.bf16 %v7637_v24, %v7630_v17  ;;  %v7624_v44 = vsub.f32 %v14282_v59, %v7623_v46 }
 0xdfd   :  { %v7038_v37 = vand.u32 4294901760, %v14330_v45  ;;  %v6863_v32 = vpop.permute.xlu0 %6862  ;;  %v7515_v8 = vand.u32 4294901760, %v6861_v21  ;;  %v7019_v46 = vand.u32 4294901760, %v7018_v22  ;;  %v7638_v58 = vsub.f32 %v14316_v43, %v7637_v24 }
 0xdfe   :  { %14772 = vst [vmem:[#allocation5_spill] sm:$0xff] %v14341_v57  ;;  %v7045_v9 = vand.u32 4294901760, %v14333_v36  ;;  %v7518_v26 = vand.u32 4294901760, %v6863_v32  ;;  %12077 = vmatprep.subr.bf16.mxu0 %v14335_v34  ;;  %v7625_v39 = vand.u32 4294901760, %v7624_v44 }
 0xdff   :  { %v14347_v28 = vsub.f32 %v6861_v21, %v7515_v8  ;;  %12079 = vmatpush3.bf16.msra.mxu0 %v14335_v34  ;;  %v12088_v22 = vpack.c.bf16 %v7019_v46, %v7012_v48  ;;  %v12224_v48 = vpack.c.bf16 %v14247_v42, %v14241_v38  ;;  %v14775_v38 = vld [vmem:[#allocation2_spill] sm:$0xff]  ;;  %v14776_v42 = vld [vmem:[#allocation11_spill] sm:$0xff] }
 0xe00   :  { %v14352_v57 = vsub.f32 %v6863_v32, %v7518_v26  ;;  %v14354_v30 = vpack.c.bf16 %v7518_v26, %v7515_v8  ;;  %12081 = vmatprep.subr.bf16.mxu0 %v14199_v0  ;;  %v14360_v60 = vpack.c.bf16 %v7045_v9, %v7038_v37  ;;  %v7611_v32 = vand.u32 4294901760, %v7610_v5 }
 0xe01   :  { %v7644_v21 = vand.u32 4294901760, %v14347_v28  ;;  %v7631_v8 = vsub.f32 %v14310_v49, %v7630_v17  ;;  %v7026_v26 = vand.u32 4294901760, %v7025_v50  ;;  %v7046_v5 = vsub.f32 %v14333_v36, %v7045_v9 }
 0xe02   :  { %14773 = vst [vmem:[#allocation12_spill] sm:$0xff] %v14360_v60  ;;  %v7651_v4 = vand.u32 4294901760, %v14352_v57  ;;  %12197 = vmatprep.subr.bf16.mxu1 %v14354_v30  ;;  %11025 = vmatmul.mubr.f32.vlgmr.msra.gmra.mrb[12].mxu0 %v6973_v3  ;;  %v7033_v60 = vand.u32 4294901760, %v7032_v40  ;;  %v12204_v61 = vpack.c.bf16 %v7611_v32, %v7604_v56  ;;  %v12208_v24 = vpack.c.bf16 %v7625_v39, %v7618_v18 }
 0xe03   :  { %12083 = vmatpush3.bf16.msra.mxu0 %v14199_v0  ;;  %12199 = vmatpush3.bf16.msra.mxu1 %v14354_v30  ;;  %v7039_v0 = vsub.f32 %v14330_v45, %v7038_v37  ;;  %v7632_v44 = vand.u32 4294901760, %v7631_v8  ;;  %v7639_v17 = vand.u32 4294901760, %v7638_v58  ;;  %v7645_v9 = vsub.f32 %v14347_v28, %v7644_v21 }
 0xe04   :  { %12085 = vmatprep.subr.bf16.mxu0 %v12084_v47  ;;  %12201 = vmatprep.subr.bf16.mxu1 %v14214_v41  ;;  %v14367_v7 = vpack.c.bf16 %v7651_v4, %v7644_v21  ;;  %v12092_v25 = vpack.c.bf16 %v7033_v60, %v7026_v26  ;;  %v7652_v50 = vsub.f32 %v14352_v57, %v7651_v4  ;;  %v7047_v37 = vand.u32 4294901760, %v7046_v5 }
 0xe05   :  { %11047 = vmatprep.mubr.f32.mxu0 %v14202_v51  ;;  %v7040_v40 = vand.u32 4294901760, %v7039_v0  ;;  %v12104_v21 = vpack.c.bf16 %v14228_v10, %v14232_v19  ;;  %v12108_v4 = vpack.c.bf16 %v14264_v55, %v14261_v63  ;;  %v12228_v10 = vpack.c.bf16 %v14282_v59, %v14279_v27  ;;  %v14778_v63 = vld [vmem:[#allocation3_spill] sm:$0xff]  ;;  %v14780_v55 = vld [vmem:[#allocation5_spill] sm:$0xff] }
 0xe06   :  { %11163 = vmatmul.mubr.f32.vlgmr.msra.gmra.mrb[12].mxu1 %v6973_v3  ;;  %v7653_v56 = vand.u32 4294901760, %v7652_v50  ;;  %v12116_v19 = vpack.c.bf16 %v14333_v36, %v14330_v45 }
 0xe07   :  { %12087 = vmatpush3.bf16.msra.mxu0 %v12084_v47  ;;  %12203 = vmatpush3.bf16.msra.mxu1 %v14214_v41  ;;  %v12096_v3 = vpack.c.bf16 %v7047_v37, %v7040_v40  ;;  %v12212_v41 = vpack.c.bf16 %v7639_v17, %v7632_v44  ;;  %v7646_v47 = vand.u32 4294901760, %v7645_v9 }
 0xe08   :  { %12089 = vmatprep.subr.bf16.mxu0 %v12088_v22  ;;  %12205 = vmatprep.subr.bf16.mxu1 %v12204_v61 }
 0xe09   :  { %11185 = vmatprep.mubr.f32.mxu1 %v14202_v51  ;;  %v12216_v60 = vpack.c.bf16 %v7653_v56, %v7646_v47 }
 0xe0b   :  { %12091 = vmatpush3.bf16.msra.mxu0 %v12088_v22  ;;  %12207 = vmatpush3.bf16.msra.mxu1 %v12204_v61 }
 0xe0c   :  { %12093 = vmatprep.subr.bf16.mxu0 %v12092_v25  ;;  %12209 = vmatprep.subr.bf16.mxu1 %v12208_v24 }
 0xe0f   :  { %12095 = vmatpush3.bf16.msra.mxu0 %v12092_v25  ;;  %12211 = vmatpush3.bf16.msra.mxu1 %v12208_v24 }
 0xe10   :  { %12097 = vmatprep.subr.bf16.mxu0 %v12096_v3  ;;  %12213 = vmatprep.subr.bf16.mxu1 %v12212_v41 }
 0xe13   :  { %12099 = vmatpush3.bf16.msra.mxu0 %v12096_v3  ;;  %12215 = vmatpush3.bf16.msra.mxu1 %v12212_v41 }
 0xe14   :  { %12101 = vmatprep.subr.bf16.mxu0 %v14181_v31  ;;  %12217 = vmatprep.subr.bf16.mxu1 %v12216_v60 }
 0xe16   :  { %11048 = vmatmul.mubr.f32.vlgmr.msra.gmra.mrb[12].mxu0 %v14268_v11 }
 0xe17   :  { %12103 = vmatpush3.bf16.msra.mxu0 %v14181_v31  ;;  %12219 = vmatpush3.bf16.msra.mxu1 %v12216_v60  ;;  %v12112_v31 = vpack.c.bf16 %v14297_v20, %v14294_v53 }
 0xe18   :  { %12105 = vmatprep.subr.bf16.mxu0 %v12104_v21  ;;  %12221 = vmatprep.subr.bf16.mxu1 %v14196_v52 }
 0xe19   :  { %11070 = vmatprep.mubr.f32.mxu0 %v14209_v6 }
 0xe1a   :  { %11186 = vmatmul.mubr.f32.vlgmr.msra.gmra.mrb[12].mxu1 %v14268_v11 }
 0xe1b   :  { %12107 = vmatpush3.bf16.msra.mxu0 %v12104_v21  ;;  %12223 = vmatpush3.bf16.msra.mxu1 %v14196_v52  ;;  %v12232_v52 = vpack.c.bf16 %v14316_v43, %v14310_v49 }
 0xe1c   :  { %12109 = vmatprep.subr.bf16.mxu0 %v12108_v4  ;;  %12225 = vmatprep.subr.bf16.mxu1 %v12224_v48 }
 0xe1d   :  { %11208 = vmatprep.mubr.f32.mxu1 %v14209_v6  ;;  %v12236_v6 = vpack.c.bf16 %v14352_v57, %v14347_v28 }
 0xe1f   :  { %12111 = vmatpush3.bf16.msra.mxu0 %v12108_v4  ;;  %12227 = vmatpush3.bf16.msra.mxu1 %v12224_v48 }
 0xe20   :  { %12113 = vmatprep.subr.bf16.mxu0 %v12112_v31  ;;  %12229 = vmatprep.subr.bf16.mxu1 %v12228_v10 }
 0xe23   :  { %12115 = vmatpush3.bf16.msra.mxu0 %v12112_v31  ;;  %12231 = vmatpush3.bf16.msra.mxu1 %v12228_v10  ;;  %v9298_v31 = vld [vmem:[%s14706_s8 + $0x10] sm:$0xff] }
 0xe24   :  { %12117 = vmatprep.subr.bf16.mxu0 %v12116_v19  ;;  %12233 = vmatprep.subr.bf16.mxu1 %v12232_v52 }
 0xe27   :  { %12119 = vmatpush3.bf16.msra.mxu0 %v12116_v19  ;;  %12235 = vmatpush3.bf16.msra.mxu1 %v12232_v52  ;;  %v9299_v19 = vld [vmem:[%s14706_s8 + $0x18] sm:$0xff] }
 0xe28   :  { %12121 = vmatprep.subr.bf16.mxu0 %v14173_v15  ;;  %12237 = vmatprep.subr.bf16.mxu1 %v12236_v6  ;;  %v9297_v52 = vld [vmem:[%s14705_s7 + $0x18] sm:$0xff] }
 0xe2a   :  { %11071 = vmatmul.mubr.f32.vlgmr.msra.gmra.mrb[12].mxu0 %v14287_v12 }
 0xe2b   :  { %12123 = vmatpush3.bf16.msra.mxu0 %v14173_v15  ;;  %12239 = vmatpush3.bf16.msra.mxu1 %v12236_v6 }
 0xe2c   :  { %12125 = vmatprep.subr.bf16.mxu0 %v14230_v2  ;;  %12241 = vmatprep.subr.bf16.mxu1 %v14187_v62 }
 0xe2d   :  { %11093 = vmatprep.mubr.f32.mxu0 %v14212_v13 }
 0xe2e   :  { %11209 = vmatmul.mubr.f32.vlgmr.msra.gmra.mrb[12].mxu1 %v14287_v12 }
 0xe2f   :  { %12127 = vmatpush3.bf16.msra.mxu0 %v14230_v2  ;;  %12243 = vmatpush3.bf16.msra.mxu1 %v14187_v62 }
 0xe30   :  { %12129 = vmatprep.subr.bf16.mxu0 %v14266_v1  ;;  %12245 = vmatprep.subr.bf16.mxu1 %v14249_v54 }
 0xe31   :  { %11231 = vmatprep.mubr.f32.mxu1 %v14212_v13  ;;  %v14774_v13 = vld [vmem:[#allocation9_spill] sm:$0xff] }
 0xe33   :  { %12131 = vmatpush3.bf16.msra.mxu0 %v14266_v1  ;;  %12247 = vmatpush3.bf16.msra.mxu1 %v14249_v54 }
 0xe34   :  { %12133 = vmatprep.subr.bf16.mxu0 %v14299_v29  ;;  %12249 = vmatprep.subr.bf16.mxu1 %v14284_v16 }
 0xe37   :  { %12135 = vmatpush3.bf16.msra.mxu0 %v14299_v29  ;;  %12251 = vmatpush3.bf16.msra.mxu1 %v14284_v16 }
 0xe38   :  { %12137 = vmatprep.subr.bf16.mxu0 %v14335_v34  ;;  %12253 = vmatprep.subr.bf16.mxu1 %v14318_v23 }
 0xe3b   :  { %12139 = vmatpush3.bf16.msra.mxu0 %v14335_v34  ;;  %12255 = vmatpush3.bf16.msra.mxu1 %v14318_v23 }
 0xe3c   :  { %12141 = vmatprep.subr.bf16.mxu0 %v14185_v33  ;;  %12257 = vmatprep.subr.bf16.mxu1 %v14354_v30 }
 0xe3e   :  { %11094 = vmatmul.mubr.f32.vlgmr.msra.gmra.mrb[12].mxu0 %v14302_v35 }
 0xe3f   :  { %12143 = vmatpush3.bf16.msra.mxu0 %v14185_v33  ;;  %12259 = vmatpush3.bf16.msra.mxu1 %v14354_v30  ;;  %v14777_v33 = vld [vmem:[#allocation4_spill] sm:$0xff] }
 0xe40   :  { %12145 = vmatprep.subr.bf16.mxu0 %v14245_v14  ;;  %12261 = vmatprep.subr.bf16.mxu1 %v14774_v13 }
 0xe41   :  { %11116 = vmatprep.mubr.f32.mxu0 %v14202_v51 }
 0xe42   :  { %11232 = vmatmul.mubr.f32.vlgmr.msra.gmra.mrb[12].mxu1 %v14302_v35 }
 0xe43   :  { %12147 = vmatpush3.bf16.msra.mxu0 %v14245_v14  ;;  %12263 = vmatpush3.bf16.msra.mxu1 %v14774_v13  ;;  %v14779_v14 = vld [vmem:[#allocation12_spill] sm:$0xff]  ;;  %v8150_v13 = vsel %vm5629_vm3, %v9297_v52, 0 }
 0xe44   :  { %12149 = vmatprep.subr.bf16.mxu0 %v14775_v38  ;;  %12265 = vmatprep.subr.bf16.mxu1 %v14776_v42 }
 0xe45   :  { %11254 = vmatprep.mubr.f32.mxu1 %v14202_v51 }
 0xe47   :  { %12151 = vmatpush3.bf16.msra.mxu0 %v14775_v38  ;;  %12267 = vmatpush3.bf16.msra.mxu1 %v14776_v42  ;;  %v14528_v38 = vand.u32 4294901760, %v8150_v13 }
 0xe48   :  { %12153 = vmatprep.subr.bf16.mxu0 %v14777_v33  ;;  %12269 = vmatprep.subr.bf16.mxu1 %v14778_v63 }
 0xe4b   :  { %12155 = vmatpush3.bf16.msra.mxu0 %v14777_v33  ;;  %12271 = vmatpush3.bf16.msra.mxu1 %v14778_v63 }
 0xe4c   :  { %12157 = vmatprep.subr.bf16.mxu0 %v14779_v14  ;;  %12273 = vmatprep.subr.bf16.mxu1 %v14780_v55 }
 0xe4f   :  { %12159 = vmatpush3.bf16.msra.mxu0 %v14779_v14  ;;  %12275 = vmatpush3.bf16.msra.mxu1 %v14780_v55 }
 0xe50   :  { %12161 = vmatprep.subr.bf16.mxu0 %v14173_v15  ;;  %12277 = vmatprep.subr.bf16.mxu1 %v14367_v7 }
 0xe52   :  { %11117 = vmatmul.mubr.f32.vlgmr.msra.gmra.mrb[12].mxu0 %v14268_v11 }
 0xe53   :  { %12163 = vmatpush3.bf16.msra.mxu0 %v14173_v15  ;;  %12279 = vmatpush3.bf16.msra.mxu1 %v14367_v7  ;;  %v6876_v15 = vpop.permute.xlu0 %6875 }
 0xe54   :  { %12165 = vmatprep.subr.bf16.mxu0 %v14230_v2  ;;  %12281 = vmatprep.subr.bf16.mxu1 %v14187_v62 }
 0xe55   :  { %11139 = vmatprep.mubr.f32.mxu0 %v14202_v51 }
 0xe56   :  { %11255 = vmatmul.mubr.f32.vlgmr.msra.gmra.mrb[12].mxu1 %v14268_v11 }
 0xe57   :  { %12167 = vmatpush3.bf16.msra.mxu0 %v14230_v2  ;;  %12283 = vmatpush3.bf16.msra.mxu1 %v14187_v62  ;;  %v6871_v62 = vpop.permute.xlu1 %6870 }
 0xe58   :  { %12169 = vmatprep.subr.bf16.mxu0 %v14266_v1  ;;  %12285 = vmatprep.subr.bf16.mxu1 %v14249_v54 }
 0xe59   :  { %11277 = vmatprep.mubr.f32.mxu1 %v14202_v51 }
 0xe5b   :  { %12171 = vmatpush3.bf16.msra.mxu0 %v14266_v1  ;;  %12287 = vmatpush3.bf16.msra.mxu1 %v14249_v54 }
 0xe5c   :  { %12173 = vmatprep.subr.bf16.mxu0 %v14299_v29  ;;  %12289 = vmatprep.subr.bf16.mxu1 %v14284_v16 }
 0xe5f   :  { %12175 = vmatpush3.bf16.msra.mxu0 %v14299_v29  ;;  %12291 = vmatpush3.bf16.msra.mxu1 %v14284_v16 }
 0xe60   :  { %12177 = vmatprep.subr.bf16.mxu0 %v14335_v34  ;;  %12293 = vmatprep.subr.bf16.mxu1 %v14318_v23 }
 0xe63   :  { %12179 = vmatpush3.bf16.msra.mxu0 %v14335_v34  ;;  %12295 = vmatpush3.bf16.msra.mxu1 %v14318_v23 }
 0xe64   :  { %12297 = vmatprep.subr.bf16.mxu1 %v14354_v30 }
 0xe66   :  { %11140 = vmatmul.mubr.f32.vlgmr.msra.gmra.mrb[12].mxu0 %v14268_v11 }
 0xe67   :  { %12299 = vmatpush3.bf16.msra.mxu1 %v14354_v30 }
 0xe6a   :  { %11278 = vmatmul.mubr.f32.vlgmr.msra.gmra.mrb[12].mxu1 %v14268_v11  ;;  %v9296_v11 = vld [vmem:[%s14705_s7 + $0x10] sm:$0xff] }
 0xe6b   :  { %v8147_v45 = vsel %vm5629_vm3, %v9296_v11, 0 }
 0xe6c   :  { %v14481_v57 = vand.u32 4294901760, %v8147_v45 }
 0xe6e   :  { %v14487_v7 = vsub.f32 %v8147_v45, %v14481_v57 }
 0xe70   :  { %v14495_v22 = vand.u32 4294901760, %v14487_v7 }
 0xe72   :  { %v8226_v50 = vsub.f32 %v14487_v7, %v14495_v22 }
 0xe74   :  { %v8227_v47 = vand.u32 4294901760, %v8226_v50 }
 0xe76   :  { %11292 = vmatprep.mubr.f32.mxu0 %v8227_v47  ;;  %11382 = vmatprep.mubr.f32.mxu1 %v8227_v47 }
 0xf39   :  { %v11141_v51 = vpop.f32.mrb[12].mxu0 }
 0xf3a   :  { %v12460_v2 = vadd.f32 %v11141_v51, %v6876_v15  ;;  %v7480_v54 = vpop.f32.mrb[13].mxu0 }
 0xf3b   :  { %v12461_v1 = vadd.f32 %v7480_v54, %v6871_v62 }
 0xf3c   :  { %vm8097_vm0 = vcmp.ge.f32.partialorder %v12460_v2, 0.0  ;;  %v8101_v27 = vmul.f32 0.01, %v12460_v2 }
 0xf3d   :  { %vm8096_vm5 = vcmp.ge.f32.partialorder %v12461_v1, 0.0  ;;  %v8100_v59 = vmul.f32 0.01, %v12461_v1  ;;  %v11279_v16 = vpop.f32.mrb[12].mxu1 }
 0xf3e   :  { %v12462_v12 = vadd.f32 %v11279_v16, %v6876_v15  ;;  %v8086_v53 = vpop.f32.mrb[13].mxu1  ;;  %v8105_v20 = vsel %vm8097_vm0, %v12460_v2, %v8101_v27  ;;  %v14531_v15 = vsub.f32 %v8150_v13, %v14528_v38 }
 0xf3f   :  { %v8104_v29 = vsel %vm8096_vm5, %v12461_v1, %v8100_v59  ;;  %v12463_v35 = vadd.f32 %v8086_v53, %v6871_v62  ;;  %8114 = vrot.lane.b32.xlu1 %v8105_v20, %s12700_s0  ;;  %v8156_v49 = vand.u32 4294901760, %v8105_v20 }
 0xf40   :  { %v8153_v43 = vand.u32 4294901760, %v8104_v29  ;;  %vm8099_vm6 = vcmp.ge.f32.partialorder %v12462_v12, 0.0  ;;  %v8103_v23 = vmul.f32 0.01, %v12462_v12 }
 0xf41   :  { %vm8098_vm7 = vcmp.ge.f32.partialorder %v12463_v35, 0.0  ;;  %v8102_v36 = vmul.f32 0.01, %v12463_v35  ;;  %v8252_v34 = vsub.f32 %v8105_v20, %v8156_v49 }
 0xf42   :  { %v8245_v28 = vsub.f32 %v8104_v29, %v8153_v43  ;;  %v14483_v30 = vpack.c.bf16 %v8156_v49, %v8153_v43  ;;  %v8107_v46 = vsel %vm8099_vm6, %v12462_v12, %v8103_v23  ;;  %v14544_v12 = vand.u32 4294901760, %v14531_v15 }
 0xf43   :  { %8118 = vrot.lane.b32.xlu1 %v8107_v46, %s12700_s0  ;;  %v8710_v32 = vand.u32 4294901760, %v8107_v46  ;;  %v8106_v18 = vsel %vm8098_vm7, %v12463_v35, %v8102_v36  ;;  %v8253_v39 = vand.u32 4294901760, %v8252_v34 }
 0xf44   :  { %8116 = vrot.lane.b32.xlu0 %v8106_v18, %s12700_s0  ;;  %v8707_v58 = vand.u32 4294901760, %v8106_v18  ;;  %12301 = vmatprep.subr.bf16.mxu0 %v14483_v30  ;;  %v8246_v8 = vand.u32 4294901760, %v8245_v28  ;;  %v14491_v26 = vpack.c.bf16 %v8252_v34, %v8245_v28 }
 0xf45   :  { %v8806_v5 = vsub.f32 %v8107_v46, %v8710_v32  ;;  %12303 = vmatpush3.bf16.msra.mxu0 %v14483_v30  ;;  %v8254_v0 = vsub.f32 %v8252_v34, %v8253_v39 }
 0xf46   :  { %v14497_v61 = vpack.c.bf16 %v8710_v32, %v8707_v58  ;;  %v8799_v25 = vsub.f32 %v8106_v18, %v8707_v58  ;;  %v8247_v24 = vsub.f32 %v8245_v28, %v8246_v8  ;;  %v14502_v9 = vpack.c.bf16 %v8253_v39, %v8246_v8 }
 0xf47   :  { %8126 = vrot.lane.b32.xlu1 %v8105_v20, %s12701_s14  ;;  %v8255_v44 = vand.u32 4294901760, %v8254_v0  ;;  %v8807_v17 = vand.u32 4294901760, %v8806_v5  ;;  %v8236_v28 = vsub.f32 %v14531_v15, %v14544_v12 }
 0xf48   :  { %12373 = vmatprep.subr.bf16.mxu1 %v14497_v61  ;;  %8124 = vrot.lane.b32.xlu0 %v8104_v29, %s12701_s14  ;;  %v8248_v40 = vand.u32 4294901760, %v8247_v24  ;;  %v8800_v37 = vand.u32 4294901760, %v8799_v25  ;;  %v14506_v3 = vpack.c.bf16 %v8806_v5, %v8799_v25 }
 0xf49   :  { %12375 = vmatpush3.bf16.msra.mxu1 %v14497_v61  ;;  %v8808_v41 = vsub.f32 %v8806_v5, %v8807_v17 }
 0xf4a   :  { %v14509_v56 = vpack.c.bf16 %v8255_v44, %v8248_v40  ;;  %v8801_v60 = vsub.f32 %v8799_v25, %v8800_v37  ;;  %v14511_v21 = vpack.c.bf16 %v8807_v17, %v8800_v37  ;;  %v8237_v37 = vand.u32 4294901760, %v8236_v28 }
 0xf4b   :  { %8112 = vrot.lane.b32.xlu1 %v8104_v29, %s12700_s0  ;;  %v8809_v4 = vand.u32 4294901760, %v8808_v41 }
 0xf4c   :  { %8128 = vrot.lane.b32.xlu0 %v8106_v18, %s12701_s14  ;;  %v8802_v48 = vand.u32 4294901760, %v8801_v60 }
 0xf4e   :  { %v14518_v10 = vpack.c.bf16 %v8809_v4, %v8802_v48 }
 0xf4f   :  { %8130 = vrot.lane.b32.xlu1 %v8107_v46, %s12701_s14 }
 0xf50   :  { %8138 = vperm.xlu0 %12659, %v9298_v31  }
 0xf53   :  { %8143 = vperm.xlu1 %12658, %v9299_v19  }
 0xfb1   :  { %v8115_v6 = vpop.permute.xlu1 %8114 }
 0xfb2   :  { %v8162_v14 = vand.u32 4294901760, %v8115_v6 }
 0xfb4   :  { %v14539_v59 = vsub.f32 %v8115_v6, %v8162_v14 }
 0xfb5   :  { %v8119_v42 = vpop.permute.xlu1 %8118 }
 0xfb6   :  { %v8716_v33 = vand.u32 4294901760, %v8119_v42  ;;  %v8117_v63 = vpop.permute.xlu0 %8116  ;;  %v8267_v23 = vand.u32 4294901760, %v14539_v59 }
 0xfb7   :  { %v8713_v55 = vand.u32 4294901760, %v8117_v63 }
 0xfb8   :  { %v14533_v62 = vsub.f32 %v8119_v42, %v8716_v33  ;;  %v8268_v24 = vsub.f32 %v14539_v59, %v8267_v23 }
 0xfb9   :  { %v14535_v51 = vpack.c.bf16 %v8716_v33, %v8713_v55  ;;  %v14537_v2 = vsub.f32 %v8117_v63, %v8713_v55  ;;  %v8127_v54 = vpop.permute.xlu1 %8126 }
 0xfba   :  { %v8168_v1 = vand.u32 4294901760, %v8127_v54  ;;  %v8125_v27 = vpop.permute.xlu0 %8124  ;;  %v8821_v53 = vand.u32 4294901760, %v14533_v62  ;;  %v8269_v6 = vand.u32 4294901760, %v8268_v24 }
 0xfbb   :  { %v8165_v16 = vand.u32 4294901760, %v8125_v27  ;;  %12377 = vmatprep.subr.bf16.mxu1 %v14535_v51  ;;  %v8814_v20 = vand.u32 4294901760, %v14537_v2 }
 0xfbc   :  { %12379 = vmatpush3.bf16.msra.mxu1 %v14535_v51  ;;  %v14548_v35 = vsub.f32 %v8127_v54, %v8168_v1  ;;  %v8822_v46 = vsub.f32 %v14533_v62, %v8821_v53 }
 0xfbd   :  { %v8113_v29 = vpop.permute.xlu1 %8112  ;;  %v14550_v49 = vsub.f32 %v8125_v27, %v8165_v16  ;;  %v8815_v32 = vsub.f32 %v14537_v2, %v8814_v20  ;;  %v14565_v18 = vpack.c.bf16 %v8168_v1, %v8165_v16 }
 0xfbe   :  { %v8159_v11 = vand.u32 4294901760, %v8113_v29  ;;  %v8129_v43 = vpop.permute.xlu0 %8128  ;;  %v8281_v8 = vand.u32 4294901760, %v14548_v35  ;;  %v8823_v47 = vand.u32 4294901760, %v8822_v46 }
 0xfbf   :  { %v8719_v45 = vand.u32 4294901760, %v8129_v43  ;;  %v8274_v5 = vand.u32 4294901760, %v14550_v49  ;;  %v8816_v41 = vand.u32 4294901760, %v8815_v32  ;;  %v12332_v27 = vpack.c.bf16 %v14548_v35, %v14550_v49 }
 0xfc0   :  { %v14553_v36 = vpack.c.bf16 %v8162_v14, %v8159_v11  ;;  %v14555_v34 = vsub.f32 %v8113_v29, %v8159_v11  ;;  %v8282_v60 = vsub.f32 %v14548_v35, %v8281_v8  ;;  %v14782_v35 = vld [vmem:[#allocation10_spill] sm:$0xff] }
 0xfc1   :  { %v14567_v39 = vsub.f32 %v8129_v43, %v8719_v45  ;;  %v8131_v58 = vpop.permute.xlu1 %8130  ;;  %v8275_v4 = vsub.f32 %v14550_v49, %v8274_v5  ;;  %v12388_v13 = vpack.c.bf16 %v8823_v47, %v8816_v41  ;;  %v14783_v43 = vld [vmem:[#allocation6_spill] sm:$0xff] }
 0xfc2   :  { %v8260_v0 = vand.u32 4294901760, %v14555_v34  ;;  %v8722_v25 = vand.u32 4294901760, %v8131_v58  ;;  %12305 = vmatprep.subr.bf16.mxu0 %v14553_v36  ;;  %v8283_v63 = vand.u32 4294901760, %v8282_v60 }
 0xfc3   :  { %12307 = vmatpush3.bf16.msra.mxu0 %v14553_v36  ;;  %v8828_v17 = vand.u32 4294901760, %v14567_v39  ;;  %v8276_v33 = vand.u32 4294901760, %v8275_v4 }
 0xfc4   :  { %v8261_v44 = vsub.f32 %v14555_v34, %v8260_v0  ;;  %v14581_v50 = vpack.c.bf16 %v8722_v25, %v8719_v45  ;;  %v14583_v40 = vsub.f32 %v8131_v58, %v8722_v25  ;;  %12309 = vmatprep.subr.bf16.mxu0 %v14565_v18  ;;  %v14784_v45 = vld [vmem:[#allocation8_spill] sm:$0xff] }
 0xfc5   :  { %v8829_v19 = vsub.f32 %v14567_v39, %v8828_v17  ;;  %v12320_v54 = vpack.c.bf16 %v8283_v63, %v8276_v33 }
 0xfc6   :  { %v8835_v48 = vand.u32 4294901760, %v14583_v40  ;;  %12381 = vmatprep.subr.bf16.mxu1 %v14581_v50  ;;  %v8262_v31 = vand.u32 4294901760, %v8261_v44  ;;  %v12404_v16 = vpack.c.bf16 %v14583_v40, %v14567_v39 }
 0xfc7   :  { %12311 = vmatpush3.bf16.msra.mxu0 %v14565_v18  ;;  %12383 = vmatpush3.bf16.msra.mxu1 %v14581_v50  ;;  %v8830_v55 = vand.u32 4294901760, %v8829_v19 }
 0xfc8   :  { %v8836_v52 = vsub.f32 %v14583_v40, %v8835_v48  ;;  %12313 = vmatprep.subr.bf16.mxu0 %v14509_v56  ;;  %12385 = vmatprep.subr.bf16.mxu1 %v14518_v10  ;;  %v12316_v42 = vpack.c.bf16 %v8269_v6, %v8262_v31 }
 0xfca   :  { %11293 = vmatmul.mubr.f32.vlgmr.msra.gmra.mrb[14].mxu0 %v8237_v37  ;;  %11383 = vmatmul.mubr.f32.vlgmr.msra.gmra.mrb[14].mxu1 %v8237_v37  ;;  %v8837_v14 = vand.u32 4294901760, %v8836_v52 }
 0xfcb   :  { %12315 = vmatpush3.bf16.msra.mxu0 %v14509_v56  ;;  %12387 = vmatpush3.bf16.msra.mxu1 %v14518_v10  ;;  %v12328_v56 = vpack.c.bf16 %v14539_v59, %v14555_v34  ;;  %v12400_v10 = vpack.c.bf16 %v14533_v62, %v14537_v2 }
 0xfcc   :  { %12317 = vmatprep.subr.bf16.mxu0 %v12316_v42  ;;  %12389 = vmatprep.subr.bf16.mxu1 %v12388_v13  ;;  %v12392_v1 = vpack.c.bf16 %v8837_v14, %v8830_v55 }
 0xfcd   :  { %11307 = vmatprep.mubr.f32.mxu0 %v14481_v57  ;;  %11397 = vmatprep.mubr.f32.mxu1 %v14481_v57 }
 0xfcf   :  { %12319 = vmatpush3.bf16.msra.mxu0 %v12316_v42  ;;  %12391 = vmatpush3.bf16.msra.mxu1 %v12388_v13 }
 0xfd0   :  { %12321 = vmatprep.subr.bf16.mxu0 %v12320_v54  ;;  %12393 = vmatprep.subr.bf16.mxu1 %v12392_v1 }
 0xfd3   :  { %12323 = vmatpush3.bf16.msra.mxu0 %v12320_v54  ;;  %12395 = vmatpush3.bf16.msra.mxu1 %v12392_v1 }
 0xfd4   :  { %12325 = vmatprep.subr.bf16.mxu0 %v14491_v26  ;;  %12397 = vmatprep.subr.bf16.mxu1 %v14506_v3 }
 0xfd6   :  { %11308 = vmatmul.mubr.f32.vlgmr.msra.gmra.mrb[14].mxu0 %v14528_v38  ;;  %11398 = vmatmul.mubr.f32.vlgmr.msra.gmra.mrb[14].mxu1 %v14528_v38 }
 0xfd7   :  { %12327 = vmatpush3.bf16.msra.mxu0 %v14491_v26  ;;  %12399 = vmatpush3.bf16.msra.mxu1 %v14506_v3  ;;  %v12424_v26 = vpack.c.bf16 %v8821_v53, %v8814_v20  ;;  %v12428_v3 = vpack.c.bf16 %v8835_v48, %v8828_v17  ;;  %v14781_v20 = vld [vmem:[#allocation7_spill] sm:$0xff] }
 0xfd8   :  { %12329 = vmatprep.subr.bf16.mxu0 %v12328_v56  ;;  %12401 = vmatprep.subr.bf16.mxu1 %v12400_v10 }
 0xfd9   :  { %11322 = vmatprep.mubr.f32.mxu0 %v14487_v7  ;;  %11412 = vmatprep.mubr.f32.mxu1 %v14487_v7  ;;  %v12352_v7 = vpack.c.bf16 %v8267_v23, %v8260_v0 }
 0xfdb   :  { %12331 = vmatpush3.bf16.msra.mxu0 %v12328_v56  ;;  %12403 = vmatpush3.bf16.msra.mxu1 %v12400_v10 }
 0xfdc   :  { %12333 = vmatprep.subr.bf16.mxu0 %v12332_v27  ;;  %12405 = vmatprep.subr.bf16.mxu1 %v12404_v16 }
 0xfdf   :  { %12335 = vmatpush3.bf16.msra.mxu0 %v12332_v27  ;;  %12407 = vmatpush3.bf16.msra.mxu1 %v12404_v16 }
 0xfe0   :  { %12337 = vmatprep.subr.bf16.mxu0 %v14483_v30  ;;  %12409 = vmatprep.subr.bf16.mxu1 %v14497_v61 }
 0xfe2   :  { %11323 = vmatmul.mubr.f32.vlgmr.msra.gmra.mrb[14].mxu0 %v14531_v15  ;;  %11413 = vmatmul.mubr.f32.vlgmr.msra.gmra.mrb[14].mxu1 %v14531_v15 }
 0xfe3   :  { %12339 = vmatpush3.bf16.msra.mxu0 %v14483_v30  ;;  %12411 = vmatpush3.bf16.msra.mxu1 %v14497_v61 }
 0xfe4   :  { %12341 = vmatprep.subr.bf16.mxu0 %v14553_v36  ;;  %12413 = vmatprep.subr.bf16.mxu1 %v14535_v51 }
 0xfe5   :  { %11337 = vmatprep.mubr.f32.mxu0 %v14495_v22  ;;  %11427 = vmatprep.mubr.f32.mxu1 %v14495_v22  ;;  %v12356_v22 = vpack.c.bf16 %v8281_v8, %v8274_v5 }
 0xfe7   :  { %12343 = vmatpush3.bf16.msra.mxu0 %v14553_v36  ;;  %12415 = vmatpush3.bf16.msra.mxu1 %v14535_v51 }
 0xfe8   :  { %12345 = vmatprep.subr.bf16.mxu0 %v14565_v18  ;;  %12417 = vmatprep.subr.bf16.mxu1 %v14581_v50 }
 0xfeb   :  { %12347 = vmatpush3.bf16.msra.mxu0 %v14565_v18  ;;  %12419 = vmatpush3.bf16.msra.mxu1 %v14581_v50 }
 0xfec   :  { %12349 = vmatprep.subr.bf16.mxu0 %v14502_v9  ;;  %12421 = vmatprep.subr.bf16.mxu1 %v14511_v21 }
 0xfee   :  { %11338 = vmatmul.mubr.f32.vlgmr.msra.gmra.mrb[14].mxu0 %v14544_v12  ;;  %11428 = vmatmul.mubr.f32.vlgmr.msra.gmra.mrb[14].mxu1 %v14544_v12 }
 0xfef   :  { %12351 = vmatpush3.bf16.msra.mxu0 %v14502_v9  ;;  %12423 = vmatpush3.bf16.msra.mxu1 %v14511_v21 }
 0xff0   :  { %12353 = vmatprep.subr.bf16.mxu0 %v12352_v7  ;;  %12425 = vmatprep.subr.bf16.mxu1 %v12424_v26 }
 0xff1   :  { %11352 = vmatprep.mubr.f32.mxu0 %v14481_v57  ;;  %11442 = vmatprep.mubr.f32.mxu1 %v14481_v57 }
 0xff3   :  { %12355 = vmatpush3.bf16.msra.mxu0 %v12352_v7  ;;  %12427 = vmatpush3.bf16.msra.mxu1 %v12424_v26 }
 0xff4   :  { %12357 = vmatprep.subr.bf16.mxu0 %v12356_v22  ;;  %12429 = vmatprep.subr.bf16.mxu1 %v12428_v3 }
 0xff7   :  { %12359 = vmatpush3.bf16.msra.mxu0 %v12356_v22  ;;  %12431 = vmatpush3.bf16.msra.mxu1 %v12428_v3 }
 0xff8   :  { %12361 = vmatprep.subr.bf16.mxu0 %v14483_v30  ;;  %12433 = vmatprep.subr.bf16.mxu1 %v14497_v61 }
 0xffa   :  { %11353 = vmatmul.mubr.f32.vlgmr.msra.gmra.mrb[14].mxu0 %v14528_v38  ;;  %11443 = vmatmul.mubr.f32.vlgmr.msra.gmra.mrb[14].mxu1 %v14528_v38 }
 0xffb   :  { %12363 = vmatpush3.bf16.msra.mxu0 %v14483_v30  ;;  %12435 = vmatpush3.bf16.msra.mxu1 %v14497_v61  ;;  %v8139_v30 = vpop.permute.xlu0 %8138  ;;  %v8144_v61 = vpop.permute.xlu1 %8143 }
 0xffc   :  { %12365 = vmatprep.subr.bf16.mxu0 %v14553_v36  ;;  %12437 = vmatprep.subr.bf16.mxu1 %v14535_v51 }
 0xffd   :  { %11367 = vmatprep.mubr.f32.mxu0 %v14481_v57  ;;  %11457 = vmatprep.mubr.f32.mxu1 %v14481_v57 }
 0xfff   :  { %12367 = vmatpush3.bf16.msra.mxu0 %v14553_v36  ;;  %12439 = vmatpush3.bf16.msra.mxu1 %v14535_v51 }
0x1000   :  { %12369 = vmatprep.subr.bf16.mxu0 %v14565_v18  ;;  %12441 = vmatprep.subr.bf16.mxu1 %v14581_v50 }
0x1003   :  { %12371 = vmatpush3.bf16.msra.mxu0 %v14565_v18  ;;  %12443 = vmatpush3.bf16.msra.mxu1 %v14581_v50 }
0x1006   :  { %11368 = vmatmul.mubr.f32.vlgmr.msra.gmra.mrb[14].mxu0 %v14528_v38  ;;  %11458 = vmatmul.mubr.f32.vlgmr.msra.gmra.mrb[14].mxu1 %v14528_v38 }
0x10d9   :  { %v11369_v9 = vpop.f32.mrb[14].mxu0  ;;  %v11459_v57 = vpop.f32.mrb[14].mxu1 }
0x10da   :  { %v12464_v21 = vadd.f32 %v11369_v9, %v8144_v61  ;;  %v12466_v15 = vadd.f32 %v11459_v57, %v8144_v61  ;;  %v8696_v62 = vpop.f32.mrb[15].mxu0  ;;  %v9250_v51 = vpop.f32.mrb[15].mxu1 }
0x10db   :  { %v12465_v2 = vadd.f32 %v8696_v62, %v8139_v30  ;;  %v12467_v59 = vadd.f32 %v9250_v51, %v8139_v30 }
0x10dc   :  { %12688 = vtanh.f32 %v12464_v21 }
0x10dd   :  { %12690 = vtanh.f32 %v12466_v15 }
0x10de   :  { %12692 = vtanh.f32 %v12465_v2 }
0x10df   :  { %12694 = vtanh.f32 %v12467_v59 }
0x10e6   :  { %v12689_v12 = vpop.eup %12688 }
0x10e7   :  { %v12691_v53 = vpop.eup %12690  ;;  %v9272_v29 = vsub.f32 %v14781_v20, %v12689_v12 }
0x10e8   :  { %v12693_v38 = vpop.eup %12692  ;;  %v9274_v49 = vsub.f32 %v14782_v35, %v12691_v53 }
0x10e9   :  { %v12695_v11 = vpop.eup %12694  ;;  %9281 = vst.msk [vmem:[%s14707_s9 + $0x8] sm:$0xff] %vm9279_vm8, %v9272_v29  ;;  %v9267_v23 = vadd.f32 %v12693_v38, %v14783_v43 }
0x10ea   :  { %9283 = vst.msk [vmem:[%s14707_s9 + $0x18] sm:$0xff] %vm9279_vm8, %v9274_v49  ;;  %v9269_v36 = vadd.f32 %v12695_v11, %v14784_v45 }
0x10eb   :  { %9280 = vst.msk [vmem:[%s14707_s9] sm:$0xff] %vm9279_vm8, %v9267_v23 }
0x10ec   :  { %9282 = vst.msk [vmem:[%s14707_s9 + $0x10] sm:$0xff] %vm9279_vm8, %v9269_v36 }

</bundles_post_ra>
